<compile_context>
chip_gen: v6e
topology: v6e:2x2x1
jax: 0.10.0
libtpu: 0.0.40
codegen_flags: <defaults>
</compile_context>

<pallas_src>
import jax
import jax.numpy as jnp
import numpy as np
from jax.experimental import pallas as pl
from jax.experimental.pallas import tpu as pltpu

# ---------------------------------------------------------------------------
# Config (matches the column slicing hard-coded in the PyTorch forward).
# ---------------------------------------------------------------------------
EMB_DIM = 32          # config['embedding_dim']
FC1_HID = 64          # config['first_fc_hidden_dim']
FC2_HID = 64          # config['second_fc_hidden_dim']
NUM_RATE = 6
NUM_GENRE = 25        # cols 1:26
NUM_DIRECTOR = 2186   # cols 26:2212
NUM_ACTOR = 7978      # cols 2212:10190
NUM_GENDER = 2
NUM_AGE = 7
NUM_OCCUPATION = 21
NUM_ZIPCODE = 32

COL_GENRE = (1, 26)
COL_DIRECTOR = (26, 2212)
COL_ACTOR = (2212, 10190)
COL_USER = 10190                       # gender, age, occupation, area
TOTAL_COLS = 1 + NUM_GENRE + NUM_DIRECTOR + NUM_ACTOR + 4    # = 10194

POOL_W = EMB_DIM + 1                   # 32 emb cols + 1 hot-count col
NUM_POOL_OUT = 3 * POOL_W              # 99 (genre | director | actor)

SMALL_SIZES = (NUM_RATE, NUM_GENDER, NUM_AGE, NUM_OCCUPATION, NUM_ZIPCODE)
SMALL_OFFSETS = tuple(int(v) for v in np.concatenate([[0], np.cumsum(SMALL_SIZES)[:-1]]))
N_SMALL = int(sum(SMALL_SIZES))        # 68 rows in the stacked embedding table


def _round_up(n, m):
    return ((n + m - 1) // m) * m


# ---------------------------------------------------------------------------
# Per-generation VMEM budget: tile size + explicit scoped-VMEM limit.
#   v5e/v6e: 128 MiB physical -> 512-row tiles (longer DMAs, less per-step
#            overhead); v7x: 64 MiB per TensorCore -> 256-row tiles.
# ---------------------------------------------------------------------------
def _vmem_budget():
    try:
        cap = int(pltpu.get_tpu_info().vmem_capacity_bytes)
    except Exception:
        cap = 64 << 20                 # conservative: v7x per-TC VMEM
    if cap >= (100 << 20):             # v5e / v6e (128 MiB physical)
        return 512, (100 << 20)
    return 256, (44 << 20)             # v7x (64 MiB per TC)


MAX_TILE_B, VMEM_LIMIT_BYTES = _vmem_budget()


def _choose_tile_b(batch):
    tile_b = min(MAX_TILE_B, _round_up(batch, 8))
    # v7x has 2 TensorCores: give mid/large batches >= 2 grid tiles so the
    # "parallel" batch axis can be sharded across both cores.
    if batch >= 128 and pl.cdiv(batch, tile_b) < 2:
        tile_b = _round_up(pl.cdiv(batch, 2), 8)
    return tile_b


# ---------------------------------------------------------------------------
# Pallas kernel: one batch tile per grid step.  All weights stay resident
# (constant index_map); only the raw int32 x block streams through.
# ---------------------------------------------------------------------------
def melu_kernel(x_ref, wbig_ref, emb_ref,
                w1_ref, b1_ref, w2_ref, b2_ref, w3_ref, b3_ref,
                out_ref):
    f32 = jnp.float32
    tb = x_ref.shape[0]

    # ---- multi-hot groups: single bf16 matmul over the full raw row. -------
    # W_big is zero outside each group's rows, so the index columns contribute
    # nothing; the ones column per group makes proj[:, g*33+32] the hot count.
    x_bf = x_ref[...].astype(jnp.bfloat16)             # 0/1 multi-hots exact
    proj = jnp.dot(x_bf, wbig_ref[...], preferred_element_type=f32)   # (tb, 99)

    def pooled(g):
        emb = proj[:, g * POOL_W:g * POOL_W + EMB_DIM]
        cnt = proj[:, g * POOL_W + EMB_DIM:g * POOL_W + EMB_DIM + 1]
        return emb * pl.reciprocal(cnt, approx=True)    # mean over hot entries

    genre_emb, director_emb, actor_emb = pooled(0), pooled(1), pooled(2)

    # ---- single-index embeddings: one-hot vs block-diagonal table. ---------
    rate_idx = x_ref[:, 0:1]                            # (tb, 1) int32
    user_idx = x_ref[:, COL_USER:COL_USER + 4]          # gender, age, occ, area
    iota = jax.lax.broadcasted_iota(jnp.int32, (tb, N_SMALL), 1)
    hot = iota == rate_idx + SMALL_OFFSETS[0]
    for j in range(4):
        hot = hot | (iota == user_idx[:, j:j + 1] + SMALL_OFFSETS[j + 1])
    onehot = jnp.where(hot, 1.0, 0.0).astype(f32)
    small = jnp.dot(onehot, emb_ref[...], preferred_element_type=f32)  # (tb, 160)

    # torch.cat((item_emb, user_emb), 1):
    #   item = [rate, genre, director, actor]; user = [gender, age, occ, area]
    h0 = jnp.concatenate(
        [small[:, :EMB_DIM], genre_emb, director_emb, actor_emb,
         small[:, EMB_DIM:]],
        axis=1)                                          # (tb, 256) f32

    h1 = jnp.maximum(jnp.dot(h0, w1_ref[...], preferred_element_type=f32)
                     + b1_ref[...], 0.0)
    h2 = jnp.maximum(jnp.dot(h1, w2_ref[...], preferred_element_type=f32)
                     + b2_ref[...], 0.0)
    out = jnp.dot(h2, w3_ref[...], preferred_element_type=f32) + b3_ref[...]
    out_ref[...] = out.astype(out_ref.dtype)


# ---------------------------------------------------------------------------
# One-time parameter prep (outside the hot path).
# ---------------------------------------------------------------------------
def prepare_kernel_params(params):
    # W_big (10194, 99) bf16: per-group weights + ones column, zero elsewhere.
    w_big = np.zeros((TOTAL_COLS, NUM_POOL_OUT), np.float32)

    def put(rows, col0, w):
        w = np.asarray(w, np.float32)
        w_big[rows[0]:rows[1], col0:col0 + EMB_DIM] = w
        w_big[rows[0]:rows[1], col0 + EMB_DIM] = 1.0     # hot-count column

    put(COL_GENRE, 0 * POOL_W, params["w_genre"])
    put(COL_DIRECTOR, 1 * POOL_W, params["w_director"])
    put(COL_ACTOR, 2 * POOL_W, params["w_actor"])

    # Block-diagonal stacked table for the 5 single-index embeddings
    # (columns ordered rate | gender | age | occupation | area).
    tables = [params["emb_rate"], params["emb_gender"], params["emb_age"],
              params["emb_occupation"], params["emb_area"]]
    e_big = np.zeros((N_SMALL, 5 * EMB_DIM), np.float32)
    r = 0
    for i, t in enumerate(tables):
        t = np.asarray(t, np.float32)
        e_big[r:r + t.shape[0], i * EMB_DIM:(i + 1) * EMB_DIM] = t
        r += t.shape[0]

    return {
        "w_big": jnp.asarray(w_big, jnp.bfloat16),
        "e_big": jnp.asarray(e_big, jnp.float32),
        "w1": params["w1"], "b1": params["b1"],
        "w2": params["w2"], "b2": params["b2"],
        "w3": params["w3"], "b3": params["b3"],
    }


# ---------------------------------------------------------------------------
# Wrapper: raw int32 x goes straight to the kernel (no slabs, no pad).
# ---------------------------------------------------------------------------
@jax.jit
def melu_forward(x, kparams):
    B = x.shape[0]
    tile_b = _choose_tile_b(B)
    n_tiles = pl.cdiv(B, tile_b)        # boundary block masked by Pallas

    def wspec(shape):                   # resident weight: same block every step
        return pl.BlockSpec(shape, lambda i: (0, 0))

    in_specs = [
        pl.BlockSpec((tile_b, TOTAL_COLS), lambda i: (i, 0)),   # raw int32 x
        wspec((TOTAL_COLS, NUM_POOL_OUT)),                       # W_big (bf16)
        wspec((N_SMALL, 5 * EMB_DIM)),                           # emb table
        wspec((EMB_DIM * 8, FC1_HID)), wspec((1, FC1_HID)),
        wspec((FC1_HID, FC2_HID)), wspec((1, FC2_HID)),
        wspec((FC2_HID, 1)), wspec((1, 1)),
    ]

    return pl.pallas_call(
        melu_kernel,
        out_shape=jax.ShapeDtypeStruct((B, 1), jnp.float32),
        grid=(n_tiles,),
        in_specs=in_specs,
        out_specs=pl.BlockSpec((tile_b, 1), lambda i: (i, 0)),
        compiler_params=pltpu.CompilerParams(
            dimension_semantics=("parallel",),
            vmem_limit_bytes=VMEM_LIMIT_BYTES,
        ),
    )(x, kparams["w_big"], kparams["e_big"],
      kparams["w1"], kparams["b1"], kparams["w2"], kparams["b2"],
      kparams["w3"], kparams["b3"])


# ---------------------------------------------------------------------------
# Pure-JAX reference (mirrors the PyTorch forward) for a correctness check.
# ---------------------------------------------------------------------------
def melu_reference(x, params):
    rate_idx = x[:, 0]
    genre = x[:, 1:26].astype(jnp.float32)
    director = x[:, 26:2212].astype(jnp.float32)
    actor = x[:, 2212:10190].astype(jnp.float32)
    gender_idx = x[:, 10190]
    age_idx = x[:, 10191]
    occupation_idx = x[:, 10192]
    area_idx = x[:, 10193]

    rate_emb = params["emb_rate"][rate_idx]
    genre_emb = genre @ params["w_genre"] / jnp.sum(genre, 1, keepdims=True)
    director_emb = director @ params["w_director"] / jnp.sum(director, 1, keepdims=True)
    actor_emb = actor @ params["w_actor"] / jnp.sum(actor, 1, keepdims=True)
    gender_emb = params["emb_gender"][gender_idx]
    age_emb = params["emb_age"][age_idx]
    occ_emb = params["emb_occupation"][occupation_idx]
    area_emb = params["emb_area"][area_idx]

    h = jnp.concatenate(
        [rate_emb, genre_emb, director_emb, actor_emb,
         gender_emb, age_emb, occ_emb, area_emb], axis=1)
    h = jax.nn.relu(h @ params["w1"] + params["b1"])
    h = jax.nn.relu(h @ params["w2"] + params["b2"])
    return h @ params["w3"] + params["b3"]


# ---------------------------------------------------------------------------
# Deterministic parameter init (PyTorch-style uniform(-1/sqrt(fan_in), ...)).
# ---------------------------------------------------------------------------
def init_params(key):
    def uniform(k, shape, fan_in):
        bound = 1.0 / np.sqrt(fan_in)
        return jax.random.uniform(k, shape, jnp.float32, -bound, bound)

    ks = jax.random.split(key, 16)
    fc1_in = EMB_DIM * 8
    return {
        "emb_rate": jax.random.normal(ks[0], (NUM_RATE, EMB_DIM), jnp.float32),
        "emb_gender": jax.random.normal(ks[1], (NUM_GENDER, EMB_DIM), jnp.float32),
        "emb_age": jax.random.normal(ks[2], (NUM_AGE, EMB_DIM), jnp.float32),
        "emb_occupation": jax.random.normal(ks[3], (NUM_OCCUPATION, EMB_DIM), jnp.float32),
        "emb_area": jax.random.normal(ks[4], (NUM_ZIPCODE, EMB_DIM), jnp.float32),
        "w_genre": uniform(ks[5], (NUM_GENRE, EMB_DIM), NUM_GENRE),
        "w_director": uniform(ks[6], (NUM_DIRECTOR, EMB_DIM), NUM_DIRECTOR),
        "w_actor": uniform(ks[7], (NUM_ACTOR, EMB_DIM), NUM_ACTOR),
        "w1": uniform(ks[8], (fc1_in, FC1_HID), fc1_in),
        "b1": uniform(ks[9], (1, FC1_HID), fc1_in),
        "w2": uniform(ks[10], (FC1_HID, FC2_HID), FC1_HID),
        "b2": uniform(ks[11], (1, FC2_HID), FC1_HID),
        "w3": uniform(ks[12], (FC2_HID, 1), FC2_HID),
        "b3": uniform(ks[13], (1, 1), FC2_HID),
    }


def make_input(key, batch):
    ks = jax.random.split(key, 8)
    rate = jax.random.randint(ks[0], (batch, 1), 0, NUM_RATE)
    genre = (jax.random.uniform(ks[1], (batch, NUM_GENRE)) < 0.2).astype(jnp.int32)
    genre = genre.at[:, 0].set(1)      # guarantee >=1 hot entry (no div-by-zero)
    director = (jax.random.uniform(ks[2], (batch, NUM_DIRECTOR)) < 0.002).astype(jnp.int32)
    director = director.at[:, 0].set(1)
    actor = (jax.random.uniform(ks[3], (batch, NUM_ACTOR)) < 0.002).astype(jnp.int32)
    actor = actor.at[:, 0].set(1)
    gender = jax.random.randint(ks[4], (batch, 1), 0, NUM_GENDER)
    age = jax.random.randint(ks[5], (batch, 1), 0, NUM_AGE)
    occ = jax.random.randint(ks[6], (batch, 1), 0, NUM_OCCUPATION)
    area = jax.random.randint(ks[7], (batch, 1), 0, NUM_ZIPCODE)
    x = jnp.concatenate(
        [rate, genre, director, actor, gender, age, occ, area], axis=1
    ).astype(jnp.int32)
    assert x.shape[1] == TOTAL_COLS
    return x


if __name__ == "__main__":
    root = jax.random.PRNGKey(0)
    k_params, k_data = jax.random.split(root)

    params = init_params(k_params)
    kparams = prepare_kernel_params(params)   # one-time bf16 / block-diag prep
    x = make_input(k_data, batch=8)           # [8, 10194] int32

    out = jax.block_until_ready(melu_forward(x, kparams))

    ref = melu_reference(x, params)
    np.testing.assert_allclose(np.asarray(out), np.asarray(ref), rtol=5e-2, atol=5e-3)
    assert out.shape == (8, 1) and out.dtype == jnp.float32

    print("KERNEL_OK")
</pallas_src>

<mosaic_0001>
module attributes {stable_mosaic.version = 11 : i64} {
  func.func @melu_kernel(%arg0: i32, %arg1: memref<8x10194xi32, #tpu.memory_space<vmem>>, %arg2: memref<10194x99xbf16, #tpu.memory_space<vmem>>, %arg3: memref<68x160xf32, #tpu.memory_space<vmem>>, %arg4: memref<256x64xf32, #tpu.memory_space<vmem>>, %arg5: memref<1x64xf32, #tpu.memory_space<vmem>>, %arg6: memref<64x64xf32, #tpu.memory_space<vmem>>, %arg7: memref<1x64xf32, #tpu.memory_space<vmem>>, %arg8: memref<64x1xf32, #tpu.memory_space<vmem>>, %arg9: memref<1x1xf32, #tpu.memory_space<vmem>>, %arg10: memref<8x1xf32, #tpu.memory_space<vmem>>) attributes {dimension_semantics = [#tpu.dimension_semantics<parallel>], iteration_bounds = array<i64: 1>, scalar_prefetch = 0 : i64, scratch_operands = 0 : i64, tpu.core_type = #tpu.core_type<tc>, window_params = [{transform_indices = @transform_0, window_bounds = array<i64: 8, 10194>}, {pipeline_mode = #tpu.pipeline_mode<synchronous>, transform_indices = @transform_1, window_bounds = array<i64: 10194, 99>}, {pipeline_mode = #tpu.pipeline_mode<synchronous>, transform_indices = @transform_2, window_bounds = array<i64: 68, 160>}, {pipeline_mode = #tpu.pipeline_mode<synchronous>, transform_indices = @transform_3, window_bounds = array<i64: 256, 64>}, {pipeline_mode = #tpu.pipeline_mode<synchronous>, transform_indices = @transform_4, window_bounds = array<i64: 1, 64>}, {pipeline_mode = #tpu.pipeline_mode<synchronous>, transform_indices = @transform_5, window_bounds = array<i64: 64, 64>}, {pipeline_mode = #tpu.pipeline_mode<synchronous>, transform_indices = @transform_6, window_bounds = array<i64: 1, 64>}, {pipeline_mode = #tpu.pipeline_mode<synchronous>, transform_indices = @transform_7, window_bounds = array<i64: 64, 1>}, {pipeline_mode = #tpu.pipeline_mode<synchronous>, transform_indices = @transform_8, window_bounds = array<i64: 1, 1>}, {transform_indices = @transform_9, window_bounds = array<i64: 8, 1>}]} {
    %c0 = arith.constant 0 : index
    %c0_0 = arith.constant 0 : index
    %0 = vector.load %arg1[%c0, %c0_0] : memref<8x10194xi32, #tpu.memory_space<vmem>>, vector<8x10194xi32>
    %1 = arith.sitofp %0 : vector<8x10194xi32> to vector<8x10194xbf16>
    %c0_1 = arith.constant 0 : index
    %c0_2 = arith.constant 0 : index
    %2 = vector.load %arg2[%c0_1, %c0_2] : memref<10194x99xbf16, #tpu.memory_space<vmem>>, vector<10194x99xbf16>
    %cst = arith.constant dense<0.000000e+00> : vector<8x99xf32>
    %3 = tpu.matmul %1, %2, %cst {dimension_numbers = #tpu.dot_dimension_numbers<[1], [0], [0], [1], [0, 0, 1, 1], [], []>} : vector<8x10194xbf16>, vector<10194x99xbf16>, vector<8x99xf32> -> vector<8x99xf32>
    %4 = vector.extract_strided_slice %3 {offsets = [0, 0], sizes = [8, 32], strides = [1, 1]} : vector<8x99xf32> to vector<8x32xf32>
    %5 = vector.extract_strided_slice %3 {offsets = [0, 32], sizes = [8, 1], strides = [1, 1]} : vector<8x99xf32> to vector<8x1xf32>
    %6 = tpu.reciprocal %5 {approx = true} : vector<8x1xf32> -> vector<8x1xf32>
    %7 = vector.broadcast %6 : vector<8x1xf32> to vector<8x32xf32>
    %8 = arith.mulf %4, %7 : vector<8x32xf32>
    %9 = vector.extract_strided_slice %3 {offsets = [0, 33], sizes = [8, 32], strides = [1, 1]} : vector<8x99xf32> to vector<8x32xf32>
    %10 = vector.extract_strided_slice %3 {offsets = [0, 65], sizes = [8, 1], strides = [1, 1]} : vector<8x99xf32> to vector<8x1xf32>
    %11 = tpu.reciprocal %10 {approx = true} : vector<8x1xf32> -> vector<8x1xf32>
    %12 = vector.broadcast %11 : vector<8x1xf32> to vector<8x32xf32>
    %13 = arith.mulf %9, %12 : vector<8x32xf32>
    %14 = vector.extract_strided_slice %3 {offsets = [0, 66], sizes = [8, 32], strides = [1, 1]} : vector<8x99xf32> to vector<8x32xf32>
    %15 = vector.extract_strided_slice %3 {offsets = [0, 98], sizes = [8, 1], strides = [1, 1]} : vector<8x99xf32> to vector<8x1xf32>
    %16 = tpu.reciprocal %15 {approx = true} : vector<8x1xf32> -> vector<8x1xf32>
    %17 = vector.broadcast %16 : vector<8x1xf32> to vector<8x32xf32>
    %18 = arith.mulf %14, %17 : vector<8x32xf32>
    %c0_3 = arith.constant 0 : index
    %c0_4 = arith.constant 0 : index
    %19 = vector.load %arg1[%c0_3, %c0_4] : memref<8x10194xi32, #tpu.memory_space<vmem>>, vector<8x1xi32>
    %c0_5 = arith.constant 0 : index
    %c10190 = arith.constant 10190 : index
    %20 = vector.load %arg1[%c0_5, %c10190] : memref<8x10194xi32, #tpu.memory_space<vmem>>, vector<8x4xi32>
    %21 = tpu.iota {dimensions = array<i32: 1>} : vector<8x68xi32>
    %c0_i32 = arith.constant 0 : i32
    %22 = vector.broadcast %c0_i32 : i32 to vector<8x1xi32>
    %23 = arith.addi %19, %22 : vector<8x1xi32>
    %24 = vector.broadcast %23 : vector<8x1xi32> to vector<8x68xi32>
    %25 = arith.cmpi eq, %21, %24 : vector<8x68xi32>
    %26 = vector.extract_strided_slice %20 {offsets = [0, 0], sizes = [8, 1], strides = [1, 1]} : vector<8x4xi32> to vector<8x1xi32>
    %c6_i32 = arith.constant 6 : i32
    %27 = vector.broadcast %c6_i32 : i32 to vector<8x1xi32>
    %28 = arith.addi %26, %27 : vector<8x1xi32>
    %29 = vector.broadcast %28 : vector<8x1xi32> to vector<8x68xi32>
    %30 = arith.cmpi eq, %21, %29 : vector<8x68xi32>
    %31 = arith.ori %25, %30 : vector<8x68xi1>
    %32 = vector.extract_strided_slice %20 {offsets = [0, 1], sizes = [8, 1], strides = [1, 1]} : vector<8x4xi32> to vector<8x1xi32>
    %c8_i32 = arith.constant 8 : i32
    %33 = vector.broadcast %c8_i32 : i32 to vector<8x1xi32>
    %34 = arith.addi %32, %33 : vector<8x1xi32>
    %35 = vector.broadcast %34 : vector<8x1xi32> to vector<8x68xi32>
    %36 = arith.cmpi eq, %21, %35 : vector<8x68xi32>
    %37 = arith.ori %31, %36 : vector<8x68xi1>
    %38 = vector.extract_strided_slice %20 {offsets = [0, 2], sizes = [8, 1], strides = [1, 1]} : vector<8x4xi32> to vector<8x1xi32>
    %c15_i32 = arith.constant 15 : i32
    %39 = vector.broadcast %c15_i32 : i32 to vector<8x1xi32>
    %40 = arith.addi %38, %39 : vector<8x1xi32>
    %41 = vector.broadcast %40 : vector<8x1xi32> to vector<8x68xi32>
    %42 = arith.cmpi eq, %21, %41 : vector<8x68xi32>
    %43 = arith.ori %37, %42 : vector<8x68xi1>
    %44 = vector.extract_strided_slice %20 {offsets = [0, 3], sizes = [8, 1], strides = [1, 1]} : vector<8x4xi32> to vector<8x1xi32>
    %c36_i32 = arith.constant 36 : i32
    %45 = vector.broadcast %c36_i32 : i32 to vector<8x1xi32>
    %46 = arith.addi %44, %45 : vector<8x1xi32>
    %47 = vector.broadcast %46 : vector<8x1xi32> to vector<8x68xi32>
    %48 = arith.cmpi eq, %21, %47 : vector<8x68xi32>
    %49 = arith.ori %43, %48 : vector<8x68xi1>
    %cst_6 = arith.constant 1.000000e+00 : f32
    %cst_7 = arith.constant 0.000000e+00 : f32
    %50 = vector.broadcast %cst_6 : f32 to vector<8x68xf32>
    %51 = vector.broadcast %cst_7 : f32 to vector<8x68xf32>
    %52 = arith.select %49, %50, %51 : vector<8x68xi1>, vector<8x68xf32>
    %c0_8 = arith.constant 0 : index
    %c0_9 = arith.constant 0 : index
    %53 = vector.load %arg3[%c0_8, %c0_9] : memref<68x160xf32, #tpu.memory_space<vmem>>, vector<68x160xf32>
    %cst_10 = arith.constant dense<0.000000e+00> : vector<8x160xf32>
    %54 = tpu.matmul %52, %53, %cst_10 {dimension_numbers = #tpu.dot_dimension_numbers<[1], [0], [0], [1], [0, 0, 1, 1], [], []>} : vector<8x68xf32>, vector<68x160xf32>, vector<8x160xf32> -> vector<8x160xf32>
    %55 = vector.extract_strided_slice %54 {offsets = [0, 0], sizes = [8, 32], strides = [1, 1]} : vector<8x160xf32> to vector<8x32xf32>
    %56 = vector.extract_strided_slice %54 {offsets = [0, 32], sizes = [8, 128], strides = [1, 1]} : vector<8x160xf32> to vector<8x128xf32>
    %57 = tpu.concatenate %55, %8, %13, %18, %56 in 1 : vector<8x32xf32>, vector<8x32xf32>, vector<8x32xf32>, vector<8x32xf32>, vector<8x128xf32> -> vector<8x256xf32>
    %c0_11 = arith.constant 0 : index
    %c0_12 = arith.constant 0 : index
    %58 = vector.load %arg4[%c0_11, %c0_12] : memref<256x64xf32, #tpu.memory_space<vmem>>, vector<256x64xf32>
    %cst_13 = arith.constant dense<0.000000e+00> : vector<8x64xf32>
    %59 = tpu.matmul %57, %58, %cst_13 {dimension_numbers = #tpu.dot_dimension_numbers<[1], [0], [0], [1], [0, 0, 1, 1], [], []>} : vector<8x256xf32>, vector<256x64xf32>, vector<8x64xf32> -> vector<8x64xf32>
    %c0_14 = arith.constant 0 : index
    %c0_15 = arith.constant 0 : index
    %60 = vector.load %arg5[%c0_14, %c0_15] : memref<1x64xf32, #tpu.memory_space<vmem>>, vector<1x64xf32>
    %61 = vector.broadcast %60 : vector<1x64xf32> to vector<8x64xf32>
    %62 = arith.addf %59, %61 : vector<8x64xf32>
    %cst_16 = arith.constant 0.000000e+00 : f32
    %63 = vector.broadcast %cst_16 : f32 to vector<8x64xf32>
    %64 = arith.maximumf %62, %63 : vector<8x64xf32>
    %c0_17 = arith.constant 0 : index
    %c0_18 = arith.constant 0 : index
    %65 = vector.load %arg6[%c0_17, %c0_18] : memref<64x64xf32, #tpu.memory_space<vmem>>, vector<64x64xf32>
    %cst_19 = arith.constant dense<0.000000e+00> : vector<8x64xf32>
    %66 = tpu.matmul %64, %65, %cst_19 {dimension_numbers = #tpu.dot_dimension_numbers<[1], [0], [0], [1], [0, 0, 1, 1], [], []>} : vector<8x64xf32>, vector<64x64xf32>, vector<8x64xf32> -> vector<8x64xf32>
    %c0_20 = arith.constant 0 : index
    %c0_21 = arith.constant 0 : index
    %67 = vector.load %arg7[%c0_20, %c0_21] : memref<1x64xf32, #tpu.memory_space<vmem>>, vector<1x64xf32>
    %68 = vector.broadcast %67 : vector<1x64xf32> to vector<8x64xf32>
    %69 = arith.addf %66, %68 : vector<8x64xf32>
    %cst_22 = arith.constant 0.000000e+00 : f32
    %70 = vector.broadcast %cst_22 : f32 to vector<8x64xf32>
    %71 = arith.maximumf %69, %70 : vector<8x64xf32>
    %c0_23 = arith.constant 0 : index
    %c0_24 = arith.constant 0 : index
    %72 = vector.load %arg8[%c0_23, %c0_24] : memref<64x1xf32, #tpu.memory_space<vmem>>, vector<64x1xf32>
    %cst_25 = arith.constant dense<0.000000e+00> : vector<8x1xf32>
    %73 = tpu.matmul %71, %72, %cst_25 {dimension_numbers = #tpu.dot_dimension_numbers<[1], [0], [0], [1], [0, 0, 1, 1], [], []>} : vector<8x64xf32>, vector<64x1xf32>, vector<8x1xf32> -> vector<8x1xf32>
    %c0_26 = arith.constant 0 : index
    %c0_27 = arith.constant 0 : index
    %74 = vector.load %arg9[%c0_26, %c0_27] : memref<1x1xf32, #tpu.memory_space<vmem>>, vector<1x1xf32>
    %75 = vector.broadcast %74 : vector<1x1xf32> to vector<8x1xf32>
    %76 = arith.addf %73, %75 : vector<8x1xf32>
    %c0_28 = arith.constant 0 : index
    %c0_29 = arith.constant 0 : index
    %77 = vector.load %arg10[%c0_28, %c0_29] : memref<8x1xf32, #tpu.memory_space<vmem>>, vector<8x1xf32>
    tpu.vector_store %arg10[%c0_28, %c0_29], %76 {strides = array<i32>} : memref<8x1xf32, #tpu.memory_space<vmem>>, vector<8x1xf32>,
    return
  }
  func.func @transform_0(%arg0: i32) -> (i32, i32) {
    %c0_i32 = arith.constant 0 : i32
    %c0_i32_0 = arith.constant 0 : i32
    return %arg0, %c0_i32 : i32, i32
  }
  func.func @transform_1(%arg0: i32) -> (i32, i32) {
    %c0_i32 = arith.constant 0 : i32
    %c0_i32_0 = arith.constant 0 : i32
    %c0_i32_1 = arith.constant 0 : i32
    return %c0_i32, %c0_i32_0 : i32, i32
  }
  func.func @transform_2(%arg0: i32) -> (i32, i32) {
    %c0_i32 = arith.constant 0 : i32
    %c0_i32_0 = arith.constant 0 : i32
    %c0_i32_1 = arith.constant 0 : i32
    return %c0_i32, %c0_i32_0 : i32, i32
  }
  func.func @transform_3(%arg0: i32) -> (i32, i32) {
    %c0_i32 = arith.constant 0 : i32
    %c0_i32_0 = arith.constant 0 : i32
    %c0_i32_1 = arith.constant 0 : i32
    return %c0_i32, %c0_i32_0 : i32, i32
  }
  func.func @transform_4(%arg0: i32) -> (i32, i32) {
    %c0_i32 = arith.constant 0 : i32
    %c0_i32_0 = arith.constant 0 : i32
    %c0_i32_1 = arith.constant 0 : i32
    return %c0_i32, %c0_i32_0 : i32, i32
  }
  func.func @transform_5(%arg0: i32) -> (i32, i32) {
    %c0_i32 = arith.constant 0 : i32
    %c0_i32_0 = arith.constant 0 : i32
    %c0_i32_1 = arith.constant 0 : i32
    return %c0_i32, %c0_i32_0 : i32, i32
  }
  func.func @transform_6(%arg0: i32) -> (i32, i32) {
    %c0_i32 = arith.constant 0 : i32
    %c0_i32_0 = arith.constant 0 : i32
    %c0_i32_1 = arith.constant 0 : i32
    return %c0_i32, %c0_i32_0 : i32, i32
  }
  func.func @transform_7(%arg0: i32) -> (i32, i32) {
    %c0_i32 = arith.constant 0 : i32
    %c0_i32_0 = arith.constant 0 : i32
    %c0_i32_1 = arith.constant 0 : i32
    return %c0_i32, %c0_i32_0 : i32, i32
  }
  func.func @transform_8(%arg0: i32) -> (i32, i32) {
    %c0_i32 = arith.constant 0 : i32
    %c0_i32_0 = arith.constant 0 : i32
    %c0_i32_1 = arith.constant 0 : i32
    return %c0_i32, %c0_i32_0 : i32, i32
  }
  func.func @transform_9(%arg0: i32) -> (i32, i32) {
    %c0_i32 = arith.constant 0 : i32
    %c0_i32_0 = arith.constant 0 : i32
    return %arg0, %c0_i32 : i32, i32
  }
}

</mosaic_0001>

<bundles_post_ra>
// kernel: melu_forward.1
= control target key start
LH: loop header
LB: loop body
LE: loop exit
PB: predicated region body
PF: predicated region fallthrough
CT: control target
= control target key end

     0   :  { %vm5379_vm0 = vcmask 1040384   ;;  %vm5375_vm1 = vcmask 670720   ;;  %vm7054_vm2 = vcmask 1043456   ;;  %vm7050_vm11 = vcmask 556032   ;;  %s9724_s29 = smov 31   ;;  %s9725_s30 = smov 32   ;;  %s12235_s1 = inlined_call_operand.vmem [shape: bf16[10194,99], index: 1, kind: input, shape index: {}]   ;;  %s12236_s0 = inlined_call_operand.vmem [shape: s32[8,10194], index: 0, kind: input, shape index: {}]   ;;  %s12237_s2 = inlined_call_operand.vmem [shape: f32[68,160], index: 2, kind: input, shape index: {}]   ;;  %s12238_s3 = inlined_call_operand.vmem [shape: f32[256,64], index: 3, kind: input, shape index: {}]   ;;  %s12239_s5 = inlined_call_operand.vmem [shape: f32[64,64], index: 5, kind: input, shape index: {}]   ;;  %s12240_s4 = inlined_call_operand.vmem [shape: f32[1,64], index: 4, kind: input, shape index: {}]   ;;  %s12241_s7 = inlined_call_operand.vmem [shape: f32[64,1], index: 7, kind: input, shape index: {}]   ;;  %s12242_s8 = inlined_call_operand.<no memory space> [shape: f32[1,1], index: 8, kind: input, shape index: {}]   ;;  %s12243_s6 = inlined_call_operand.vmem [shape: f32[1,64], index: 6, kind: input, shape index: {}]   ;;  %s12244_s9 = inlined_call_operand.vmem [shape: f32[8,1], index: 9, kind: output, shape index: {}]  }
   0x1   :  { %v9075_v0 = vld [vmem:[%s12235_s1 + $0x78] sm:$0xff]   ;;  %v9079_v4 = vld [vmem:[%s12235_s1 + $0x70] sm:$0xff]   ;;  %v9083_v8 = vld [vmem:[%s12235_s1 + $0x68] sm:$0xff]   ;;  %s9726_s10 = smov 96   ;;  %vm7153_vm13 = vcmask 261120   ;;  %vm7150_vm14 = vcmask 785408  }
   0x2   :  { %v9076_v1 = vld [vmem:[%s12235_s1 + $0xf8] sm:$0xff]   ;;  %8098 = vmatprep.subr.bf16.mxu0 %v9075_v0  ;;  %v9080_v5 = vld [vmem:[%s12235_s1 + $0xf0] sm:$0xff]   ;;  %v9084_v9 = vld [vmem:[%s12235_s1 + $0xe8] sm:$0xff]   ;;  %vm7155_vm15 = vcmask 523264  }
   0x3   :  { %v9077_v2 = vld [vmem:[%s12235_s1 + $0x38] sm:$0xff]   ;;  %8120 = vmatprep.subr.bf16.mxu1 %v9076_v1  ;;  %v9081_v6 = vld [vmem:[%s12235_s1 + $0x30] sm:$0xff]   ;;  %v9085_v10 = vld [vmem:[%s12235_s1 + $0x28] sm:$0xff]  }
   0x4   :  { %v9078_v3 = vld [vmem:[%s12235_s1 + $0xb8] sm:$0xff]   ;;  %8099 = vmatpush3.bf16.msra.mxu0 %v9077_v2  ;;  %v9082_v7 = vld [vmem:[%s12235_s1 + $0xb0] sm:$0xff]   ;;  %v9086_v11 = vld [vmem:[%s12235_s1 + $0xa8] sm:$0xff]  }
   0x5   :  { %8121 = vmatpush3.bf16.msra.mxu1 %v9078_v3  ;;  %8100 = vmatprep.subr.bf16.mxu0 %v9079_v4  ;;  %v9087_v12 = vld [vmem:[%s12235_s1 + $0x60] sm:$0xff]   ;;  %v9091_v16 = vld [vmem:[%s12235_s1 + $0x58] sm:$0xff]   ;;  %v9095_v20 = vld [vmem:[%s12235_s1 + $0x50] sm:$0xff]  }
   0x6   :  { %8122 = vmatprep.subr.bf16.mxu1 %v9080_v5  ;;  %v9088_v13 = vld [vmem:[%s12235_s1 + $0xe0] sm:$0xff]   ;;  %v9092_v17 = vld [vmem:[%s12235_s1 + $0xd8] sm:$0xff]   ;;  %v9096_v21 = vld [vmem:[%s12235_s1 + $0xd0] sm:$0xff]  }
   0x7   :  { %v9089_v14 = vld [vmem:[%s12235_s1 + $0x20] sm:$0xff]   ;;  %v9093_v18 = vld [vmem:[%s12235_s1 + $0x18] sm:$0xff]   ;;  %v9097_v22 = vld [vmem:[%s12235_s1 + $0x10] sm:$0xff]  }
   0x8   :  { %8101 = vmatpush3.bf16.msra.mxu0 %v9081_v6  ;;  %v9090_v15 = vld [vmem:[%s12235_s1 + $0xa0] sm:$0xff]   ;;  %v9094_v19 = vld [vmem:[%s12235_s1 + $0x98] sm:$0xff]   ;;  %v9098_v23 = vld [vmem:[%s12235_s1 + $0x90] sm:$0xff]  }
   0x9   :  { %8123 = vmatpush3.bf16.msra.mxu1 %v9082_v7  ;;  %8102 = vmatprep.subr.bf16.mxu0 %v9083_v8  ;;  %v9099_v24 = vld [vmem:[%s12235_s1 + $0x48] sm:$0xff]   ;;  %v9103_v28 = vld [vmem:[%s12235_s1 + $0x40] sm:$0xff]   ;;  %v38_v33 = vld [vmem:[%s12236_s0 + $0x18] sm:$0xff] }
   0xa   :  { %8124 = vmatprep.subr.bf16.mxu1 %v9084_v9  ;;  %v9100_v25 = vld [vmem:[%s12235_s1 + $0xc8] sm:$0xff]   ;;  %v9104_v29 = vld [vmem:[%s12235_s1 + $0xc0] sm:$0xff]   ;;  %v118_v36 = vcvt.s32.f32 %v38_v33  ;;  %v37_v38 = vld [vmem:[%s12236_s0 + $0x10] sm:$0xff] }
   0xb   :  { %v9101_v26 = vld [vmem:[%s12235_s1 + $0x8] sm:$0xff]   ;;  %v9105_v30 = vld [vmem:[%s12235_s1] sm:$0xff]   ;;  %v117_v39 = vcvt.s32.f32 %v37_v38  ;;  %v9107_v40 = vld [vmem:[%s12235_s1 + $0x178] sm:$0xff]  }
   0xc   :  { %8103 = vmatpush3.bf16.msra.mxu0 %v9085_v10  ;;  %v9102_v27 = vld [vmem:[%s12235_s1 + $0x88] sm:$0xff]   ;;  %v9106_v31 = vld [vmem:[%s12235_s1 + $0x80] sm:$0xff]   ;;  %v198_v42 = vpack.c.bf16 %v118_v36, %v118_v36  ;;  %v9108_v44 = vld [vmem:[%s12235_s1 + $0x1f8] sm:$0xff]  }
   0xd   :  { %8125 = vmatpush3.bf16.msra.mxu1 %v9086_v11  ;;  %8104 = vmatprep.subr.bf16.mxu0 %v9087_v12  ;;  %v36_v32 = vld [vmem:[%s12236_s0 + $0x8] sm:$0xff]  ;;  %v35_v34 = vld [vmem:[%s12236_s0] sm:$0xff]  ;;  %v197_v45 = vpack.c.bf16 %v117_v39, %v117_v39  ;;  %v9109_v46 = vld [vmem:[%s12235_s1 + $0x138] sm:$0xff]  }
   0xe   :  { %8126 = vmatprep.subr.bf16.mxu1 %v9088_v13  ;;  %v116_v35 = vcvt.s32.f32 %v36_v32  ;;  %v115_v37 = vcvt.s32.f32 %v35_v34  ;;  %5455 = vmatprep.mubr.bf16.mxu1 %v198_v42  ;;  %v9110_v47 = vld [vmem:[%s12235_s1 + $0x1b8] sm:$0xff]   ;;  %v9111_v48 = vld [vmem:[%s12235_s1 + $0x170] sm:$0xff]   ;;  %v9115_v52 = vld [vmem:[%s12235_s1 + $0x168] sm:$0xff]  }
   0xf   :  { %v9112_v49 = vld [vmem:[%s12235_s1 + $0x1f0] sm:$0xff]   ;;  %v9116_v53 = vld [vmem:[%s12235_s1 + $0x1e8] sm:$0xff]   ;;  %v9119_v56 = vld [vmem:[%s12235_s1 + $0x160] sm:$0xff]  }
  0x10   :  { %8105 = vmatpush3.bf16.msra.mxu0 %v9089_v14  ;;  %v196_v41 = vpack.c.bf16 %v116_v35, %v116_v35  ;;  %v195_v43 = vpack.c.bf16 %v115_v37, %v115_v37  ;;  %v9113_v50 = vld [vmem:[%s12235_s1 + $0x130] sm:$0xff]   ;;  %v9117_v54 = vld [vmem:[%s12235_s1 + $0x128] sm:$0xff]   ;;  %v9120_v57 = vld [vmem:[%s12235_s1 + $0x1e0] sm:$0xff]  }
  0x11   :  { %8127 = vmatpush3.bf16.msra.mxu1 %v9090_v15  ;;  %8106 = vmatprep.subr.bf16.mxu0 %v9091_v16  ;;  %v9114_v51 = vld [vmem:[%s12235_s1 + $0x1b0] sm:$0xff]   ;;  %v9118_v55 = vld [vmem:[%s12235_s1 + $0x1a8] sm:$0xff]   ;;  %v9121_v58 = vld [vmem:[%s12235_s1 + $0x120] sm:$0xff]  }
  0x12   :  { %8128 = vmatprep.subr.bf16.mxu1 %v9092_v17  ;;  %5415 = vmatprep.mubr.bf16.mxu0 %v196_v41  ;;  %v9122_v59 = vld [vmem:[%s12235_s1 + $0x1a0] sm:$0xff]   ;;  %v9123_v60 = vld [vmem:[%s12235_s1 + $0x158] sm:$0xff]   ;;  %v9127_v0 = vld [vmem:[%s12235_s1 + $0x150] sm:$0xff]  }
  0x13   :  { %v9124_v61 = vld [vmem:[%s12235_s1 + $0x1d8] sm:$0xff]   ;;  %v9128_v1 = vld [vmem:[%s12235_s1 + $0x1d0] sm:$0xff]   ;;  %v9131_v4 = vld [vmem:[%s12235_s1 + $0x148] sm:$0xff]  }
  0x14   :  { %8107 = vmatpush3.bf16.msra.mxu0 %v9093_v18  ;;  %v9125_v62 = vld [vmem:[%s12235_s1 + $0x118] sm:$0xff]   ;;  %v9129_v2 = vld [vmem:[%s12235_s1 + $0x110] sm:$0xff]   ;;  %v9132_v5 = vld [vmem:[%s12235_s1 + $0x1c8] sm:$0xff]  }
  0x15   :  { %8129 = vmatpush3.bf16.msra.mxu1 %v9094_v19  ;;  %8108 = vmatprep.subr.bf16.mxu0 %v9095_v20  ;;  %v9126_v63 = vld [vmem:[%s12235_s1 + $0x198] sm:$0xff]   ;;  %v9130_v3 = vld [vmem:[%s12235_s1 + $0x190] sm:$0xff]   ;;  %v9133_v6 = vld [vmem:[%s12235_s1 + $0x108] sm:$0xff]  }
  0x16   :  { %8130 = vmatprep.subr.bf16.mxu1 %v9096_v21  ;;  %v9134_v7 = vld [vmem:[%s12235_s1 + $0x188] sm:$0xff]   ;;  %v9135_v8 = vld [vmem:[%s12235_s1 + $0x140] sm:$0xff]   ;;  %v42_v13 = vld [vmem:[%s12236_s0 + $0x38] sm:$0xff] }
  0x17   :  { %v9136_v9 = vld [vmem:[%s12235_s1 + $0x1c0] sm:$0xff]   ;;  %v40_v12 = vld [vmem:[%s12236_s0 + $0x28] sm:$0xff]  ;;  %v122_v15 = vcvt.s32.f32 %v42_v13  ;;  %v41_v17 = vld [vmem:[%s12236_s0 + $0x30] sm:$0xff] }
  0x18   :  { %8109 = vmatpush3.bf16.msra.mxu0 %v9097_v22  ;;  %v9137_v10 = vld [vmem:[%s12235_s1 + $0x100] sm:$0xff]   ;;  %v120_v14 = vcvt.s32.f32 %v40_v12  ;;  %v121_v19 = vcvt.s32.f32 %v41_v17  ;;  %v9139_v20 = vld [vmem:[%s12235_s1 + $0x278] sm:$0xff]   ;;  %v9147_v32 = vld [vmem:[%s12235_s1 + $0x268] sm:$0xff]  }
  0x19   :  { %8131 = vmatpush3.bf16.msra.mxu1 %v9098_v23  ;;  %8110 = vmatprep.subr.bf16.mxu0 %v9099_v24  ;;  %v9138_v11 = vld [vmem:[%s12235_s1 + $0x180] sm:$0xff]   ;;  %v202_v22 = vpack.c.bf16 %v122_v15, %v122_v15  ;;  %v9140_v23 = vld [vmem:[%s12235_s1 + $0x2f8] sm:$0xff]   ;;  %v9148_v33 = vld [vmem:[%s12235_s1 + $0x2e8] sm:$0xff]  }
  0x1a   :  { %8132 = vmatprep.subr.bf16.mxu1 %v9100_v25  ;;  %v39_v16 = vld [vmem:[%s12236_s0 + $0x20] sm:$0xff]  ;;  %v200_v21 = vpack.c.bf16 %v120_v14, %v120_v14  ;;  %v201_v25 = vpack.c.bf16 %v121_v19, %v121_v19  ;;  %v9149_v34 = vld [vmem:[%s12235_s1 + $0x228] sm:$0xff]   ;;  %v9156_v41 = vld [vmem:[%s12235_s1 + $0x2d8] sm:$0xff]  }
  0x1b   :  { %v119_v18 = vcvt.s32.f32 %v39_v16  ;;  %v9150_v35 = vld [vmem:[%s12235_s1 + $0x2a8] sm:$0xff]   ;;  %v9151_v36 = vld [vmem:[%s12235_s1 + $0x260] sm:$0xff]   ;;  %v9157_v42 = vld [vmem:[%s12235_s1 + $0x218] sm:$0xff]  }
  0x1c   :  { %8111 = vmatpush3.bf16.msra.mxu0 %v9101_v26  ;;  %v9141_v26 = vld [vmem:[%s12235_s1 + $0x238] sm:$0xff]   ;;  %v9152_v37 = vld [vmem:[%s12235_s1 + $0x2e0] sm:$0xff]   ;;  %v9179_v12 = vld [vmem:[%s12235_s1 + $0x368] sm:$0xff]  }
  0x1d   :  { %8133 = vmatpush3.bf16.msra.mxu1 %v9102_v27  ;;  %8112 = vmatprep.subr.bf16.mxu0 %v9103_v28  ;;  %v199_v24 = vpack.c.bf16 %v119_v18, %v119_v18  ;;  %v9142_v27 = vld [vmem:[%s12235_s1 + $0x2b8] sm:$0xff]   ;;  %v9143_v28 = vld [vmem:[%s12235_s1 + $0x270] sm:$0xff]   ;;  %v9153_v38 = vld [vmem:[%s12235_s1 + $0x220] sm:$0xff]  }
  0x1e   :  { %8134 = vmatprep.subr.bf16.mxu1 %v9104_v29  ;;  %v9144_v29 = vld [vmem:[%s12235_s1 + $0x2f0] sm:$0xff]   ;;  %v9154_v39 = vld [vmem:[%s12235_s1 + $0x2a0] sm:$0xff]   ;;  %v9180_v13 = vld [vmem:[%s12235_s1 + $0x3e8] sm:$0xff]  }
  0x1f   :  { %v9181_v14 = vld [vmem:[%s12235_s1 + $0x328] sm:$0xff]   ;;  %v9183_v16 = vld [vmem:[%s12235_s1 + $0x360] sm:$0xff]  }
  0x20   :  { %8113 = vmatpush3.bf16.msra.mxu0 %v9105_v30  ;;  %v9145_v30 = vld [vmem:[%s12235_s1 + $0x230] sm:$0xff]   ;;  %v9182_v15 = vld [vmem:[%s12235_s1 + $0x3a8] sm:$0xff]   ;;  %v9184_v17 = vld [vmem:[%s12235_s1 + $0x3e0] sm:$0xff]  }
  0x21   :  { %8135 = vmatpush3.bf16.msra.mxu1 %v9106_v31  ;;  %8142 = vmatprep.subr.bf16.mxu0 %v9107_v40  ;;  %v9146_v31 = vld [vmem:[%s12235_s1 + $0x2b0] sm:$0xff]   ;;  %v9155_v40 = vld [vmem:[%s12235_s1 + $0x258] sm:$0xff]   ;;  %v9185_v18 = vld [vmem:[%s12235_s1 + $0x320] sm:$0xff]  }
  0x22   :  { %8164 = vmatprep.subr.bf16.mxu1 %v9108_v44  ;;  %v9159_v44 = vld [vmem:[%s12235_s1 + $0x250] sm:$0xff]   ;;  %v9186_v19 = vld [vmem:[%s12235_s1 + $0x3a0] sm:$0xff]  }
  0x23   :  { %5416 = vmatmul.mubr.bf16.vlgmr.msra.gmra.mxu0 %v195_v43  ;;  %v9158_v43 = vld [vmem:[%s12235_s1 + $0x298] sm:$0xff]  }
  0x24   :  { %5456 = vmatmul.mubr.bf16.vlgmr.msra.gmra.mxu1 %v197_v45  ;;  %8143 = vmatpush3.bf16.msra.mxu0 %v9109_v46  ;;  %v9160_v45 = vld [vmem:[%s12235_s1 + $0x2d0] sm:$0xff]  }
  0x25   :  { %8165 = vmatpush3.bf16.msra.mxu1 %v9110_v47  ;;  %8144 = vmatprep.subr.bf16.mxu0 %v9111_v48  ;;  %v9161_v46 = vld [vmem:[%s12235_s1 + $0x210] sm:$0xff]   ;;  %v9163_v48 = vld [vmem:[%s12235_s1 + $0x248] sm:$0xff]  }
  0x26   :  { %8166 = vmatprep.subr.bf16.mxu1 %v9112_v49  ;;  %5495 = vmatprep.mubr.bf16.mxu0 %v200_v21  ;;  %v9162_v47 = vld [vmem:[%s12235_s1 + $0x290] sm:$0xff]   ;;  %v9164_v49 = vld [vmem:[%s12235_s1 + $0x2c8] sm:$0xff]   ;;  %v9188_v21 = vld [vmem:[%s12235_s1 + $0x3d8] sm:$0xff]  }
  0x27   :  { %5535 = vmatprep.mubr.bf16.mxu1 %v202_v22  ;;  %v9189_v22 = vld [vmem:[%s12235_s1 + $0x318] sm:$0xff]  }
  0x28   :  { %8145 = vmatpush3.bf16.msra.mxu0 %v9113_v50  ;;  %v9165_v50 = vld [vmem:[%s12235_s1 + $0x208] sm:$0xff]  }
  0x29   :  { %8167 = vmatpush3.bf16.msra.mxu1 %v9114_v51  ;;  %8146 = vmatprep.subr.bf16.mxu0 %v9115_v52  ;;  %v9166_v51 = vld [vmem:[%s12235_s1 + $0x288] sm:$0xff]   ;;  %v9167_v52 = vld [vmem:[%s12235_s1 + $0x240] sm:$0xff]  }
  0x2a   :  { %8168 = vmatprep.subr.bf16.mxu1 %v9116_v53  ;;  %v9168_v53 = vld [vmem:[%s12235_s1 + $0x2c0] sm:$0xff]  }
  0x2c   :  { %8147 = vmatpush3.bf16.msra.mxu0 %v9117_v54  ;;  %v9169_v54 = vld [vmem:[%s12235_s1 + $0x200] sm:$0xff]  }
  0x2d   :  { %8169 = vmatpush3.bf16.msra.mxu1 %v9118_v55  ;;  %8148 = vmatprep.subr.bf16.mxu0 %v9119_v56  ;;  %v9170_v55 = vld [vmem:[%s12235_s1 + $0x280] sm:$0xff]   ;;  %v44_v56 = vld [vmem:[%s12236_s0 + $0x48] sm:$0xff] }
  0x2e   :  { %8170 = vmatprep.subr.bf16.mxu1 %v9120_v57  ;;  %v124_v57 = vcvt.s32.f32 %v44_v56  ;;  %v9211_v56 = vld [vmem:[%s12235_s1 + $0x468] sm:$0xff]  }
  0x30   :  { %8149 = vmatpush3.bf16.msra.mxu0 %v9121_v58  ;;  %v46_v58 = vld [vmem:[%s12236_s0 + $0x58] sm:$0xff] }
  0x31   :  { %8171 = vmatpush3.bf16.msra.mxu1 %v9122_v59  ;;  %8150 = vmatprep.subr.bf16.mxu0 %v9123_v60  ;;  %v43_v59 = vld [vmem:[%s12236_s0 + $0x40] sm:$0xff]  ;;  %v45_v60 = vld [vmem:[%s12236_s0 + $0x50] sm:$0xff] }
  0x32   :  { %8172 = vmatprep.subr.bf16.mxu1 %v9124_v61  ;;  %v126_v61 = vcvt.s32.f32 %v46_v58  ;;  %v9213_v58 = vld [vmem:[%s12235_s1 + $0x428] sm:$0xff]  }
  0x34   :  { %8151 = vmatpush3.bf16.msra.mxu0 %v9125_v62  ;;  %v123_v62 = vcvt.s32.f32 %v43_v59  ;;  %v9214_v59 = vld [vmem:[%s12235_s1 + $0x4a8] sm:$0xff]  }
  0x35   :  { %8173 = vmatpush3.bf16.msra.mxu1 %v9126_v63  ;;  %8152 = vmatprep.subr.bf16.mxu0 %v9127_v0  ;;  %v125_v63 = vcvt.s32.f32 %v45_v60  ;;  %v9171_v0 = vld [vmem:[%s12235_s1 + $0x378] sm:$0xff]   ;;  %v9215_v60 = vld [vmem:[%s12235_s1 + $0x460] sm:$0xff]  }
  0x36   :  { %8174 = vmatprep.subr.bf16.mxu1 %v9128_v1  ;;  %v204_v1 = vpack.c.bf16 %v124_v57, %v124_v57  ;;  %v9212_v57 = vld [vmem:[%s12235_s1 + $0x4e8] sm:$0xff]  }
  0x38   :  { %8153 = vmatpush3.bf16.msra.mxu0 %v9129_v2  ;;  %v9172_v2 = vld [vmem:[%s12235_s1 + $0x3f8] sm:$0xff]  }
  0x39   :  { %8175 = vmatpush3.bf16.msra.mxu1 %v9130_v3  ;;  %8154 = vmatprep.subr.bf16.mxu0 %v9131_v4  ;;  %v206_v3 = vpack.c.bf16 %v126_v61, %v126_v61  ;;  %v203_v4 = vpack.c.bf16 %v123_v62, %v123_v62  ;;  %v9216_v61 = vld [vmem:[%s12235_s1 + $0x4e0] sm:$0xff]  }
  0x3a   :  { %8176 = vmatprep.subr.bf16.mxu1 %v9132_v5  ;;  %v205_v5 = vpack.c.bf16 %v125_v63, %v125_v63  ;;  %v9217_v62 = vld [vmem:[%s12235_s1 + $0x420] sm:$0xff]  }
  0x3b   :  { %v9218_v63 = vld [vmem:[%s12235_s1 + $0x4a0] sm:$0xff]  }
  0x3c   :  { %8155 = vmatpush3.bf16.msra.mxu0 %v9133_v6  ;;  %v9173_v6 = vld [vmem:[%s12235_s1 + $0x338] sm:$0xff]  }
  0x3d   :  { %8177 = vmatpush3.bf16.msra.mxu1 %v9134_v7  ;;  %8156 = vmatprep.subr.bf16.mxu0 %v9135_v8  ;;  %v9174_v7 = vld [vmem:[%s12235_s1 + $0x3b8] sm:$0xff]   ;;  %v9175_v8 = vld [vmem:[%s12235_s1 + $0x370] sm:$0xff]  }
  0x3e   :  { %8178 = vmatprep.subr.bf16.mxu1 %v9136_v9  ;;  %v9176_v9 = vld [vmem:[%s12235_s1 + $0x3f0] sm:$0xff]  }
  0x40   :  { %8157 = vmatpush3.bf16.msra.mxu0 %v9137_v10  ;;  %v9177_v10 = vld [vmem:[%s12235_s1 + $0x330] sm:$0xff]  }
  0x41   :  { %8179 = vmatpush3.bf16.msra.mxu1 %v9138_v11  ;;  %8186 = vmatprep.subr.bf16.mxu0 %v9139_v20  ;;  %v9178_v11 = vld [vmem:[%s12235_s1 + $0x3b0] sm:$0xff]   ;;  %v9187_v20 = vld [vmem:[%s12235_s1 + $0x358] sm:$0xff]  }
  0x42   :  { %8208 = vmatprep.subr.bf16.mxu1 %v9140_v23  ;;  %v9190_v23 = vld [vmem:[%s12235_s1 + $0x398] sm:$0xff]  }
  0x43   :  { %5496 = vmatmul.mubr.bf16.vlgmr.msra.gmra.mxu0 %v199_v24  ;;  %v9191_v24 = vld [vmem:[%s12235_s1 + $0x350] sm:$0xff]  }
  0x44   :  { %5536 = vmatmul.mubr.bf16.vlgmr.msra.gmra.mxu1 %v201_v25  ;;  %8187 = vmatpush3.bf16.msra.mxu0 %v9141_v26  ;;  %v9192_v25 = vld [vmem:[%s12235_s1 + $0x3d0] sm:$0xff]  }
  0x45   :  { %8209 = vmatpush3.bf16.msra.mxu1 %v9142_v27  ;;  %8188 = vmatprep.subr.bf16.mxu0 %v9143_v28  ;;  %v9193_v26 = vld [vmem:[%s12235_s1 + $0x310] sm:$0xff]   ;;  %v9195_v28 = vld [vmem:[%s12235_s1 + $0x348] sm:$0xff]  }
  0x46   :  { %8210 = vmatprep.subr.bf16.mxu1 %v9144_v29  ;;  %5575 = vmatprep.mubr.bf16.mxu0 %v204_v1  ;;  %v9194_v27 = vld [vmem:[%s12235_s1 + $0x390] sm:$0xff]   ;;  %v9196_v29 = vld [vmem:[%s12235_s1 + $0x3c8] sm:$0xff]   ;;  %v9220_v1 = vld [vmem:[%s12235_s1 + $0x4d8] sm:$0xff]  }
  0x47   :  { %5615 = vmatprep.mubr.bf16.mxu1 %v206_v3  ;;  %v9222_v3 = vld [vmem:[%s12235_s1 + $0x498] sm:$0xff]  }
  0x48   :  { %8189 = vmatpush3.bf16.msra.mxu0 %v9145_v30  ;;  %v9197_v30 = vld [vmem:[%s12235_s1 + $0x308] sm:$0xff]  }
  0x49   :  { %8211 = vmatpush3.bf16.msra.mxu1 %v9146_v31  ;;  %8190 = vmatprep.subr.bf16.mxu0 %v9147_v32  ;;  %v9198_v31 = vld [vmem:[%s12235_s1 + $0x388] sm:$0xff]   ;;  %v9199_v32 = vld [vmem:[%s12235_s1 + $0x340] sm:$0xff]  }
  0x4a   :  { %8212 = vmatprep.subr.bf16.mxu1 %v9148_v33  ;;  %v9200_v33 = vld [vmem:[%s12235_s1 + $0x3c0] sm:$0xff]  }
  0x4c   :  { %8191 = vmatpush3.bf16.msra.mxu0 %v9149_v34  ;;  %v9201_v34 = vld [vmem:[%s12235_s1 + $0x300] sm:$0xff]  }
  0x4d   :  { %8213 = vmatpush3.bf16.msra.mxu1 %v9150_v35  ;;  %8192 = vmatprep.subr.bf16.mxu0 %v9151_v36  ;;  %v9202_v35 = vld [vmem:[%s12235_s1 + $0x380] sm:$0xff]   ;;  %v48_v36 = vld [vmem:[%s12236_s0 + $0x68] sm:$0xff] }
  0x4e   :  { %8214 = vmatprep.subr.bf16.mxu1 %v9152_v37  ;;  %v50_v37 = vld [vmem:[%s12236_s0 + $0x78] sm:$0xff] }
  0x50   :  { %8193 = vmatpush3.bf16.msra.mxu0 %v9153_v38  ;;  %v47_v38 = vld [vmem:[%s12236_s0 + $0x60] sm:$0xff] }
  0x51   :  { %8215 = vmatpush3.bf16.msra.mxu1 %v9154_v39  ;;  %8194 = vmatprep.subr.bf16.mxu0 %v9155_v40  ;;  %v128_v39 = vcvt.s32.f32 %v48_v36  ;;  %v130_v40 = vcvt.s32.f32 %v50_v37  ;;  %v9243_v36 = vld [vmem:[%s12235_s1 + $0x568] sm:$0xff]  }
  0x52   :  { %8216 = vmatprep.subr.bf16.mxu1 %v9156_v41  ;;  %v127_v41 = vcvt.s32.f32 %v47_v38  ;;  %v9244_v37 = vld [vmem:[%s12235_s1 + $0x5e8] sm:$0xff]  }
  0x53   :  { %v9245_v38 = vld [vmem:[%s12235_s1 + $0x528] sm:$0xff]  }
  0x54   :  { %8195 = vmatpush3.bf16.msra.mxu0 %v9157_v42  ;;  %v49_v42 = vld [vmem:[%s12236_s0 + $0x70] sm:$0xff] }
  0x55   :  { %8217 = vmatpush3.bf16.msra.mxu1 %v9158_v43  ;;  %8196 = vmatprep.subr.bf16.mxu0 %v9159_v44  ;;  %v129_v43 = vcvt.s32.f32 %v49_v42  ;;  %v9203_v44 = vld [vmem:[%s12235_s1 + $0x478] sm:$0xff]   ;;  %v9249_v42 = vld [vmem:[%s12235_s1 + $0x520] sm:$0xff]  }
  0x56   :  { %8218 = vmatprep.subr.bf16.mxu1 %v9160_v45  ;;  %v208_v45 = vpack.c.bf16 %v128_v39, %v128_v39  ;;  %v9246_v39 = vld [vmem:[%s12235_s1 + $0x5a8] sm:$0xff]  }
  0x58   :  { %8197 = vmatpush3.bf16.msra.mxu0 %v9161_v46  ;;  %v210_v46 = vpack.c.bf16 %v130_v40, %v130_v40  ;;  %v9247_v40 = vld [vmem:[%s12235_s1 + $0x560] sm:$0xff]  }
  0x59   :  { %8219 = vmatpush3.bf16.msra.mxu1 %v9162_v47  ;;  %8198 = vmatprep.subr.bf16.mxu0 %v9163_v48  ;;  %v207_v47 = vpack.c.bf16 %v127_v41, %v127_v41  ;;  %v9204_v48 = vld [vmem:[%s12235_s1 + $0x4f8] sm:$0xff]   ;;  %v9248_v41 = vld [vmem:[%s12235_s1 + $0x5e0] sm:$0xff]  }
  0x5a   :  { %8220 = vmatprep.subr.bf16.mxu1 %v9164_v49  ;;  %v209_v49 = vpack.c.bf16 %v129_v43, %v129_v43  ;;  %v9250_v43 = vld [vmem:[%s12235_s1 + $0x5a0] sm:$0xff]  }
  0x5c   :  { %8199 = vmatpush3.bf16.msra.mxu0 %v9165_v50  ;;  %v9205_v50 = vld [vmem:[%s12235_s1 + $0x438] sm:$0xff]  }
  0x5d   :  { %8221 = vmatpush3.bf16.msra.mxu1 %v9166_v51  ;;  %8200 = vmatprep.subr.bf16.mxu0 %v9167_v52  ;;  %v9206_v51 = vld [vmem:[%s12235_s1 + $0x4b8] sm:$0xff]   ;;  %v9207_v52 = vld [vmem:[%s12235_s1 + $0x470] sm:$0xff]  }
  0x5e   :  { %8222 = vmatprep.subr.bf16.mxu1 %v9168_v53  ;;  %v9208_v53 = vld [vmem:[%s12235_s1 + $0x4f0] sm:$0xff]  }
  0x60   :  { %8201 = vmatpush3.bf16.msra.mxu0 %v9169_v54  ;;  %v9209_v54 = vld [vmem:[%s12235_s1 + $0x430] sm:$0xff]  }
  0x61   :  { %8223 = vmatpush3.bf16.msra.mxu1 %v9170_v55  ;;  %8230 = vmatprep.subr.bf16.mxu0 %v9171_v0  ;;  %v9210_v55 = vld [vmem:[%s12235_s1 + $0x4b0] sm:$0xff]   ;;  %v9219_v0 = vld [vmem:[%s12235_s1 + $0x458] sm:$0xff]  }
  0x62   :  { %8252 = vmatprep.subr.bf16.mxu1 %v9172_v2  ;;  %v9221_v2 = vld [vmem:[%s12235_s1 + $0x418] sm:$0xff]  }
  0x63   :  { %5576 = vmatmul.mubr.bf16.vlgmr.msra.gmra.mxu0 %v203_v4  ;;  %v9223_v4 = vld [vmem:[%s12235_s1 + $0x450] sm:$0xff]  }
  0x64   :  { %5616 = vmatmul.mubr.bf16.vlgmr.msra.gmra.mxu1 %v205_v5  ;;  %8231 = vmatpush3.bf16.msra.mxu0 %v9173_v6  ;;  %v9224_v5 = vld [vmem:[%s12235_s1 + $0x4d0] sm:$0xff]  }
  0x65   :  { %8253 = vmatpush3.bf16.msra.mxu1 %v9174_v7  ;;  %8232 = vmatprep.subr.bf16.mxu0 %v9175_v8  ;;  %v9225_v6 = vld [vmem:[%s12235_s1 + $0x410] sm:$0xff]   ;;  %v9227_v8 = vld [vmem:[%s12235_s1 + $0x448] sm:$0xff]  }
  0x66   :  { %8254 = vmatprep.subr.bf16.mxu1 %v9176_v9  ;;  %5655 = vmatprep.mubr.bf16.mxu0 %v208_v45  ;;  %v9226_v7 = vld [vmem:[%s12235_s1 + $0x490] sm:$0xff]   ;;  %v9228_v9 = vld [vmem:[%s12235_s1 + $0x4c8] sm:$0xff]   ;;  %v9252_v45 = vld [vmem:[%s12235_s1 + $0x5d8] sm:$0xff]  }
  0x67   :  { %5695 = vmatprep.mubr.bf16.mxu1 %v210_v46  ;;  %v9253_v46 = vld [vmem:[%s12235_s1 + $0x518] sm:$0xff]  }
  0x68   :  { %8233 = vmatpush3.bf16.msra.mxu0 %v9177_v10  ;;  %v9229_v10 = vld [vmem:[%s12235_s1 + $0x408] sm:$0xff]  }
  0x69   :  { %8255 = vmatpush3.bf16.msra.mxu1 %v9178_v11  ;;  %8234 = vmatprep.subr.bf16.mxu0 %v9179_v12  ;;  %v9230_v11 = vld [vmem:[%s12235_s1 + $0x488] sm:$0xff]   ;;  %v9231_v12 = vld [vmem:[%s12235_s1 + $0x440] sm:$0xff]  }
  0x6a   :  { %8256 = vmatprep.subr.bf16.mxu1 %v9180_v13  ;;  %v9232_v13 = vld [vmem:[%s12235_s1 + $0x4c0] sm:$0xff]  }
  0x6c   :  { %8235 = vmatpush3.bf16.msra.mxu0 %v9181_v14  ;;  %v9233_v14 = vld [vmem:[%s12235_s1 + $0x400] sm:$0xff]  }
  0x6d   :  { %8257 = vmatpush3.bf16.msra.mxu1 %v9182_v15  ;;  %8236 = vmatprep.subr.bf16.mxu0 %v9183_v16  ;;  %v9234_v15 = vld [vmem:[%s12235_s1 + $0x480] sm:$0xff]   ;;  %v52_v16 = vld [vmem:[%s12236_s0 + $0x88] sm:$0xff] }
  0x6e   :  { %8258 = vmatprep.subr.bf16.mxu1 %v9184_v17  ;;  %v54_v17 = vld [vmem:[%s12236_s0 + $0x98] sm:$0xff] }
  0x70   :  { %8237 = vmatpush3.bf16.msra.mxu0 %v9185_v18  ;;  %v132_v18 = vcvt.s32.f32 %v52_v16  ;;  %v9275_v16 = vld [vmem:[%s12235_s1 + $0x668] sm:$0xff]  }
  0x71   :  { %8259 = vmatpush3.bf16.msra.mxu1 %v9186_v19  ;;  %8238 = vmatprep.subr.bf16.mxu0 %v9187_v20  ;;  %v134_v19 = vcvt.s32.f32 %v54_v17  ;;  %v51_v20 = vld [vmem:[%s12236_s0 + $0x80] sm:$0xff]  ;;  %v9276_v17 = vld [vmem:[%s12235_s1 + $0x6e8] sm:$0xff]  }
  0x72   :  { %8260 = vmatprep.subr.bf16.mxu1 %v9188_v21  ;;  %v53_v21 = vld [vmem:[%s12236_s0 + $0x90] sm:$0xff] }
  0x74   :  { %8239 = vmatpush3.bf16.msra.mxu0 %v9189_v22  ;;  %v131_v22 = vcvt.s32.f32 %v51_v20  ;;  %v9279_v20 = vld [vmem:[%s12235_s1 + $0x660] sm:$0xff]  }
  0x75   :  { %8261 = vmatpush3.bf16.msra.mxu1 %v9190_v23  ;;  %8240 = vmatprep.subr.bf16.mxu0 %v9191_v24  ;;  %v133_v23 = vcvt.s32.f32 %v53_v21  ;;  %v9235_v24 = vld [vmem:[%s12235_s1 + $0x578] sm:$0xff]   ;;  %v9280_v21 = vld [vmem:[%s12235_s1 + $0x6e0] sm:$0xff]  }
  0x76   :  { %8262 = vmatprep.subr.bf16.mxu1 %v9192_v25  ;;  %v212_v25 = vpack.c.bf16 %v132_v18, %v132_v18  ;;  %v9277_v18 = vld [vmem:[%s12235_s1 + $0x628] sm:$0xff]  }
  0x78   :  { %8241 = vmatpush3.bf16.msra.mxu0 %v9193_v26  ;;  %v214_v26 = vpack.c.bf16 %v134_v19, %v134_v19  ;;  %v9278_v19 = vld [vmem:[%s12235_s1 + $0x6a8] sm:$0xff]  }
  0x79   :  { %8263 = vmatpush3.bf16.msra.mxu1 %v9194_v27  ;;  %8242 = vmatprep.subr.bf16.mxu0 %v9195_v28  ;;  %v9236_v27 = vld [vmem:[%s12235_s1 + $0x5f8] sm:$0xff]   ;;  %v211_v28 = vpack.c.bf16 %v131_v22, %v131_v22  ;;  %v9281_v22 = vld [vmem:[%s12235_s1 + $0x620] sm:$0xff]  }
  0x7a   :  { %8264 = vmatprep.subr.bf16.mxu1 %v9196_v29  ;;  %v213_v29 = vpack.c.bf16 %v133_v23, %v133_v23  ;;  %v9282_v23 = vld [vmem:[%s12235_s1 + $0x6a0] sm:$0xff]  }
  0x7c   :  { %8243 = vmatpush3.bf16.msra.mxu0 %v9197_v30  ;;  %v9237_v30 = vld [vmem:[%s12235_s1 + $0x538] sm:$0xff]  }
  0x7d   :  { %8265 = vmatpush3.bf16.msra.mxu1 %v9198_v31  ;;  %8244 = vmatprep.subr.bf16.mxu0 %v9199_v32  ;;  %v9238_v31 = vld [vmem:[%s12235_s1 + $0x5b8] sm:$0xff]   ;;  %v9239_v32 = vld [vmem:[%s12235_s1 + $0x570] sm:$0xff]  }
  0x7e   :  { %8266 = vmatprep.subr.bf16.mxu1 %v9200_v33  ;;  %v9240_v33 = vld [vmem:[%s12235_s1 + $0x5f0] sm:$0xff]  }
  0x80   :  { %8245 = vmatpush3.bf16.msra.mxu0 %v9201_v34  ;;  %v9241_v34 = vld [vmem:[%s12235_s1 + $0x530] sm:$0xff]  }
  0x81   :  { %8267 = vmatpush3.bf16.msra.mxu1 %v9202_v35  ;;  %8274 = vmatprep.subr.bf16.mxu0 %v9203_v44  ;;  %v9242_v35 = vld [vmem:[%s12235_s1 + $0x5b0] sm:$0xff]   ;;  %v9251_v44 = vld [vmem:[%s12235_s1 + $0x558] sm:$0xff]  }
  0x82   :  { %8296 = vmatprep.subr.bf16.mxu1 %v9204_v48  ;;  %v9255_v48 = vld [vmem:[%s12235_s1 + $0x550] sm:$0xff]  }
  0x83   :  { %5656 = vmatmul.mubr.bf16.vlgmr.msra.gmra.mxu0 %v207_v47  ;;  %v9254_v47 = vld [vmem:[%s12235_s1 + $0x598] sm:$0xff]  }
  0x84   :  { %5696 = vmatmul.mubr.bf16.vlgmr.msra.gmra.mxu1 %v209_v49  ;;  %8275 = vmatpush3.bf16.msra.mxu0 %v9205_v50  ;;  %v9256_v49 = vld [vmem:[%s12235_s1 + $0x5d0] sm:$0xff]  }
  0x85   :  { %8297 = vmatpush3.bf16.msra.mxu1 %v9206_v51  ;;  %8276 = vmatprep.subr.bf16.mxu0 %v9207_v52  ;;  %v9257_v50 = vld [vmem:[%s12235_s1 + $0x510] sm:$0xff]   ;;  %v9259_v52 = vld [vmem:[%s12235_s1 + $0x548] sm:$0xff]  }
  0x86   :  { %8298 = vmatprep.subr.bf16.mxu1 %v9208_v53  ;;  %5735 = vmatprep.mubr.bf16.mxu0 %v212_v25  ;;  %v9258_v51 = vld [vmem:[%s12235_s1 + $0x590] sm:$0xff]   ;;  %v9260_v53 = vld [vmem:[%s12235_s1 + $0x5c8] sm:$0xff]   ;;  %v9284_v25 = vld [vmem:[%s12235_s1 + $0x6d8] sm:$0xff]  }
  0x87   :  { %5775 = vmatprep.mubr.bf16.mxu1 %v214_v26  ;;  %v9285_v26 = vld [vmem:[%s12235_s1 + $0x618] sm:$0xff]  }
  0x88   :  { %8277 = vmatpush3.bf16.msra.mxu0 %v9209_v54  ;;  %v9261_v54 = vld [vmem:[%s12235_s1 + $0x508] sm:$0xff]  }
  0x89   :  { %8299 = vmatpush3.bf16.msra.mxu1 %v9210_v55  ;;  %8278 = vmatprep.subr.bf16.mxu0 %v9211_v56  ;;  %v9262_v55 = vld [vmem:[%s12235_s1 + $0x588] sm:$0xff]   ;;  %v9263_v56 = vld [vmem:[%s12235_s1 + $0x540] sm:$0xff]  }
  0x8a   :  { %8300 = vmatprep.subr.bf16.mxu1 %v9212_v57  ;;  %v9264_v57 = vld [vmem:[%s12235_s1 + $0x5c0] sm:$0xff]  }
  0x8c   :  { %8279 = vmatpush3.bf16.msra.mxu0 %v9213_v58  ;;  %v9265_v58 = vld [vmem:[%s12235_s1 + $0x500] sm:$0xff]  }
  0x8d   :  { %8301 = vmatpush3.bf16.msra.mxu1 %v9214_v59  ;;  %8280 = vmatprep.subr.bf16.mxu0 %v9215_v60  ;;  %v9266_v59 = vld [vmem:[%s12235_s1 + $0x580] sm:$0xff]   ;;  %v56_v60 = vld [vmem:[%s12236_s0 + $0xa8] sm:$0xff] }
  0x8e   :  { %8302 = vmatprep.subr.bf16.mxu1 %v9216_v61  ;;  %v136_v61 = vcvt.s32.f32 %v56_v60  ;;  %v9300_v60 = vld [vmem:[%s12235_s1 + $0x7f8] sm:$0xff]  }
  0x90   :  { %8281 = vmatpush3.bf16.msra.mxu0 %v9217_v62  ;;  %v58_v62 = vld [vmem:[%s12236_s0 + $0xb8] sm:$0xff] }
  0x91   :  { %8303 = vmatpush3.bf16.msra.mxu1 %v9218_v63  ;;  %8282 = vmatprep.subr.bf16.mxu0 %v9219_v0  ;;  %v55_v63 = vld [vmem:[%s12236_s0 + $0xa0] sm:$0xff]  ;;  %v57_v0 = vld [vmem:[%s12236_s0 + $0xb0] sm:$0xff] }
  0x92   :  { %8304 = vmatprep.subr.bf16.mxu1 %v9220_v1  ;;  %v138_v1 = vcvt.s32.f32 %v58_v62  ;;  %v9301_v62 = vld [vmem:[%s12235_s1 + $0x738] sm:$0xff]  }
  0x94   :  { %8283 = vmatpush3.bf16.msra.mxu0 %v9221_v2  ;;  %v135_v2 = vcvt.s32.f32 %v55_v63 }
  0x95   :  { %8305 = vmatpush3.bf16.msra.mxu1 %v9222_v3  ;;  %8284 = vmatprep.subr.bf16.mxu0 %v9223_v4  ;;  %v137_v3 = vcvt.s32.f32 %v57_v0  ;;  %v9267_v4 = vld [vmem:[%s12235_s1 + $0x678] sm:$0xff]  }
  0x96   :  { %8306 = vmatprep.subr.bf16.mxu1 %v9224_v5  ;;  %v216_v5 = vpack.c.bf16 %v136_v61, %v136_v61 }
  0x98   :  { %8285 = vmatpush3.bf16.msra.mxu0 %v9225_v6  ;;  %v9268_v6 = vld [vmem:[%s12235_s1 + $0x6f8] sm:$0xff]  }
  0x99   :  { %8307 = vmatpush3.bf16.msra.mxu1 %v9226_v7  ;;  %8286 = vmatprep.subr.bf16.mxu0 %v9227_v8  ;;  %v218_v7 = vpack.c.bf16 %v138_v1, %v138_v1  ;;  %v215_v8 = vpack.c.bf16 %v135_v2, %v135_v2  ;;  %v9302_v2 = vld [vmem:[%s12235_s1 + $0x7b8] sm:$0xff]  }
  0x9a   :  { %8308 = vmatprep.subr.bf16.mxu1 %v9228_v9  ;;  %v217_v9 = vpack.c.bf16 %v137_v3, %v137_v3  ;;  %v9303_v3 = vld [vmem:[%s12235_s1 + $0x770] sm:$0xff]  }
  0x9c   :  { %8287 = vmatpush3.bf16.msra.mxu0 %v9229_v10  ;;  %v9269_v10 = vld [vmem:[%s12235_s1 + $0x638] sm:$0xff]  }
  0x9d   :  { %8309 = vmatpush3.bf16.msra.mxu1 %v9230_v11  ;;  %8288 = vmatprep.subr.bf16.mxu0 %v9231_v12  ;;  %v9270_v11 = vld [vmem:[%s12235_s1 + $0x6b8] sm:$0xff]   ;;  %v9271_v12 = vld [vmem:[%s12235_s1 + $0x670] sm:$0xff]  }
  0x9e   :  { %8310 = vmatprep.subr.bf16.mxu1 %v9232_v13  ;;  %v9272_v13 = vld [vmem:[%s12235_s1 + $0x6f0] sm:$0xff]  }
  0xa0   :  { %8289 = vmatpush3.bf16.msra.mxu0 %v9233_v14  ;;  %v9273_v14 = vld [vmem:[%s12235_s1 + $0x630] sm:$0xff]  }
  0xa1   :  { %8311 = vmatpush3.bf16.msra.mxu1 %v9234_v15  ;;  %8318 = vmatprep.subr.bf16.mxu0 %v9235_v24  ;;  %v9274_v15 = vld [vmem:[%s12235_s1 + $0x6b0] sm:$0xff]   ;;  %v9283_v24 = vld [vmem:[%s12235_s1 + $0x658] sm:$0xff]  }
  0xa2   :  { %8340 = vmatprep.subr.bf16.mxu1 %v9236_v27  ;;  %v9286_v27 = vld [vmem:[%s12235_s1 + $0x698] sm:$0xff]  }
  0xa3   :  { %5736 = vmatmul.mubr.bf16.vlgmr.msra.gmra.mxu0 %v211_v28  ;;  %v9287_v28 = vld [vmem:[%s12235_s1 + $0x650] sm:$0xff]  }
  0xa4   :  { %5776 = vmatmul.mubr.bf16.vlgmr.msra.gmra.mxu1 %v213_v29  ;;  %8319 = vmatpush3.bf16.msra.mxu0 %v9237_v30  ;;  %v9288_v29 = vld [vmem:[%s12235_s1 + $0x6d0] sm:$0xff]  }
  0xa5   :  { %8341 = vmatpush3.bf16.msra.mxu1 %v9238_v31  ;;  %8320 = vmatprep.subr.bf16.mxu0 %v9239_v32  ;;  %v9289_v30 = vld [vmem:[%s12235_s1 + $0x610] sm:$0xff]   ;;  %v9291_v32 = vld [vmem:[%s12235_s1 + $0x648] sm:$0xff]  }
  0xa6   :  { %8342 = vmatprep.subr.bf16.mxu1 %v9240_v33  ;;  %5815 = vmatprep.mubr.bf16.mxu0 %v216_v5  ;;  %v9290_v31 = vld [vmem:[%s12235_s1 + $0x690] sm:$0xff]   ;;  %v9292_v33 = vld [vmem:[%s12235_s1 + $0x6c8] sm:$0xff]  }
  0xa7   :  { %5855 = vmatprep.mubr.bf16.mxu1 %v218_v7  ;;  %v9305_v5 = vld [vmem:[%s12235_s1 + $0x730] sm:$0xff]   ;;  %v9307_v7 = vld [vmem:[%s12235_s1 + $0x768] sm:$0xff]  }
  0xa8   :  { %8321 = vmatpush3.bf16.msra.mxu0 %v9241_v34  ;;  %v9293_v34 = vld [vmem:[%s12235_s1 + $0x608] sm:$0xff]  }
  0xa9   :  { %8343 = vmatpush3.bf16.msra.mxu1 %v9242_v35  ;;  %8322 = vmatprep.subr.bf16.mxu0 %v9243_v36  ;;  %v9294_v35 = vld [vmem:[%s12235_s1 + $0x688] sm:$0xff]   ;;  %v9295_v36 = vld [vmem:[%s12235_s1 + $0x640] sm:$0xff]  }
  0xaa   :  { %8344 = vmatprep.subr.bf16.mxu1 %v9244_v37  ;;  %v9296_v37 = vld [vmem:[%s12235_s1 + $0x6c0] sm:$0xff]  }
  0xac   :  { %8323 = vmatpush3.bf16.msra.mxu0 %v9245_v38  ;;  %v9297_v38 = vld [vmem:[%s12235_s1 + $0x600] sm:$0xff]  }
  0xad   :  { %8345 = vmatpush3.bf16.msra.mxu1 %v9246_v39  ;;  %8324 = vmatprep.subr.bf16.mxu0 %v9247_v40 }
  0xae   :  { %8346 = vmatprep.subr.bf16.mxu1 %v9248_v41  ;;  %v9298_v41 = vld [vmem:[%s12235_s1 + $0x680] sm:$0xff]  }
  0xb0   :  { %8325 = vmatpush3.bf16.msra.mxu0 %v9249_v42  ;;  %v60_v42 = vld [vmem:[%s12236_s0 + $0xc8] sm:$0xff] }
  0xb1   :  { %8347 = vmatpush3.bf16.msra.mxu1 %v9250_v43  ;;  %8326 = vmatprep.subr.bf16.mxu0 %v9251_v44  ;;  %v62_v43 = vld [vmem:[%s12236_s0 + $0xd8] sm:$0xff]  ;;  %v59_v44 = vld [vmem:[%s12236_s0 + $0xc0] sm:$0xff] }
  0xb2   :  { %8348 = vmatprep.subr.bf16.mxu1 %v9252_v45 }
  0xb4   :  { %8327 = vmatpush3.bf16.msra.mxu0 %v9253_v46 }
  0xb5   :  { %8349 = vmatpush3.bf16.msra.mxu1 %v9254_v47  ;;  %8328 = vmatprep.subr.bf16.mxu0 %v9255_v48  ;;  %v140_v47 = vcvt.s32.f32 %v60_v42  ;;  %v142_v48 = vcvt.s32.f32 %v62_v43 }
  0xb6   :  { %8350 = vmatprep.subr.bf16.mxu1 %v9256_v49  ;;  %v139_v49 = vcvt.s32.f32 %v59_v44 }
  0xb8   :  { %8329 = vmatpush3.bf16.msra.mxu0 %v9257_v50  ;;  %v61_v50 = vld [vmem:[%s12236_s0 + $0xd0] sm:$0xff] }
  0xb9   :  { %8351 = vmatpush3.bf16.msra.mxu1 %v9258_v51  ;;  %8330 = vmatprep.subr.bf16.mxu0 %v9259_v52  ;;  %v141_v52 = vcvt.s32.f32 %v61_v50  ;;  %v9332_v50 = vld [vmem:[%s12235_s1 + $0x8f8] sm:$0xff]  }
  0xba   :  { %8352 = vmatprep.subr.bf16.mxu1 %v9260_v53  ;;  %v9299_v53 = vld [vmem:[%s12235_s1 + $0x778] sm:$0xff]  }
  0xbb   :  { %v221_v61 = vpack.c.bf16 %v141_v52, %v141_v52 }
  0xbc   :  { %8331 = vmatpush3.bf16.msra.mxu0 %v9261_v54 }
  0xbd   :  { %8353 = vmatpush3.bf16.msra.mxu1 %v9262_v55  ;;  %8332 = vmatprep.subr.bf16.mxu0 %v9263_v56 }
  0xbe   :  { %8354 = vmatprep.subr.bf16.mxu1 %v9264_v57  ;;  %v220_v57 = vpack.c.bf16 %v140_v47, %v140_v47 }
  0xc0   :  { %8333 = vmatpush3.bf16.msra.mxu0 %v9265_v58  ;;  %v222_v58 = vpack.c.bf16 %v142_v48, %v142_v48 }
  0xc1   :  { %8355 = vmatpush3.bf16.msra.mxu1 %v9266_v59  ;;  %8362 = vmatprep.subr.bf16.mxu0 %v9267_v4  ;;  %v219_v59 = vpack.c.bf16 %v139_v49, %v139_v49  ;;  %v9304_v4 = vld [vmem:[%s12235_s1 + $0x7f0] sm:$0xff]  }
  0xc2   :  { %8384 = vmatprep.subr.bf16.mxu1 %v9268_v6  ;;  %v9306_v6 = vld [vmem:[%s12235_s1 + $0x7b0] sm:$0xff]  }
  0xc3   :  { %5816 = vmatmul.mubr.bf16.vlgmr.msra.gmra.mxu0 %v215_v8  ;;  %v9308_v8 = vld [vmem:[%s12235_s1 + $0x7e8] sm:$0xff]  }
  0xc4   :  { %5856 = vmatmul.mubr.bf16.vlgmr.msra.gmra.mxu1 %v217_v9  ;;  %8363 = vmatpush3.bf16.msra.mxu0 %v9269_v10  ;;  %v9309_v9 = vld [vmem:[%s12235_s1 + $0x728] sm:$0xff]  }
  0xc5   :  { %8385 = vmatpush3.bf16.msra.mxu1 %v9270_v11  ;;  %8364 = vmatprep.subr.bf16.mxu0 %v9271_v12  ;;  %v9310_v10 = vld [vmem:[%s12235_s1 + $0x7a8] sm:$0xff]   ;;  %v9311_v11 = vld [vmem:[%s12235_s1 + $0x760] sm:$0xff]  }
  0xc6   :  { %8386 = vmatprep.subr.bf16.mxu1 %v9272_v13  ;;  %5895 = vmatprep.mubr.bf16.mxu0 %v220_v57  ;;  %v9312_v12 = vld [vmem:[%s12235_s1 + $0x7e0] sm:$0xff]   ;;  %v9334_v57 = vld [vmem:[%s12235_s1 + $0x8b8] sm:$0xff]  }
  0xc7   :  { %5935 = vmatprep.mubr.bf16.mxu1 %v222_v58  ;;  %v9313_v13 = vld [vmem:[%s12235_s1 + $0x720] sm:$0xff]  }
  0xc8   :  { %8365 = vmatpush3.bf16.msra.mxu0 %v9273_v14  ;;  %v9314_v14 = vld [vmem:[%s12235_s1 + $0x7a0] sm:$0xff]  }
  0xc9   :  { %8387 = vmatpush3.bf16.msra.mxu1 %v9274_v15  ;;  %8366 = vmatprep.subr.bf16.mxu0 %v9275_v16  ;;  %v9315_v15 = vld [vmem:[%s12235_s1 + $0x758] sm:$0xff]  }
  0xca   :  { %8388 = vmatprep.subr.bf16.mxu1 %v9276_v17  ;;  %v9316_v16 = vld [vmem:[%s12235_s1 + $0x7d8] sm:$0xff]  }
  0xcb   :  { %v9317_v17 = vld [vmem:[%s12235_s1 + $0x718] sm:$0xff]  }
  0xcc   :  { %8367 = vmatpush3.bf16.msra.mxu0 %v9277_v18  ;;  %v9318_v18 = vld [vmem:[%s12235_s1 + $0x798] sm:$0xff]  }
  0xcd   :  { %8389 = vmatpush3.bf16.msra.mxu1 %v9278_v19  ;;  %8368 = vmatprep.subr.bf16.mxu0 %v9279_v20  ;;  %v9319_v19 = vld [vmem:[%s12235_s1 + $0x750] sm:$0xff]  }
  0xce   :  { %8390 = vmatprep.subr.bf16.mxu1 %v9280_v21  ;;  %v9320_v20 = vld [vmem:[%s12235_s1 + $0x7d0] sm:$0xff]  }
  0xcf   :  { %v9321_v21 = vld [vmem:[%s12235_s1 + $0x710] sm:$0xff]  }
  0xd0   :  { %8369 = vmatpush3.bf16.msra.mxu0 %v9281_v22  ;;  %v9322_v22 = vld [vmem:[%s12235_s1 + $0x790] sm:$0xff]  }
  0xd1   :  { %8391 = vmatpush3.bf16.msra.mxu1 %v9282_v23  ;;  %8370 = vmatprep.subr.bf16.mxu0 %v9283_v24  ;;  %v9323_v23 = vld [vmem:[%s12235_s1 + $0x748] sm:$0xff]  }
  0xd2   :  { %8392 = vmatprep.subr.bf16.mxu1 %v9284_v25  ;;  %v9324_v24 = vld [vmem:[%s12235_s1 + $0x7c8] sm:$0xff]  }
  0xd3   :  { %v9325_v25 = vld [vmem:[%s12235_s1 + $0x708] sm:$0xff]  }
  0xd4   :  { %8371 = vmatpush3.bf16.msra.mxu0 %v9285_v26  ;;  %v9326_v26 = vld [vmem:[%s12235_s1 + $0x788] sm:$0xff]  }
  0xd5   :  { %8393 = vmatpush3.bf16.msra.mxu1 %v9286_v27  ;;  %8372 = vmatprep.subr.bf16.mxu0 %v9287_v28  ;;  %v9327_v27 = vld [vmem:[%s12235_s1 + $0x740] sm:$0xff]  }
  0xd6   :  { %8394 = vmatprep.subr.bf16.mxu1 %v9288_v29  ;;  %v9328_v28 = vld [vmem:[%s12235_s1 + $0x7c0] sm:$0xff]  }
  0xd8   :  { %8373 = vmatpush3.bf16.msra.mxu0 %v9289_v30 }
  0xd9   :  { %8395 = vmatpush3.bf16.msra.mxu1 %v9290_v31  ;;  %8374 = vmatprep.subr.bf16.mxu0 %v9291_v32  ;;  %v9329_v31 = vld [vmem:[%s12235_s1 + $0x700] sm:$0xff]  }
  0xda   :  { %8396 = vmatprep.subr.bf16.mxu1 %v9292_v33  ;;  %v9330_v32 = vld [vmem:[%s12235_s1 + $0x780] sm:$0xff]   ;;  %v64_v33 = vld [vmem:[%s12236_s0 + $0xe8] sm:$0xff] }
  0xdc   :  { %8375 = vmatpush3.bf16.msra.mxu0 %v9293_v34  ;;  %v66_v34 = vld [vmem:[%s12236_s0 + $0xf8] sm:$0xff] }
  0xdd   :  { %8397 = vmatpush3.bf16.msra.mxu1 %v9294_v35  ;;  %8376 = vmatprep.subr.bf16.mxu0 %v9295_v36 }
  0xde   :  { %8398 = vmatprep.subr.bf16.mxu1 %v9296_v37  ;;  %v144_v37 = vcvt.s32.f32 %v64_v33 }
  0xe0   :  { %8377 = vmatpush3.bf16.msra.mxu0 %v9297_v38  ;;  %v146_v38 = vcvt.s32.f32 %v66_v34  ;;  %v224_v48 = vpack.c.bf16 %v144_v37, %v144_v37 }
  0xe1   :  { %8399 = vmatpush3.bf16.msra.mxu1 %v9298_v41  ;;  %8406 = vmatprep.subr.bf16.mxu0 %v9299_v53 }
  0xe2   :  { %8428 = vmatprep.subr.bf16.mxu1 %v9300_v60  ;;  %v226_v49 = vpack.c.bf16 %v146_v38, %v146_v38  ;;  %v9336_v60 = vld [vmem:[%s12235_s1 + $0x8f0] sm:$0xff]  }
  0xe3   :  { %v8114_v39 = vpop.f32.mrf.mxu0  ;;  %5896 = vmatmul.mubr.bf16.vlgmr.msra.gmra.mxu0 %v219_v59  ;;  %v9335_v59 = vld [vmem:[%s12235_s1 + $0x870] sm:$0xff]  }
  0xe4   :  { %v8136_v40 = vpop.f32.mrf.mxu1  ;;  %5936 = vmatmul.mubr.bf16.vlgmr.msra.gmra.mxu1 %v221_v61  ;;  %8407 = vmatpush3.bf16.msra.mxu0 %v9301_v62  ;;  %v9337_v61 = vld [vmem:[%s12235_s1 + $0x830] sm:$0xff]  }
  0xe5   :  { %v8115_v45 = vpop.f32.mrf.mxu0  ;;  %8429 = vmatpush3.bf16.msra.mxu1 %v9302_v2  ;;  %8408 = vmatprep.subr.bf16.mxu0 %v9303_v3  ;;  %v9338_v62 = vld [vmem:[%s12235_s1 + $0x8b0] sm:$0xff]   ;;  %v9342_v2 = vld [vmem:[%s12235_s1 + $0x8a8] sm:$0xff]   ;;  %v9343_v3 = vld [vmem:[%s12235_s1 + $0x860] sm:$0xff]  }
  0xe6   :  { %v8137_v46 = vpop.f32.mrf.mxu1  ;;  %v8116_v51 = vadd.f32 %v8115_v45, %v8114_v39  ;;  %8430 = vmatprep.subr.bf16.mxu1 %v9304_v4  ;;  %v63_v39 = vld [vmem:[%s12236_s0 + $0xe0] sm:$0xff]  ;;  %v9331_v45 = vld [vmem:[%s12235_s1 + $0x878] sm:$0xff]   ;;  %5975 = vmatprep.mubr.bf16.mxu0 %v224_v48 }
  0xe7   :  { %v8138_v54 = vadd.f32 %v8137_v46, %v8136_v40  ;;  %v8117_v56 = vpop.f32.mrf.mxu0  ;;  %v65_v40 = vld [vmem:[%s12236_s0 + $0xf0] sm:$0xff]  ;;  %v143_v43 = vcvt.s32.f32 %v63_v39  ;;  %6015 = vmatprep.mubr.bf16.mxu1 %v226_v49  ;;  %v9344_v4 = vld [vmem:[%s12235_s1 + $0x8e0] sm:$0xff]   ;;  %v9366_v48 = vld [vmem:[%s12235_s1 + $0x9b8] sm:$0xff]  }
  0xe8   :  { %v8139_v55 = vpop.f32.mrf.mxu1  ;;  %8409 = vmatpush3.bf16.msra.mxu0 %v9305_v5  ;;  %v145_v44 = vcvt.s32.f32 %v65_v40  ;;  %v9345_v5 = vld [vmem:[%s12235_s1 + $0x820] sm:$0xff]   ;;  %v9364_v40 = vld [vmem:[%s12235_s1 + $0x9f8] sm:$0xff]  }
  0xe9   :  { %v10544_v63 = vadd.f32 %v8138_v54, %v8116_v51  ;;  %v8118_v1 = vpop.f32.mrf.mxu0  ;;  %8431 = vmatpush3.bf16.msra.mxu1 %v9306_v6  ;;  %8410 = vmatprep.subr.bf16.mxu0 %v9307_v7  ;;  %v223_v52 = vpack.c.bf16 %v143_v43, %v143_v43  ;;  %v9333_v54 = vld [vmem:[%s12235_s1 + $0x838] sm:$0xff]   ;;  %v9346_v6 = vld [vmem:[%s12235_s1 + $0x8a0] sm:$0xff]  }
  0xea   :  { %v8140_v0 = vpop.f32.mrf.mxu1  ;;  %8432 = vmatprep.subr.bf16.mxu1 %v9308_v8  ;;  %v225_v53 = vpack.c.bf16 %v145_v44, %v145_v44  ;;  %v9341_v1 = vld [vmem:[%s12235_s1 + $0x828] sm:$0xff]   ;;  %v9347_v7 = vld [vmem:[%s12235_s1 + $0x858] sm:$0xff]  }
  0xeb   :  { %v9340_v0 = vld [vmem:[%s12235_s1 + $0x8e8] sm:$0xff]   ;;  %v9348_v8 = vld [vmem:[%s12235_s1 + $0x8d8] sm:$0xff]  }
  0xec   :  { %8411 = vmatpush3.bf16.msra.mxu0 %v9309_v9  ;;  %v9349_v9 = vld [vmem:[%s12235_s1 + $0x818] sm:$0xff]  }
  0xed   :  { %8433 = vmatpush3.bf16.msra.mxu1 %v9310_v10  ;;  %8412 = vmatprep.subr.bf16.mxu0 %v9311_v11  ;;  %v9350_v10 = vld [vmem:[%s12235_s1 + $0x898] sm:$0xff]   ;;  %v9351_v11 = vld [vmem:[%s12235_s1 + $0x850] sm:$0xff]  }
  0xee   :  { %8434 = vmatprep.subr.bf16.mxu1 %v9312_v12  ;;  %v9352_v12 = vld [vmem:[%s12235_s1 + $0x8d0] sm:$0xff]  }
  0xf0   :  { %8413 = vmatpush3.bf16.msra.mxu0 %v9313_v13  ;;  %v9353_v13 = vld [vmem:[%s12235_s1 + $0x810] sm:$0xff]  }
  0xf1   :  { %8435 = vmatpush3.bf16.msra.mxu1 %v9314_v14  ;;  %8414 = vmatprep.subr.bf16.mxu0 %v9315_v15  ;;  %v9354_v14 = vld [vmem:[%s12235_s1 + $0x890] sm:$0xff]   ;;  %v9355_v15 = vld [vmem:[%s12235_s1 + $0x848] sm:$0xff]  }
  0xf2   :  { %8436 = vmatprep.subr.bf16.mxu1 %v9316_v16  ;;  %v9356_v16 = vld [vmem:[%s12235_s1 + $0x8c8] sm:$0xff]  }
  0xf4   :  { %8415 = vmatpush3.bf16.msra.mxu0 %v9317_v17  ;;  %v9357_v17 = vld [vmem:[%s12235_s1 + $0x808] sm:$0xff]  }
  0xf5   :  { %8437 = vmatpush3.bf16.msra.mxu1 %v9318_v18  ;;  %8416 = vmatprep.subr.bf16.mxu0 %v9319_v19  ;;  %v9358_v18 = vld [vmem:[%s12235_s1 + $0x888] sm:$0xff]   ;;  %v9359_v19 = vld [vmem:[%s12235_s1 + $0x840] sm:$0xff]  }
  0xf6   :  { %8438 = vmatprep.subr.bf16.mxu1 %v9320_v20  ;;  %v9360_v20 = vld [vmem:[%s12235_s1 + $0x8c0] sm:$0xff]  }
  0xf8   :  { %8417 = vmatpush3.bf16.msra.mxu0 %v9321_v21 }
  0xf9   :  { %8439 = vmatpush3.bf16.msra.mxu1 %v9322_v22  ;;  %8418 = vmatprep.subr.bf16.mxu0 %v9323_v23  ;;  %v9361_v22 = vld [vmem:[%s12235_s1 + $0x800] sm:$0xff]  }
  0xfa   :  { %8440 = vmatprep.subr.bf16.mxu1 %v9324_v24  ;;  %v9362_v24 = vld [vmem:[%s12235_s1 + $0x880] sm:$0xff]  }
  0xfc   :  { %8419 = vmatpush3.bf16.msra.mxu0 %v9325_v25  ;;  %v68_v25 = vld [vmem:[%s12236_s0 + $0x108] sm:$0xff] }
  0xfd   :  { %8441 = vmatpush3.bf16.msra.mxu1 %v9326_v26  ;;  %8420 = vmatprep.subr.bf16.mxu0 %v9327_v27  ;;  %v148_v27 = vcvt.s32.f32 %v68_v25  ;;  %v73_v25 = vld [vmem:[%s12236_s0 + $0x130] sm:$0xff] }
  0xfe   :  { %8442 = vmatprep.subr.bf16.mxu1 %v9328_v28  ;;  %v70_v28 = vld [vmem:[%s12236_s0 + $0x118] sm:$0xff] }
  0xff   :  { %v150_v33 = vcvt.s32.f32 %v70_v28  ;;  %v228_v39 = vpack.c.bf16 %v148_v27, %v148_v27  ;;  %v153_v27 = vcvt.s32.f32 %v73_v25  ;;  %v9395_v28 = vld [vmem:[%s12235_s1 + $0xa78] sm:$0xff]  }
 0x100   :  { %8421 = vmatpush3.bf16.msra.mxu0 %v9329_v31 }
 0x101   :  { %8443 = vmatpush3.bf16.msra.mxu1 %v9330_v32  ;;  %8450 = vmatprep.subr.bf16.mxu0 %v9331_v45  ;;  %v230_v43 = vpack.c.bf16 %v150_v33, %v150_v33 }
 0x102   :  { %8472 = vmatprep.subr.bf16.mxu1 %v9332_v50 }
 0x103   :  { %v8158_v29 = vpop.f32.mrf.mxu0  ;;  %5976 = vmatmul.mubr.bf16.vlgmr.msra.gmra.mxu0 %v223_v52  ;;  %v9368_v52 = vld [vmem:[%s12235_s1 + $0x9f0] sm:$0xff]  }
 0x104   :  { %v8180_v30 = vpop.f32.mrf.mxu1  ;;  %6016 = vmatmul.mubr.bf16.vlgmr.msra.gmra.mxu1 %v225_v53  ;;  %8451 = vmatpush3.bf16.msra.mxu0 %v9333_v54  ;;  %v9369_v53 = vld [vmem:[%s12235_s1 + $0x930] sm:$0xff]  }
 0x105   :  { %v8159_v35 = vpop.f32.mrf.mxu0  ;;  %8473 = vmatpush3.bf16.msra.mxu1 %v9334_v57  ;;  %8452 = vmatprep.subr.bf16.mxu0 %v9335_v59  ;;  %v9370_v54 = vld [vmem:[%s12235_s1 + $0x9b0] sm:$0xff]   ;;  %v9373_v57 = vld [vmem:[%s12235_s1 + $0x928] sm:$0xff]   ;;  %v9375_v59 = vld [vmem:[%s12235_s1 + $0x960] sm:$0xff]  }
 0x106   :  { %v8181_v36 = vpop.f32.mrf.mxu1  ;;  %v8160_v41 = vadd.f32 %v8159_v35, %v8158_v29  ;;  %8474 = vmatprep.subr.bf16.mxu1 %v9336_v60  ;;  %v67_v29 = vld [vmem:[%s12236_s0 + $0x100] sm:$0xff]  ;;  %6055 = vmatprep.mubr.bf16.mxu0 %v228_v39 }
 0x107   :  { %v8182_v42 = vadd.f32 %v8181_v36, %v8180_v30  ;;  %v8161_v47 = vpop.f32.mrf.mxu0  ;;  %v69_v30 = vld [vmem:[%s12236_s0 + $0x110] sm:$0xff]  ;;  %v147_v34 = vcvt.s32.f32 %v67_v29  ;;  %v9363_v36 = vld [vmem:[%s12235_s1 + $0x978] sm:$0xff]   ;;  %6095 = vmatprep.mubr.bf16.mxu1 %v230_v43  ;;  %v9376_v60 = vld [vmem:[%s12235_s1 + $0x9e0] sm:$0xff]  }
 0x108   :  { %v8183_v46 = vpop.f32.mrf.mxu1  ;;  %v5498_v51 = vadd.f32 %v8160_v41, %v10544_v63  ;;  %v9339_v63 = vld [vmem:[%s12235_s1 + $0x868] sm:$0xff]   ;;  %8453 = vmatpush3.bf16.msra.mxu0 %v9337_v61  ;;  %v149_v35 = vcvt.s32.f32 %v69_v30  ;;  %v9377_v61 = vld [vmem:[%s12235_s1 + $0x920] sm:$0xff]   ;;  %v9399_v43 = vld [vmem:[%s12235_s1 + $0xa70] sm:$0xff]  }
 0x109   :  { %v8162_v56 = vpop.f32.mrf.mxu0  ;;  %8475 = vmatpush3.bf16.msra.mxu1 %v9338_v62  ;;  %8454 = vmatprep.subr.bf16.mxu0 %v9339_v63  ;;  %v227_v44 = vpack.c.bf16 %v147_v34, %v147_v34  ;;  %v9365_v46 = vld [vmem:[%s12235_s1 + $0x938] sm:$0xff]   ;;  %v9378_v62 = vld [vmem:[%s12235_s1 + $0x9a0] sm:$0xff]  }
 0x10a   :  { %v8184_v55 = vpop.f32.mrf.mxu1  ;;  %v10658_v58 = vadd.f32 %v8182_v42, %v5498_v51  ;;  %8476 = vmatprep.subr.bf16.mxu1 %v9340_v0  ;;  %v229_v45 = vpack.c.bf16 %v149_v35, %v149_v35  ;;  %v9367_v51 = vld [vmem:[%s12235_s1 + $0x970] sm:$0xff]   ;;  %v9372_v56 = vld [vmem:[%s12235_s1 + $0x9e8] sm:$0xff]   ;;  %v9379_v63 = vld [vmem:[%s12235_s1 + $0x958] sm:$0xff]  }
 0x10b   :  { %v9371_v55 = vld [vmem:[%s12235_s1 + $0x968] sm:$0xff]   ;;  %v9380_v0 = vld [vmem:[%s12235_s1 + $0x9d8] sm:$0xff]  }
 0x10c   :  { %8455 = vmatpush3.bf16.msra.mxu0 %v9341_v1  ;;  %v9381_v1 = vld [vmem:[%s12235_s1 + $0x918] sm:$0xff]  }
 0x10d   :  { %8477 = vmatpush3.bf16.msra.mxu1 %v9342_v2  ;;  %8456 = vmatprep.subr.bf16.mxu0 %v9343_v3  ;;  %v9382_v2 = vld [vmem:[%s12235_s1 + $0x998] sm:$0xff]   ;;  %v9383_v3 = vld [vmem:[%s12235_s1 + $0x950] sm:$0xff]  }
 0x10e   :  { %8478 = vmatprep.subr.bf16.mxu1 %v9344_v4  ;;  %v9384_v4 = vld [vmem:[%s12235_s1 + $0x9d0] sm:$0xff]   ;;  %v9396_v35 = vld [vmem:[%s12235_s1 + $0xaf8] sm:$0xff]  }
 0x110   :  { %8457 = vmatpush3.bf16.msra.mxu0 %v9345_v5  ;;  %v9385_v5 = vld [vmem:[%s12235_s1 + $0x910] sm:$0xff]  }
 0x111   :  { %8479 = vmatpush3.bf16.msra.mxu1 %v9346_v6  ;;  %8458 = vmatprep.subr.bf16.mxu0 %v9347_v7  ;;  %v9386_v6 = vld [vmem:[%s12235_s1 + $0x990] sm:$0xff]   ;;  %v9387_v7 = vld [vmem:[%s12235_s1 + $0x948] sm:$0xff]  }
 0x112   :  { %8480 = vmatprep.subr.bf16.mxu1 %v9348_v8  ;;  %v9388_v8 = vld [vmem:[%s12235_s1 + $0x9c8] sm:$0xff]  }
 0x114   :  { %8459 = vmatpush3.bf16.msra.mxu0 %v9349_v9  ;;  %v9389_v9 = vld [vmem:[%s12235_s1 + $0x908] sm:$0xff]  }
 0x115   :  { %8481 = vmatpush3.bf16.msra.mxu1 %v9350_v10  ;;  %8460 = vmatprep.subr.bf16.mxu0 %v9351_v11  ;;  %v9390_v10 = vld [vmem:[%s12235_s1 + $0x988] sm:$0xff]   ;;  %v9391_v11 = vld [vmem:[%s12235_s1 + $0x940] sm:$0xff]  }
 0x116   :  { %8482 = vmatprep.subr.bf16.mxu1 %v9352_v12  ;;  %v9392_v12 = vld [vmem:[%s12235_s1 + $0x9c0] sm:$0xff]  }
 0x118   :  { %8461 = vmatpush3.bf16.msra.mxu0 %v9353_v13  ;;  %v9393_v13 = vld [vmem:[%s12235_s1 + $0x900] sm:$0xff]  }
 0x119   :  { %8483 = vmatpush3.bf16.msra.mxu1 %v9354_v14  ;;  %8462 = vmatprep.subr.bf16.mxu0 %v9355_v15 }
 0x11a   :  { %8484 = vmatprep.subr.bf16.mxu1 %v9356_v16  ;;  %v9394_v16 = vld [vmem:[%s12235_s1 + $0x980] sm:$0xff]  }
 0x11c   :  { %8463 = vmatpush3.bf16.msra.mxu0 %v9357_v17  ;;  %v72_v17 = vld [vmem:[%s12236_s0 + $0x128] sm:$0xff] }
 0x11d   :  { %8485 = vmatpush3.bf16.msra.mxu1 %v9358_v18  ;;  %8464 = vmatprep.subr.bf16.mxu0 %v9359_v19  ;;  %v74_v18 = vld [vmem:[%s12236_s0 + $0x138] sm:$0xff]  ;;  %v71_v19 = vld [vmem:[%s12236_s0 + $0x120] sm:$0xff] }
 0x11e   :  { %8486 = vmatprep.subr.bf16.mxu1 %v9360_v20 }
 0x120   :  { %8465 = vmatpush3.bf16.msra.mxu0 %v9361_v22  ;;  %v152_v22 = vcvt.s32.f32 %v72_v17 }
 0x121   :  { %8487 = vmatpush3.bf16.msra.mxu1 %v9362_v24  ;;  %8494 = vmatprep.subr.bf16.mxu0 %v9363_v36  ;;  %v151_v24 = vcvt.s32.f32 %v71_v19 }
 0x122   :  { %8516 = vmatprep.subr.bf16.mxu1 %v9364_v40 }
 0x123   :  { %v8202_v21 = vpop.f32.mrf.mxu0  ;;  %6056 = vmatmul.mubr.bf16.vlgmr.msra.gmra.mxu0 %v227_v44  ;;  %v231_v34 = vpack.c.bf16 %v151_v24, %v151_v24  ;;  %v9400_v44 = vld [vmem:[%s12235_s1 + $0xaf0] sm:$0xff]  }
 0x124   :  { %v8224_v23 = vpop.f32.mrf.mxu1  ;;  %6096 = vmatmul.mubr.bf16.vlgmr.msra.gmra.mxu1 %v229_v45  ;;  %8495 = vmatpush3.bf16.msra.mxu0 %v9365_v46  ;;  %v9401_v45 = vld [vmem:[%s12235_s1 + $0xa30] sm:$0xff]  }
 0x125   :  { %v8203_v26 = vpop.f32.mrf.mxu0  ;;  %8517 = vmatpush3.bf16.msra.mxu1 %v9366_v48  ;;  %8496 = vmatprep.subr.bf16.mxu0 %v9367_v51  ;;  %v9402_v46 = vld [vmem:[%s12235_s1 + $0xab0] sm:$0xff]   ;;  %v9404_v48 = vld [vmem:[%s12235_s1 + $0xae8] sm:$0xff]   ;;  %v9407_v51 = vld [vmem:[%s12235_s1 + $0xa60] sm:$0xff]  }
 0x126   :  { %v8204_v31 = vadd.f32 %v8203_v26, %v8202_v21  ;;  %v8225_v32 = vpop.f32.mrf.mxu1  ;;  %8518 = vmatprep.subr.bf16.mxu1 %v9368_v52  ;;  %v9408_v52 = vld [vmem:[%s12235_s1 + $0xae0] sm:$0xff]  }
 0x127   :  { %v8226_v37 = vadd.f32 %v8225_v32, %v8224_v23  ;;  %v8205_v38 = vpop.f32.mrf.mxu0  ;;  %v154_v23 = vcvt.s32.f32 %v74_v18  ;;  %v232_v32 = vpack.c.bf16 %v152_v22, %v152_v22 }
 0x128   :  { %v5578_v41 = vadd.f32 %v8204_v31, %v10658_v58  ;;  %v8227_v42 = vpop.f32.mrf.mxu1  ;;  %8497 = vmatpush3.bf16.msra.mxu0 %v9369_v53  ;;  %v9374_v58 = vld [vmem:[%s12235_s1 + $0x9a8] sm:$0xff]   ;;  %v9397_v38 = vld [vmem:[%s12235_s1 + $0xa38] sm:$0xff]   ;;  %v9409_v53 = vld [vmem:[%s12235_s1 + $0xa20] sm:$0xff]  }
 0x129   :  { %v8206_v47 = vpop.f32.mrf.mxu0  ;;  %8519 = vmatpush3.bf16.msra.mxu1 %v9370_v54  ;;  %8498 = vmatprep.subr.bf16.mxu0 %v9371_v55  ;;  %v234_v33 = vpack.c.bf16 %v154_v23, %v154_v23  ;;  %v9410_v54 = vld [vmem:[%s12235_s1 + $0xaa0] sm:$0xff]   ;;  %v9411_v55 = vld [vmem:[%s12235_s1 + $0xa58] sm:$0xff]  }
 0x12a   :  { %v10769_v49 = vadd.f32 %v8226_v37, %v5578_v41  ;;  %v8228_v50 = vpop.f32.mrf.mxu1  ;;  %8520 = vmatprep.subr.bf16.mxu1 %v9372_v56  ;;  %v233_v37 = vpack.c.bf16 %v153_v27, %v153_v27  ;;  %6135 = vmatprep.mubr.bf16.mxu0 %v232_v32  ;;  %v9398_v41 = vld [vmem:[%s12235_s1 + $0xab8] sm:$0xff]   ;;  %v9403_v47 = vld [vmem:[%s12235_s1 + $0xa68] sm:$0xff]  }
 0x12b   :  { %6175 = vmatprep.mubr.bf16.mxu1 %v234_v33  ;;  %v9406_v50 = vld [vmem:[%s12235_s1 + $0xaa8] sm:$0xff]   ;;  %v9412_v56 = vld [vmem:[%s12235_s1 + $0xad8] sm:$0xff]  }
 0x12c   :  { %8499 = vmatpush3.bf16.msra.mxu0 %v9373_v57  ;;  %v9413_v57 = vld [vmem:[%s12235_s1 + $0xa18] sm:$0xff]  }
 0x12d   :  { %8521 = vmatpush3.bf16.msra.mxu1 %v9374_v58  ;;  %8500 = vmatprep.subr.bf16.mxu0 %v9375_v59  ;;  %v9414_v58 = vld [vmem:[%s12235_s1 + $0xa98] sm:$0xff]   ;;  %v9415_v59 = vld [vmem:[%s12235_s1 + $0xa50] sm:$0xff]  }
 0x12e   :  { %8522 = vmatprep.subr.bf16.mxu1 %v9376_v60  ;;  %v9416_v60 = vld [vmem:[%s12235_s1 + $0xad0] sm:$0xff]   ;;  %v9430_v33 = vld [vmem:[%s12235_s1 + $0xbb8] sm:$0xff]  }
 0x130   :  { %8501 = vmatpush3.bf16.msra.mxu0 %v9377_v61  ;;  %v9417_v61 = vld [vmem:[%s12235_s1 + $0xa10] sm:$0xff]  }
 0x131   :  { %8523 = vmatpush3.bf16.msra.mxu1 %v9378_v62  ;;  %8502 = vmatprep.subr.bf16.mxu0 %v9379_v63  ;;  %v9418_v62 = vld [vmem:[%s12235_s1 + $0xa90] sm:$0xff]   ;;  %v9419_v63 = vld [vmem:[%s12235_s1 + $0xa48] sm:$0xff]  }
 0x132   :  { %8524 = vmatprep.subr.bf16.mxu1 %v9380_v0  ;;  %v9420_v0 = vld [vmem:[%s12235_s1 + $0xac8] sm:$0xff]  }
 0x134   :  { %8503 = vmatpush3.bf16.msra.mxu0 %v9381_v1  ;;  %v9421_v1 = vld [vmem:[%s12235_s1 + $0xa08] sm:$0xff]  }
 0x135   :  { %8525 = vmatpush3.bf16.msra.mxu1 %v9382_v2  ;;  %8504 = vmatprep.subr.bf16.mxu0 %v9383_v3  ;;  %v9422_v2 = vld [vmem:[%s12235_s1 + $0xa88] sm:$0xff]   ;;  %v9423_v3 = vld [vmem:[%s12235_s1 + $0xa40] sm:$0xff]  }
 0x136   :  { %8526 = vmatprep.subr.bf16.mxu1 %v9384_v4  ;;  %v9424_v4 = vld [vmem:[%s12235_s1 + $0xac0] sm:$0xff]  }
 0x138   :  { %8505 = vmatpush3.bf16.msra.mxu0 %v9385_v5 }
 0x139   :  { %8527 = vmatpush3.bf16.msra.mxu1 %v9386_v6  ;;  %8506 = vmatprep.subr.bf16.mxu0 %v9387_v7  ;;  %v9425_v7 = vld [vmem:[%s12235_s1 + $0xa00] sm:$0xff]  }
 0x13a   :  { %8528 = vmatprep.subr.bf16.mxu1 %v9388_v8  ;;  %v9426_v8 = vld [vmem:[%s12235_s1 + $0xa80] sm:$0xff]  }
 0x13c   :  { %8507 = vmatpush3.bf16.msra.mxu0 %v9389_v9  ;;  %v76_v9 = vld [vmem:[%s12236_s0 + $0x148] sm:$0xff] }
 0x13d   :  { %8529 = vmatpush3.bf16.msra.mxu1 %v9390_v10  ;;  %8508 = vmatprep.subr.bf16.mxu0 %v9391_v11  ;;  %v78_v10 = vld [vmem:[%s12236_s0 + $0x158] sm:$0xff] }
 0x13e   :  { %8530 = vmatprep.subr.bf16.mxu1 %v9392_v12 }
 0x140   :  { %8509 = vmatpush3.bf16.msra.mxu0 %v9393_v13  ;;  %v156_v13 = vcvt.s32.f32 %v76_v9 }
 0x141   :  { %8531 = vmatpush3.bf16.msra.mxu1 %v9394_v16  ;;  %8538 = vmatprep.subr.bf16.mxu0 %v9395_v28  ;;  %v77_v16 = vld [vmem:[%s12236_s0 + $0x150] sm:$0xff] }
 0x142   :  { %8560 = vmatprep.subr.bf16.mxu1 %v9396_v35  ;;  %v236_v24 = vpack.c.bf16 %v156_v13, %v156_v13  ;;  %v9431_v35 = vld [vmem:[%s12235_s1 + $0xb70] sm:$0xff]  }
 0x143   :  { %v8246_v14 = vpop.f32.mrf.mxu0  ;;  %6136 = vmatmul.mubr.bf16.vlgmr.msra.gmra.mxu0 %v231_v34 }
 0x144   :  { %v8268_v15 = vpop.f32.mrf.mxu1  ;;  %6176 = vmatmul.mubr.bf16.vlgmr.msra.gmra.mxu1 %v233_v37  ;;  %8539 = vmatpush3.bf16.msra.mxu0 %v9397_v38  ;;  %v9433_v37 = vld [vmem:[%s12235_s1 + $0xb30] sm:$0xff]  }
 0x145   :  { %v8247_v20 = vpop.f32.mrf.mxu0  ;;  %8561 = vmatpush3.bf16.msra.mxu1 %v9398_v41  ;;  %8540 = vmatprep.subr.bf16.mxu0 %v9399_v43  ;;  %v9434_v38 = vld [vmem:[%s12235_s1 + $0xbb0] sm:$0xff]   ;;  %v9437_v41 = vld [vmem:[%s12235_s1 + $0xb28] sm:$0xff]   ;;  %v9439_v43 = vld [vmem:[%s12235_s1 + $0xb60] sm:$0xff]  }
 0x146   :  { %v8269_v21 = vpop.f32.mrf.mxu1  ;;  %v8248_v26 = vadd.f32 %v8247_v20, %v8246_v14  ;;  %8562 = vmatprep.subr.bf16.mxu1 %v9400_v44  ;;  %v158_v14 = vcvt.s32.f32 %v78_v10  ;;  %v157_v20 = vcvt.s32.f32 %v77_v16  ;;  %6215 = vmatprep.mubr.bf16.mxu0 %v236_v24  ;;  %v9440_v44 = vld [vmem:[%s12235_s1 + $0xbe0] sm:$0xff]   ;;  %v9460_v16 = vld [vmem:[%s12235_s1 + $0xcf8] sm:$0xff]  }
 0x147   :  { %v8270_v29 = vadd.f32 %v8269_v21, %v8268_v15  ;;  %v8249_v31 = vpop.f32.mrf.mxu0  ;;  %v75_v15 = vld [vmem:[%s12236_s0 + $0x140] sm:$0xff]  ;;  %v9427_v21 = vld [vmem:[%s12235_s1 + $0xb78] sm:$0xff]  }
 0x148   :  { %v8271_v30 = vpop.f32.mrf.mxu1  ;;  %v5658_v36 = vadd.f32 %v8248_v26, %v10769_v49  ;;  %8541 = vmatpush3.bf16.msra.mxu0 %v9401_v45  ;;  %v9405_v49 = vld [vmem:[%s12235_s1 + $0xa28] sm:$0xff]   ;;  %v155_v19 = vcvt.s32.f32 %v75_v15  ;;  %v238_v25 = vpack.c.bf16 %v158_v14, %v158_v14  ;;  %v9428_v26 = vld [vmem:[%s12235_s1 + $0xbf8] sm:$0xff]   ;;  %v9441_v45 = vld [vmem:[%s12235_s1 + $0xb20] sm:$0xff]  }
 0x149   :  { %v8250_v40 = vpop.f32.mrf.mxu0  ;;  %8563 = vmatpush3.bf16.msra.mxu1 %v9402_v46  ;;  %8542 = vmatprep.subr.bf16.mxu0 %v9403_v47  ;;  %v9429_v30 = vld [vmem:[%s12235_s1 + $0xb38] sm:$0xff]   ;;  %v9442_v46 = vld [vmem:[%s12235_s1 + $0xba0] sm:$0xff]  }
 0x14a   :  { %v8272_v39 = vpop.f32.mrf.mxu1  ;;  %v10880_v42 = vadd.f32 %v8270_v29, %v5658_v36  ;;  %8564 = vmatprep.subr.bf16.mxu1 %v9404_v48  ;;  %v235_v28 = vpack.c.bf16 %v155_v19, %v155_v19  ;;  %v237_v29 = vpack.c.bf16 %v157_v20, %v157_v20  ;;  %6255 = vmatprep.mubr.bf16.mxu1 %v238_v25  ;;  %v9432_v36 = vld [vmem:[%s12235_s1 + $0xbf0] sm:$0xff]   ;;  %v9436_v40 = vld [vmem:[%s12235_s1 + $0xbe8] sm:$0xff]   ;;  %v9443_v47 = vld [vmem:[%s12235_s1 + $0xb58] sm:$0xff]  }
 0x14b   :  { %v9435_v39 = vld [vmem:[%s12235_s1 + $0xb68] sm:$0xff]   ;;  %v9444_v48 = vld [vmem:[%s12235_s1 + $0xbd8] sm:$0xff]  }
 0x14c   :  { %8543 = vmatpush3.bf16.msra.mxu0 %v9405_v49  ;;  %v9445_v49 = vld [vmem:[%s12235_s1 + $0xb18] sm:$0xff]  }
 0x14d   :  { %8565 = vmatpush3.bf16.msra.mxu1 %v9406_v50  ;;  %8544 = vmatprep.subr.bf16.mxu0 %v9407_v51  ;;  %v9446_v50 = vld [vmem:[%s12235_s1 + $0xb98] sm:$0xff]   ;;  %v9447_v51 = vld [vmem:[%s12235_s1 + $0xb50] sm:$0xff]  }
 0x14e   :  { %8566 = vmatprep.subr.bf16.mxu1 %v9408_v52  ;;  %v9448_v52 = vld [vmem:[%s12235_s1 + $0xbd0] sm:$0xff]   ;;  %v9462_v24 = vld [vmem:[%s12235_s1 + $0xcb8] sm:$0xff]  }
 0x150   :  { %8545 = vmatpush3.bf16.msra.mxu0 %v9409_v53  ;;  %v9449_v53 = vld [vmem:[%s12235_s1 + $0xb10] sm:$0xff]  }
 0x151   :  { %8567 = vmatpush3.bf16.msra.mxu1 %v9410_v54  ;;  %8546 = vmatprep.subr.bf16.mxu0 %v9411_v55  ;;  %v9450_v54 = vld [vmem:[%s12235_s1 + $0xb90] sm:$0xff]   ;;  %v9451_v55 = vld [vmem:[%s12235_s1 + $0xb48] sm:$0xff]  }
 0x152   :  { %8568 = vmatprep.subr.bf16.mxu1 %v9412_v56  ;;  %v9452_v56 = vld [vmem:[%s12235_s1 + $0xbc8] sm:$0xff]  }
 0x154   :  { %8547 = vmatpush3.bf16.msra.mxu0 %v9413_v57  ;;  %v9453_v57 = vld [vmem:[%s12235_s1 + $0xb08] sm:$0xff]  }
 0x155   :  { %8569 = vmatpush3.bf16.msra.mxu1 %v9414_v58  ;;  %8548 = vmatprep.subr.bf16.mxu0 %v9415_v59  ;;  %v9454_v58 = vld [vmem:[%s12235_s1 + $0xb88] sm:$0xff]   ;;  %v9455_v59 = vld [vmem:[%s12235_s1 + $0xb40] sm:$0xff]  }
 0x156   :  { %8570 = vmatprep.subr.bf16.mxu1 %v9416_v60  ;;  %v9456_v60 = vld [vmem:[%s12235_s1 + $0xbc0] sm:$0xff]  }
 0x158   :  { %8549 = vmatpush3.bf16.msra.mxu0 %v9417_v61 }
 0x159   :  { %8571 = vmatpush3.bf16.msra.mxu1 %v9418_v62  ;;  %8550 = vmatprep.subr.bf16.mxu0 %v9419_v63  ;;  %v9457_v62 = vld [vmem:[%s12235_s1 + $0xb00] sm:$0xff]  }
 0x15a   :  { %8572 = vmatprep.subr.bf16.mxu1 %v9420_v0  ;;  %v9458_v0 = vld [vmem:[%s12235_s1 + $0xb80] sm:$0xff]  }
 0x15c   :  { %8551 = vmatpush3.bf16.msra.mxu0 %v9421_v1  ;;  %v80_v1 = vld [vmem:[%s12236_s0 + $0x168] sm:$0xff] }
 0x15d   :  { %8573 = vmatpush3.bf16.msra.mxu1 %v9422_v2  ;;  %8552 = vmatprep.subr.bf16.mxu0 %v9423_v3  ;;  %v160_v3 = vcvt.s32.f32 %v80_v1  ;;  %v85_v1 = vld [vmem:[%s12236_s0 + $0x190] sm:$0xff] }
 0x15e   :  { %8574 = vmatprep.subr.bf16.mxu1 %v9424_v4  ;;  %v82_v4 = vld [vmem:[%s12236_s0 + $0x178] sm:$0xff] }
 0x15f   :  { %v162_v9 = vcvt.s32.f32 %v82_v4  ;;  %v240_v15 = vpack.c.bf16 %v160_v3, %v160_v3  ;;  %v165_v3 = vcvt.s32.f32 %v85_v1  ;;  %v9491_v4 = vld [vmem:[%s12235_s1 + $0xd78] sm:$0xff]  }
 0x160   :  { %8553 = vmatpush3.bf16.msra.mxu0 %v9425_v7 }
 0x161   :  { %8575 = vmatpush3.bf16.msra.mxu1 %v9426_v8  ;;  %8582 = vmatprep.subr.bf16.mxu0 %v9427_v21  ;;  %v242_v19 = vpack.c.bf16 %v162_v9, %v162_v9 }
 0x162   :  { %8604 = vmatprep.subr.bf16.mxu1 %v9428_v26 }
 0x163   :  { %v8290_v5 = vpop.f32.mrf.mxu0  ;;  %6216 = vmatmul.mubr.bf16.vlgmr.msra.gmra.mxu0 %v235_v28  ;;  %v9464_v28 = vld [vmem:[%s12235_s1 + $0xcf0] sm:$0xff]  }
 0x164   :  { %v8312_v6 = vpop.f32.mrf.mxu1  ;;  %6256 = vmatmul.mubr.bf16.vlgmr.msra.gmra.mxu1 %v237_v29  ;;  %8583 = vmatpush3.bf16.msra.mxu0 %v9429_v30  ;;  %v9465_v29 = vld [vmem:[%s12235_s1 + $0xc30] sm:$0xff]  }
 0x165   :  { %v8291_v11 = vpop.f32.mrf.mxu0  ;;  %8605 = vmatpush3.bf16.msra.mxu1 %v9430_v33  ;;  %8584 = vmatprep.subr.bf16.mxu0 %v9431_v35  ;;  %v9466_v30 = vld [vmem:[%s12235_s1 + $0xcb0] sm:$0xff]   ;;  %v9469_v33 = vld [vmem:[%s12235_s1 + $0xc28] sm:$0xff]   ;;  %v9471_v35 = vld [vmem:[%s12235_s1 + $0xc60] sm:$0xff]  }
 0x166   :  { %v8313_v12 = vpop.f32.mrf.mxu1  ;;  %v8292_v17 = vadd.f32 %v8291_v11, %v8290_v5  ;;  %8606 = vmatprep.subr.bf16.mxu1 %v9432_v36  ;;  %v79_v5 = vld [vmem:[%s12236_s0 + $0x160] sm:$0xff]  ;;  %6295 = vmatprep.mubr.bf16.mxu0 %v240_v15 }
 0x167   :  { %v8314_v18 = vadd.f32 %v8313_v12, %v8312_v6  ;;  %v8293_v23 = vpop.f32.mrf.mxu0  ;;  %v81_v6 = vld [vmem:[%s12236_s0 + $0x170] sm:$0xff]  ;;  %v159_v10 = vcvt.s32.f32 %v79_v5  ;;  %v9459_v12 = vld [vmem:[%s12235_s1 + $0xc78] sm:$0xff]   ;;  %6335 = vmatprep.mubr.bf16.mxu1 %v242_v19  ;;  %v9472_v36 = vld [vmem:[%s12235_s1 + $0xce0] sm:$0xff]  }
 0x168   :  { %v8315_v22 = vpop.f32.mrf.mxu1  ;;  %v5738_v27 = vadd.f32 %v8292_v17, %v10880_v42  ;;  %8585 = vmatpush3.bf16.msra.mxu0 %v9433_v37  ;;  %v9438_v42 = vld [vmem:[%s12235_s1 + $0xba8] sm:$0xff]   ;;  %v161_v11 = vcvt.s32.f32 %v81_v6  ;;  %v9473_v37 = vld [vmem:[%s12235_s1 + $0xc20] sm:$0xff]   ;;  %v9495_v19 = vld [vmem:[%s12235_s1 + $0xd70] sm:$0xff]  }
 0x169   :  { %v8294_v32 = vpop.f32.mrf.mxu0  ;;  %8607 = vmatpush3.bf16.msra.mxu1 %v9434_v38  ;;  %8586 = vmatprep.subr.bf16.mxu0 %v9435_v39  ;;  %v239_v20 = vpack.c.bf16 %v159_v10, %v159_v10  ;;  %v9461_v22 = vld [vmem:[%s12235_s1 + $0xc38] sm:$0xff]   ;;  %v9474_v38 = vld [vmem:[%s12235_s1 + $0xca0] sm:$0xff]  }
 0x16a   :  { %v8316_v31 = vpop.f32.mrf.mxu1  ;;  %v10991_v34 = vadd.f32 %v8314_v18, %v5738_v27  ;;  %8608 = vmatprep.subr.bf16.mxu1 %v9436_v40  ;;  %v241_v21 = vpack.c.bf16 %v161_v11, %v161_v11  ;;  %v9463_v27 = vld [vmem:[%s12235_s1 + $0xc70] sm:$0xff]   ;;  %v9468_v32 = vld [vmem:[%s12235_s1 + $0xce8] sm:$0xff]   ;;  %v9475_v39 = vld [vmem:[%s12235_s1 + $0xc58] sm:$0xff]  }
 0x16b   :  { %v9467_v31 = vld [vmem:[%s12235_s1 + $0xc68] sm:$0xff]   ;;  %v9476_v40 = vld [vmem:[%s12235_s1 + $0xcd8] sm:$0xff]  }
 0x16c   :  { %8587 = vmatpush3.bf16.msra.mxu0 %v9437_v41  ;;  %v9477_v41 = vld [vmem:[%s12235_s1 + $0xc18] sm:$0xff]  }
 0x16d   :  { %8609 = vmatpush3.bf16.msra.mxu1 %v9438_v42  ;;  %8588 = vmatprep.subr.bf16.mxu0 %v9439_v43  ;;  %v9478_v42 = vld [vmem:[%s12235_s1 + $0xc98] sm:$0xff]   ;;  %v9479_v43 = vld [vmem:[%s12235_s1 + $0xc50] sm:$0xff]  }
 0x16e   :  { %8610 = vmatprep.subr.bf16.mxu1 %v9440_v44  ;;  %v9480_v44 = vld [vmem:[%s12235_s1 + $0xcd0] sm:$0xff]   ;;  %v9492_v11 = vld [vmem:[%s12235_s1 + $0xdf8] sm:$0xff]  }
 0x170   :  { %8589 = vmatpush3.bf16.msra.mxu0 %v9441_v45  ;;  %v9481_v45 = vld [vmem:[%s12235_s1 + $0xc10] sm:$0xff]  }
 0x171   :  { %8611 = vmatpush3.bf16.msra.mxu1 %v9442_v46  ;;  %8590 = vmatprep.subr.bf16.mxu0 %v9443_v47  ;;  %v9482_v46 = vld [vmem:[%s12235_s1 + $0xc90] sm:$0xff]   ;;  %v9483_v47 = vld [vmem:[%s12235_s1 + $0xc48] sm:$0xff]  }
 0x172   :  { %8612 = vmatprep.subr.bf16.mxu1 %v9444_v48  ;;  %v9484_v48 = vld [vmem:[%s12235_s1 + $0xcc8] sm:$0xff]  }
 0x174   :  { %8591 = vmatpush3.bf16.msra.mxu0 %v9445_v49  ;;  %v9485_v49 = vld [vmem:[%s12235_s1 + $0xc08] sm:$0xff]  }
 0x175   :  { %8613 = vmatpush3.bf16.msra.mxu1 %v9446_v50  ;;  %8592 = vmatprep.subr.bf16.mxu0 %v9447_v51  ;;  %v9486_v50 = vld [vmem:[%s12235_s1 + $0xc88] sm:$0xff]   ;;  %v9487_v51 = vld [vmem:[%s12235_s1 + $0xc40] sm:$0xff]  }
 0x176   :  { %8614 = vmatprep.subr.bf16.mxu1 %v9448_v52  ;;  %v9488_v52 = vld [vmem:[%s12235_s1 + $0xcc0] sm:$0xff]  }
 0x178   :  { %8593 = vmatpush3.bf16.msra.mxu0 %v9449_v53  ;;  %v9489_v53 = vld [vmem:[%s12235_s1 + $0xc00] sm:$0xff]  }
 0x179   :  { %8615 = vmatpush3.bf16.msra.mxu1 %v9450_v54  ;;  %8594 = vmatprep.subr.bf16.mxu0 %v9451_v55 }
 0x17a   :  { %8616 = vmatprep.subr.bf16.mxu1 %v9452_v56  ;;  %v9490_v56 = vld [vmem:[%s12235_s1 + $0xc80] sm:$0xff]  }
 0x17c   :  { %8595 = vmatpush3.bf16.msra.mxu0 %v9453_v57  ;;  %v84_v57 = vld [vmem:[%s12236_s0 + $0x188] sm:$0xff] }
 0x17d   :  { %8617 = vmatpush3.bf16.msra.mxu1 %v9454_v58  ;;  %8596 = vmatprep.subr.bf16.mxu0 %v9455_v59  ;;  %v86_v58 = vld [vmem:[%s12236_s0 + $0x198] sm:$0xff]  ;;  %v83_v59 = vld [vmem:[%s12236_s0 + $0x180] sm:$0xff] }
 0x17e   :  { %8618 = vmatprep.subr.bf16.mxu1 %v9456_v60 }
 0x180   :  { %8597 = vmatpush3.bf16.msra.mxu0 %v9457_v62  ;;  %v164_v62 = vcvt.s32.f32 %v84_v57 }
 0x181   :  { %8619 = vmatpush3.bf16.msra.mxu1 %v9458_v0  ;;  %8626 = vmatprep.subr.bf16.mxu0 %v9459_v12  ;;  %v163_v0 = vcvt.s32.f32 %v83_v59 }
 0x182   :  { %8648 = vmatprep.subr.bf16.mxu1 %v9460_v16 }
 0x183   :  { %v8334_v61 = vpop.f32.mrf.mxu0  ;;  %6296 = vmatmul.mubr.bf16.vlgmr.msra.gmra.mxu0 %v239_v20  ;;  %v243_v10 = vpack.c.bf16 %v163_v0, %v163_v0  ;;  %v9496_v20 = vld [vmem:[%s12235_s1 + $0xdf0] sm:$0xff]  }
 0x184   :  { %v8356_v63 = vpop.f32.mrf.mxu1  ;;  %6336 = vmatmul.mubr.bf16.vlgmr.msra.gmra.mxu1 %v241_v21  ;;  %8627 = vmatpush3.bf16.msra.mxu0 %v9461_v22  ;;  %v9497_v21 = vld [vmem:[%s12235_s1 + $0xd30] sm:$0xff]  }
 0x185   :  { %v8335_v2 = vpop.f32.mrf.mxu0  ;;  %8649 = vmatpush3.bf16.msra.mxu1 %v9462_v24  ;;  %8628 = vmatprep.subr.bf16.mxu0 %v9463_v27  ;;  %v9498_v22 = vld [vmem:[%s12235_s1 + $0xdb0] sm:$0xff]   ;;  %v9500_v24 = vld [vmem:[%s12235_s1 + $0xde8] sm:$0xff]   ;;  %v9503_v27 = vld [vmem:[%s12235_s1 + $0xd60] sm:$0xff]  }
 0x186   :  { %v8336_v7 = vadd.f32 %v8335_v2, %v8334_v61  ;;  %v8357_v8 = vpop.f32.mrf.mxu1  ;;  %8650 = vmatprep.subr.bf16.mxu1 %v9464_v28  ;;  %v9504_v28 = vld [vmem:[%s12235_s1 + $0xde0] sm:$0xff]  }
 0x187   :  { %v8358_v13 = vadd.f32 %v8357_v8, %v8356_v63  ;;  %v8337_v14 = vpop.f32.mrf.mxu0  ;;  %v166_v63 = vcvt.s32.f32 %v86_v58  ;;  %v244_v8 = vpack.c.bf16 %v164_v62, %v164_v62 }
 0x188   :  { %v5818_v17 = vadd.f32 %v8336_v7, %v10991_v34  ;;  %v8359_v18 = vpop.f32.mrf.mxu1  ;;  %8629 = vmatpush3.bf16.msra.mxu0 %v9465_v29  ;;  %v9470_v34 = vld [vmem:[%s12235_s1 + $0xca8] sm:$0xff]   ;;  %v9493_v14 = vld [vmem:[%s12235_s1 + $0xd38] sm:$0xff]   ;;  %v9505_v29 = vld [vmem:[%s12235_s1 + $0xd20] sm:$0xff]  }
 0x189   :  { %v8338_v23 = vpop.f32.mrf.mxu0  ;;  %8651 = vmatpush3.bf16.msra.mxu1 %v9466_v30  ;;  %8630 = vmatprep.subr.bf16.mxu0 %v9467_v31  ;;  %v246_v9 = vpack.c.bf16 %v166_v63, %v166_v63  ;;  %v9506_v30 = vld [vmem:[%s12235_s1 + $0xda0] sm:$0xff]   ;;  %v9507_v31 = vld [vmem:[%s12235_s1 + $0xd58] sm:$0xff]  }
 0x18a   :  { %v11102_v25 = vadd.f32 %v8358_v13, %v5818_v17  ;;  %v8360_v26 = vpop.f32.mrf.mxu1  ;;  %8652 = vmatprep.subr.bf16.mxu1 %v9468_v32  ;;  %v245_v13 = vpack.c.bf16 %v165_v3, %v165_v3  ;;  %6375 = vmatprep.mubr.bf16.mxu0 %v244_v8  ;;  %v9494_v17 = vld [vmem:[%s12235_s1 + $0xdb8] sm:$0xff]   ;;  %v9499_v23 = vld [vmem:[%s12235_s1 + $0xd68] sm:$0xff]  }
 0x18b   :  { %6415 = vmatprep.mubr.bf16.mxu1 %v246_v9  ;;  %v9502_v26 = vld [vmem:[%s12235_s1 + $0xda8] sm:$0xff]   ;;  %v9508_v32 = vld [vmem:[%s12235_s1 + $0xdd8] sm:$0xff]  }
 0x18c   :  { %8631 = vmatpush3.bf16.msra.mxu0 %v9469_v33  ;;  %v9509_v33 = vld [vmem:[%s12235_s1 + $0xd18] sm:$0xff]  }
 0x18d   :  { %8653 = vmatpush3.bf16.msra.mxu1 %v9470_v34  ;;  %8632 = vmatprep.subr.bf16.mxu0 %v9471_v35  ;;  %v9510_v34 = vld [vmem:[%s12235_s1 + $0xd98] sm:$0xff]   ;;  %v9511_v35 = vld [vmem:[%s12235_s1 + $0xd50] sm:$0xff]  }
 0x18e   :  { %8654 = vmatprep.subr.bf16.mxu1 %v9472_v36  ;;  %v9512_v36 = vld [vmem:[%s12235_s1 + $0xdd0] sm:$0xff]   ;;  %v9526_v9 = vld [vmem:[%s12235_s1 + $0xeb8] sm:$0xff]  }
 0x190   :  { %8633 = vmatpush3.bf16.msra.mxu0 %v9473_v37  ;;  %v9513_v37 = vld [vmem:[%s12235_s1 + $0xd10] sm:$0xff]  }
 0x191   :  { %8655 = vmatpush3.bf16.msra.mxu1 %v9474_v38  ;;  %8634 = vmatprep.subr.bf16.mxu0 %v9475_v39  ;;  %v9514_v38 = vld [vmem:[%s12235_s1 + $0xd90] sm:$0xff]   ;;  %v9515_v39 = vld [vmem:[%s12235_s1 + $0xd48] sm:$0xff]  }
 0x192   :  { %8656 = vmatprep.subr.bf16.mxu1 %v9476_v40  ;;  %v9516_v40 = vld [vmem:[%s12235_s1 + $0xdc8] sm:$0xff]  }
 0x194   :  { %8635 = vmatpush3.bf16.msra.mxu0 %v9477_v41  ;;  %v9517_v41 = vld [vmem:[%s12235_s1 + $0xd08] sm:$0xff]  }
 0x195   :  { %8657 = vmatpush3.bf16.msra.mxu1 %v9478_v42  ;;  %8636 = vmatprep.subr.bf16.mxu0 %v9479_v43  ;;  %v9518_v42 = vld [vmem:[%s12235_s1 + $0xd88] sm:$0xff]   ;;  %v9519_v43 = vld [vmem:[%s12235_s1 + $0xd40] sm:$0xff]  }
 0x196   :  { %8658 = vmatprep.subr.bf16.mxu1 %v9480_v44  ;;  %v9520_v44 = vld [vmem:[%s12235_s1 + $0xdc0] sm:$0xff]  }
 0x198   :  { %8637 = vmatpush3.bf16.msra.mxu0 %v9481_v45 }
 0x199   :  { %8659 = vmatpush3.bf16.msra.mxu1 %v9482_v46  ;;  %8638 = vmatprep.subr.bf16.mxu0 %v9483_v47  ;;  %v9521_v47 = vld [vmem:[%s12235_s1 + $0xd00] sm:$0xff]  }
 0x19a   :  { %8660 = vmatprep.subr.bf16.mxu1 %v9484_v48  ;;  %v9522_v48 = vld [vmem:[%s12235_s1 + $0xd80] sm:$0xff]  }
 0x19c   :  { %8639 = vmatpush3.bf16.msra.mxu0 %v9485_v49  ;;  %v88_v49 = vld [vmem:[%s12236_s0 + $0x1a8] sm:$0xff] }
 0x19d   :  { %8661 = vmatpush3.bf16.msra.mxu1 %v9486_v50  ;;  %8640 = vmatprep.subr.bf16.mxu0 %v9487_v51  ;;  %v90_v50 = vld [vmem:[%s12236_s0 + $0x1b8] sm:$0xff] }
 0x19e   :  { %8662 = vmatprep.subr.bf16.mxu1 %v9488_v52 }
 0x1a0   :  { %8641 = vmatpush3.bf16.msra.mxu0 %v9489_v53  ;;  %v168_v53 = vcvt.s32.f32 %v88_v49 }
 0x1a1   :  { %8663 = vmatpush3.bf16.msra.mxu1 %v9490_v56  ;;  %8670 = vmatprep.subr.bf16.mxu0 %v9491_v4  ;;  %v89_v56 = vld [vmem:[%s12236_s0 + $0x1b0] sm:$0xff] }
 0x1a2   :  { %8692 = vmatprep.subr.bf16.mxu1 %v9492_v11  ;;  %v248_v0 = vpack.c.bf16 %v168_v53, %v168_v53  ;;  %v9527_v11 = vld [vmem:[%s12235_s1 + $0xe70] sm:$0xff]  }
 0x1a3   :  { %v8378_v54 = vpop.f32.mrf.mxu0  ;;  %6376 = vmatmul.mubr.bf16.vlgmr.msra.gmra.mxu0 %v243_v10 }
 0x1a4   :  { %v8400_v55 = vpop.f32.mrf.mxu1  ;;  %6416 = vmatmul.mubr.bf16.vlgmr.msra.gmra.mxu1 %v245_v13  ;;  %8671 = vmatpush3.bf16.msra.mxu0 %v9493_v14  ;;  %v9529_v13 = vld [vmem:[%s12235_s1 + $0xe30] sm:$0xff]  }
 0x1a5   :  { %v8379_v60 = vpop.f32.mrf.mxu0  ;;  %8693 = vmatpush3.bf16.msra.mxu1 %v9494_v17  ;;  %8672 = vmatprep.subr.bf16.mxu0 %v9495_v19  ;;  %v9530_v14 = vld [vmem:[%s12235_s1 + $0xeb0] sm:$0xff]   ;;  %v9533_v17 = vld [vmem:[%s12235_s1 + $0xe28] sm:$0xff]   ;;  %v9535_v19 = vld [vmem:[%s12235_s1 + $0xe60] sm:$0xff]  }
 0x1a6   :  { %v8401_v61 = vpop.f32.mrf.mxu1  ;;  %v8380_v2 = vadd.f32 %v8379_v60, %v8378_v54  ;;  %8694 = vmatprep.subr.bf16.mxu1 %v9496_v20  ;;  %v170_v54 = vcvt.s32.f32 %v90_v50  ;;  %v169_v60 = vcvt.s32.f32 %v89_v56  ;;  %6455 = vmatprep.mubr.bf16.mxu0 %v248_v0  ;;  %v9536_v20 = vld [vmem:[%s12235_s1 + $0xee0] sm:$0xff]   ;;  %v9556_v56 = vld [vmem:[%s12235_s1 + $0xff8] sm:$0xff]  }
 0x1a7   :  { %v8402_v5 = vadd.f32 %v8401_v61, %v8400_v55  ;;  %v8381_v7 = vpop.f32.mrf.mxu0  ;;  %v87_v55 = vld [vmem:[%s12236_s0 + $0x1a0] sm:$0xff]  ;;  %v9523_v61 = vld [vmem:[%s12235_s1 + $0xe78] sm:$0xff]  }
 0x1a8   :  { %v8403_v6 = vpop.f32.mrf.mxu1  ;;  %v5898_v12 = vadd.f32 %v8380_v2, %v11102_v25  ;;  %8673 = vmatpush3.bf16.msra.mxu0 %v9497_v21  ;;  %v9501_v25 = vld [vmem:[%s12235_s1 + $0xd28] sm:$0xff]   ;;  %v167_v59 = vcvt.s32.f32 %v87_v55  ;;  %v250_v1 = vpack.c.bf16 %v170_v54, %v170_v54  ;;  %v9524_v2 = vld [vmem:[%s12235_s1 + $0xef8] sm:$0xff]   ;;  %v9537_v21 = vld [vmem:[%s12235_s1 + $0xe20] sm:$0xff]  }
 0x1a9   :  { %v8382_v16 = vpop.f32.mrf.mxu0  ;;  %8695 = vmatpush3.bf16.msra.mxu1 %v9498_v22  ;;  %8674 = vmatprep.subr.bf16.mxu0 %v9499_v23  ;;  %v9525_v6 = vld [vmem:[%s12235_s1 + $0xe38] sm:$0xff]   ;;  %v9538_v22 = vld [vmem:[%s12235_s1 + $0xea0] sm:$0xff]  }
 0x1aa   :  { %v8404_v15 = vpop.f32.mrf.mxu1  ;;  %v11213_v18 = vadd.f32 %v8402_v5, %v5898_v12  ;;  %8696 = vmatprep.subr.bf16.mxu1 %v9500_v24  ;;  %v247_v4 = vpack.c.bf16 %v167_v59, %v167_v59  ;;  %v249_v5 = vpack.c.bf16 %v169_v60, %v169_v60  ;;  %6495 = vmatprep.mubr.bf16.mxu1 %v250_v1  ;;  %v9528_v12 = vld [vmem:[%s12235_s1 + $0xef0] sm:$0xff]   ;;  %v9532_v16 = vld [vmem:[%s12235_s1 + $0xee8] sm:$0xff]   ;;  %v9539_v23 = vld [vmem:[%s12235_s1 + $0xe58] sm:$0xff]  }
 0x1ab   :  { %v9531_v15 = vld [vmem:[%s12235_s1 + $0xe68] sm:$0xff]   ;;  %v9540_v24 = vld [vmem:[%s12235_s1 + $0xed8] sm:$0xff]  }
 0x1ac   :  { %8675 = vmatpush3.bf16.msra.mxu0 %v9501_v25  ;;  %v9541_v25 = vld [vmem:[%s12235_s1 + $0xe18] sm:$0xff]  }
 0x1ad   :  { %8697 = vmatpush3.bf16.msra.mxu1 %v9502_v26  ;;  %8676 = vmatprep.subr.bf16.mxu0 %v9503_v27  ;;  %v9542_v26 = vld [vmem:[%s12235_s1 + $0xe98] sm:$0xff]   ;;  %v9543_v27 = vld [vmem:[%s12235_s1 + $0xe50] sm:$0xff]  }
 0x1ae   :  { %8698 = vmatprep.subr.bf16.mxu1 %v9504_v28  ;;  %v9544_v28 = vld [vmem:[%s12235_s1 + $0xed0] sm:$0xff]   ;;  %v9558_v0 = vld [vmem:[%s12235_s1 + $0xfb8] sm:$0xff]  }
 0x1b0   :  { %8677 = vmatpush3.bf16.msra.mxu0 %v9505_v29  ;;  %v9545_v29 = vld [vmem:[%s12235_s1 + $0xe10] sm:$0xff]  }
 0x1b1   :  { %8699 = vmatpush3.bf16.msra.mxu1 %v9506_v30  ;;  %8678 = vmatprep.subr.bf16.mxu0 %v9507_v31  ;;  %v9546_v30 = vld [vmem:[%s12235_s1 + $0xe90] sm:$0xff]   ;;  %v9547_v31 = vld [vmem:[%s12235_s1 + $0xe48] sm:$0xff]  }
 0x1b2   :  { %8700 = vmatprep.subr.bf16.mxu1 %v9508_v32  ;;  %v9548_v32 = vld [vmem:[%s12235_s1 + $0xec8] sm:$0xff]  }
 0x1b4   :  { %8679 = vmatpush3.bf16.msra.mxu0 %v9509_v33  ;;  %v9549_v33 = vld [vmem:[%s12235_s1 + $0xe08] sm:$0xff]  }
 0x1b5   :  { %8701 = vmatpush3.bf16.msra.mxu1 %v9510_v34  ;;  %8680 = vmatprep.subr.bf16.mxu0 %v9511_v35  ;;  %v9550_v34 = vld [vmem:[%s12235_s1 + $0xe88] sm:$0xff]   ;;  %v9551_v35 = vld [vmem:[%s12235_s1 + $0xe40] sm:$0xff]  }
 0x1b6   :  { %8702 = vmatprep.subr.bf16.mxu1 %v9512_v36  ;;  %v9552_v36 = vld [vmem:[%s12235_s1 + $0xec0] sm:$0xff]  }
 0x1b8   :  { %8681 = vmatpush3.bf16.msra.mxu0 %v9513_v37 }
 0x1b9   :  { %8703 = vmatpush3.bf16.msra.mxu1 %v9514_v38  ;;  %8682 = vmatprep.subr.bf16.mxu0 %v9515_v39  ;;  %v9553_v38 = vld [vmem:[%s12235_s1 + $0xe00] sm:$0xff]  }
 0x1ba   :  { %8704 = vmatprep.subr.bf16.mxu1 %v9516_v40  ;;  %v9554_v40 = vld [vmem:[%s12235_s1 + $0xe80] sm:$0xff]  }
 0x1bc   :  { %8683 = vmatpush3.bf16.msra.mxu0 %v9517_v41  ;;  %v92_v41 = vld [vmem:[%s12236_s0 + $0x1c8] sm:$0xff] }
 0x1bd   :  { %8705 = vmatpush3.bf16.msra.mxu1 %v9518_v42  ;;  %8684 = vmatprep.subr.bf16.mxu0 %v9519_v43  ;;  %v172_v43 = vcvt.s32.f32 %v92_v41 }
 0x1be   :  { %8706 = vmatprep.subr.bf16.mxu1 %v9520_v44  ;;  %v94_v44 = vld [vmem:[%s12236_s0 + $0x1d8] sm:$0xff] }
 0x1bf   :  { %v174_v49 = vcvt.s32.f32 %v94_v44  ;;  %v252_v55 = vpack.c.bf16 %v172_v43, %v172_v43 }
 0x1c0   :  { %8685 = vmatpush3.bf16.msra.mxu0 %v9521_v47 }
 0x1c1   :  { %8707 = vmatpush3.bf16.msra.mxu1 %v9522_v48  ;;  %8714 = vmatprep.subr.bf16.mxu0 %v9523_v61  ;;  %v254_v59 = vpack.c.bf16 %v174_v49, %v174_v49 }
 0x1c2   :  { %8736 = vmatprep.subr.bf16.mxu1 %v9524_v2 }
 0x1c3   :  { %v8422_v45 = vpop.f32.mrf.mxu0  ;;  %6456 = vmatmul.mubr.bf16.vlgmr.msra.gmra.mxu0 %v247_v4  ;;  %v9560_v4 = vld [vmem:[%s12235_s1 + $0xff0] sm:$0xff]  }
 0x1c4   :  { %v8444_v46 = vpop.f32.mrf.mxu1  ;;  %6496 = vmatmul.mubr.bf16.vlgmr.msra.gmra.mxu1 %v249_v5  ;;  %8715 = vmatpush3.bf16.msra.mxu0 %v9525_v6  ;;  %v9561_v5 = vld [vmem:[%s12235_s1 + $0xf30] sm:$0xff]  }
 0x1c5   :  { %v8423_v51 = vpop.f32.mrf.mxu0  ;;  %8737 = vmatpush3.bf16.msra.mxu1 %v9526_v9  ;;  %8716 = vmatprep.subr.bf16.mxu0 %v9527_v11  ;;  %v9562_v6 = vld [vmem:[%s12235_s1 + $0xfb0] sm:$0xff]   ;;  %v9565_v9 = vld [vmem:[%s12235_s1 + $0xf28] sm:$0xff]   ;;  %v9715_v11 = vmov 0  }
 0x1c6   :  { %v8445_v52 = vpop.f32.mrf.mxu1  ;;  %v8424_v57 = vadd.f32 %v8423_v51, %v8422_v45  ;;  %8738 = vmatprep.subr.bf16.mxu1 %v9528_v12  ;;  %v91_v45 = vld [vmem:[%s12236_s0 + $0x1c0] sm:$0xff]  ;;  %6535 = vmatprep.mubr.bf16.mxu0 %v252_v55  ;;  %v9589_v55 = vld [vmem:[%s12235_s1 + $0x1038] sm:$0xff]  }
 0x1c7   :  { %v8446_v58 = vadd.f32 %v8445_v52, %v8444_v46  ;;  %v8425_v63 = vpop.f32.mrf.mxu0  ;;  %v93_v46 = vld [vmem:[%s12236_s0 + $0x1d0] sm:$0xff]  ;;  %v171_v50 = vcvt.s32.f32 %v91_v45  ;;  %v9555_v52 = vld [vmem:[%s12235_s1 + $0xf78] sm:$0xff]   ;;  %6575 = vmatprep.mubr.bf16.mxu1 %v254_v59  ;;  %9061 = vset.pattern.permute.xlu0 %v9715_v11  ;;  %v9567_v12 = vld [vmem:[%s12235_s1 + $0xf60] sm:$0xff]  }
 0x1c8   :  { %v8447_v62 = vpop.f32.mrf.mxu1  ;;  %v5978_v3 = vadd.f32 %v8424_v57, %v11213_v18  ;;  %8717 = vmatpush3.bf16.msra.mxu0 %v9529_v13  ;;  %v9534_v18 = vld [vmem:[%s12235_s1 + $0xea8] sm:$0xff]   ;;  %v173_v51 = vcvt.s32.f32 %v93_v46  ;;  %v9568_v13 = vld [vmem:[%s12235_s1 + $0xfe0] sm:$0xff]   ;;  %v9587_v45 = vld [vmem:[%s12235_s1 + $0x1078] sm:$0xff]  }
 0x1c9   :  { %v8426_v8 = vpop.f32.mrf.mxu0  ;;  %8739 = vmatpush3.bf16.msra.mxu1 %v9530_v14  ;;  %8718 = vmatprep.subr.bf16.mxu0 %v9531_v15  ;;  %v251_v60 = vpack.c.bf16 %v171_v50, %v171_v50  ;;  %v9557_v62 = vld [vmem:[%s12235_s1 + $0xf38] sm:$0xff]   ;;  %v9569_v14 = vld [vmem:[%s12235_s1 + $0xf20] sm:$0xff]  }
 0x1ca   :  { %v8448_v7 = vpop.f32.mrf.mxu1  ;;  %v11324_v10 = vadd.f32 %v8446_v58, %v5978_v3  ;;  %8740 = vmatprep.subr.bf16.mxu1 %v9532_v16  ;;  %v253_v61 = vpack.c.bf16 %v173_v51, %v173_v51  ;;  %v9559_v3 = vld [vmem:[%s12235_s1 + $0xf70] sm:$0xff]   ;;  %v9564_v8 = vld [vmem:[%s12235_s1 + $0xfe8] sm:$0xff]   ;;  %v9570_v15 = vld [vmem:[%s12235_s1 + $0xfa0] sm:$0xff]  }
 0x1cb   :  { %v9563_v7 = vld [vmem:[%s12235_s1 + $0xf68] sm:$0xff]   ;;  %v9571_v16 = vld [vmem:[%s12235_s1 + $0xf58] sm:$0xff]  }
 0x1cc   :  { %8719 = vmatpush3.bf16.msra.mxu0 %v9533_v17  ;;  %v9572_v17 = vld [vmem:[%s12235_s1 + $0xfd8] sm:$0xff]  }
 0x1cd   :  { %8741 = vmatpush3.bf16.msra.mxu1 %v9534_v18  ;;  %8720 = vmatprep.subr.bf16.mxu0 %v9535_v19  ;;  %v9573_v18 = vld [vmem:[%s12235_s1 + $0xf18] sm:$0xff]  }
 0x1ce   :  { %8742 = vmatprep.subr.bf16.mxu1 %v9536_v20  ;;  %v9574_v19 = vld [vmem:[%s12235_s1 + $0xf98] sm:$0xff]   ;;  %v9575_v20 = vld [vmem:[%s12235_s1 + $0xf50] sm:$0xff]  }
 0x1d0   :  { %8721 = vmatpush3.bf16.msra.mxu0 %v9537_v21  ;;  %v9576_v21 = vld [vmem:[%s12235_s1 + $0xfd0] sm:$0xff]  }
 0x1d1   :  { %8743 = vmatpush3.bf16.msra.mxu1 %v9538_v22  ;;  %8722 = vmatprep.subr.bf16.mxu0 %v9539_v23  ;;  %v9577_v22 = vld [vmem:[%s12235_s1 + $0xf10] sm:$0xff]  }
 0x1d2   :  { %8744 = vmatprep.subr.bf16.mxu1 %v9540_v24  ;;  %v9578_v23 = vld [vmem:[%s12235_s1 + $0xf90] sm:$0xff]   ;;  %v9579_v24 = vld [vmem:[%s12235_s1 + $0xf48] sm:$0xff]  }
 0x1d4   :  { %8723 = vmatpush3.bf16.msra.mxu0 %v9541_v25  ;;  %v9580_v25 = vld [vmem:[%s12235_s1 + $0xfc8] sm:$0xff]  }
 0x1d5   :  { %8745 = vmatpush3.bf16.msra.mxu1 %v9542_v26  ;;  %8724 = vmatprep.subr.bf16.mxu0 %v9543_v27  ;;  %v9581_v26 = vld [vmem:[%s12235_s1 + $0xf08] sm:$0xff]  }
 0x1d6   :  { %8746 = vmatprep.subr.bf16.mxu1 %v9544_v28  ;;  %v9582_v27 = vld [vmem:[%s12235_s1 + $0xf88] sm:$0xff]   ;;  %v9583_v28 = vld [vmem:[%s12235_s1 + $0xf40] sm:$0xff]  }
 0x1d8   :  { %8725 = vmatpush3.bf16.msra.mxu0 %v9545_v29  ;;  %v9584_v29 = vld [vmem:[%s12235_s1 + $0xfc0] sm:$0xff]  }
 0x1d9   :  { %8747 = vmatpush3.bf16.msra.mxu1 %v9546_v30  ;;  %8726 = vmatprep.subr.bf16.mxu0 %v9547_v31  ;;  %v9585_v30 = vld [vmem:[%s12235_s1 + $0xf00] sm:$0xff]  }
 0x1da   :  { %8748 = vmatprep.subr.bf16.mxu1 %v9548_v32 }
 0x1dc   :  { %8727 = vmatpush3.bf16.msra.mxu0 %v9549_v33  ;;  %v9586_v33 = vld [vmem:[%s12235_s1 + $0xf80] sm:$0xff]  }
 0x1dd   :  { %8749 = vmatpush3.bf16.msra.mxu1 %v9550_v34  ;;  %8728 = vmatprep.subr.bf16.mxu0 %v9551_v35  ;;  %v96_v34 = vld [vmem:[%s12236_s0 + $0x1e8] sm:$0xff]  ;;  %v98_v35 = vld [vmem:[%s12236_s0 + $0x1f8] sm:$0xff] }
 0x1de   :  { %8750 = vmatprep.subr.bf16.mxu1 %v9552_v36  ;;  %v95_v36 = vld [vmem:[%s12236_s0 + $0x1e0] sm:$0xff] }
 0x1df   :  { %v175_v41 = vcvt.s32.f32 %v95_v36 }
 0x1e0   :  { %8729 = vmatpush3.bf16.msra.mxu0 %v9553_v38 }
 0x1e1   :  { %8751 = vmatpush3.bf16.msra.mxu1 %v9554_v40  ;;  %8758 = vmatprep.subr.bf16.mxu0 %v9555_v52  ;;  %v178_v40 = vcvt.s32.f32 %v98_v35  ;;  %v255_v51 = vpack.c.bf16 %v175_v41, %v175_v41  ;;  %v9588_v52 = vld [vmem:[%s12235_s1 + $0x10f8] sm:$0xff]   ;;  %v101_v35 = vld [vmem:[%s12236_s0 + $0x210] sm:$0xff] }
 0x1e2   :  { %8780 = vmatprep.subr.bf16.mxu1 %v9556_v56 }
 0x1e3   :  { %v8466_v37 = vpop.f32.mrf.mxu0  ;;  %6536 = vmatmul.mubr.bf16.vlgmr.msra.gmra.mxu0 %v251_v60  ;;  %v258_v50 = vpack.c.bf16 %v178_v40, %v178_v40  ;;  %v9591_v60 = vld [vmem:[%s12235_s1 + $0x1070] sm:$0xff]   ;;  %v9619_v40 = vld [vmem:[%s12235_s1 + $0x1178] sm:$0xff]  }
 0x1e4   :  { %v8488_v39 = vpop.f32.mrf.mxu1  ;;  %6576 = vmatmul.mubr.bf16.vlgmr.msra.gmra.mxu1 %v253_v61  ;;  %8759 = vmatpush3.bf16.msra.mxu0 %v9557_v62  ;;  %v9592_v61 = vld [vmem:[%s12235_s1 + $0x10f0] sm:$0xff]  }
 0x1e5   :  { %v8467_v42 = vpop.f32.mrf.mxu0  ;;  %8781 = vmatpush3.bf16.msra.mxu1 %v9558_v0  ;;  %8760 = vmatprep.subr.bf16.mxu0 %v9559_v3  ;;  %v9593_v62 = vld [vmem:[%s12235_s1 + $0x1030] sm:$0xff]   ;;  %v9595_v0 = vld [vmem:[%s12235_s1 + $0x1068] sm:$0xff]  }
 0x1e6   :  { %v8468_v47 = vadd.f32 %v8467_v42, %v8466_v37  ;;  %v8489_v48 = vpop.f32.mrf.mxu1  ;;  %8782 = vmatprep.subr.bf16.mxu1 %v9560_v4  ;;  %v97_v42 = vld [vmem:[%s12236_s0 + $0x1f0] sm:$0xff]  ;;  %6655 = vmatprep.mubr.bf16.mxu1 %v258_v50  ;;  %v9598_v3 = vld [vmem:[%s12235_s1 + $0x10a8] sm:$0xff]   ;;  %v9599_v4 = vld [vmem:[%s12235_s1 + $0x1060] sm:$0xff]  }
 0x1e7   :  { %v8490_v53 = vadd.f32 %v8489_v48, %v8488_v39  ;;  %v8469_v54 = vpop.f32.mrf.mxu0  ;;  %v176_v39 = vcvt.s32.f32 %v96_v34  ;;  %v177_v44 = vcvt.s32.f32 %v97_v42  ;;  %v99_v34 = vld [vmem:[%s12236_s0 + $0x200] sm:$0xff] }
 0x1e8   :  { %v6058_v57 = vadd.f32 %v8468_v47, %v11324_v10  ;;  %v8491_v58 = vpop.f32.mrf.mxu1  ;;  %8761 = vmatpush3.bf16.msra.mxu0 %v9561_v5  ;;  %v9566_v10 = vld [vmem:[%s12235_s1 + $0xfa8] sm:$0xff]   ;;  %v9600_v5 = vld [vmem:[%s12235_s1 + $0x10e0] sm:$0xff]  }
 0x1e9   :  { %v8470_v63 = vpop.f32.mrf.mxu0  ;;  %8783 = vmatpush3.bf16.msra.mxu1 %v9562_v6  ;;  %8762 = vmatprep.subr.bf16.mxu0 %v9563_v7  ;;  %v256_v49 = vpack.c.bf16 %v176_v39, %v176_v39  ;;  %v257_v54 = vpack.c.bf16 %v177_v44, %v177_v44  ;;  %v9590_v58 = vld [vmem:[%s12235_s1 + $0x10b8] sm:$0xff]   ;;  %v9601_v6 = vld [vmem:[%s12235_s1 + $0x1020] sm:$0xff]   ;;  %v181_v39 = vcvt.s32.f32 %v101_v35 }
 0x1ea   :  { %v11435_v1 = vadd.f32 %v8490_v53, %v6058_v57  ;;  %v8492_v2 = vpop.f32.mrf.mxu1  ;;  %8784 = vmatprep.subr.bf16.mxu1 %v9564_v8  ;;  %v9594_v63 = vld [vmem:[%s12235_s1 + $0x10b0] sm:$0xff]   ;;  %v9602_v7 = vld [vmem:[%s12235_s1 + $0x10a0] sm:$0xff]   ;;  %v9603_v8 = vld [vmem:[%s12235_s1 + $0x1058] sm:$0xff]  }
 0x1eb   :  { %6615 = vmatprep.mubr.bf16.mxu0 %v256_v49  ;;  %v9597_v2 = vld [vmem:[%s12235_s1 + $0x1028] sm:$0xff]   ;;  %v9621_v49 = vld [vmem:[%s12235_s1 + $0x1138] sm:$0xff]  }
 0x1ec   :  { %8763 = vmatpush3.bf16.msra.mxu0 %v9565_v9  ;;  %v9604_v9 = vld [vmem:[%s12235_s1 + $0x10d8] sm:$0xff]  }
 0x1ed   :  { %8785 = vmatpush3.bf16.msra.mxu1 %v9566_v10  ;;  %8764 = vmatprep.subr.bf16.mxu0 %v9567_v12  ;;  %v9605_v10 = vld [vmem:[%s12235_s1 + $0x1018] sm:$0xff]  }
 0x1ee   :  { %8786 = vmatprep.subr.bf16.mxu1 %v9568_v13  ;;  %v9606_v12 = vld [vmem:[%s12235_s1 + $0x1098] sm:$0xff]   ;;  %v9607_v13 = vld [vmem:[%s12235_s1 + $0x1050] sm:$0xff]  }
 0x1f0   :  { %8765 = vmatpush3.bf16.msra.mxu0 %v9569_v14  ;;  %v9608_v14 = vld [vmem:[%s12235_s1 + $0x10d0] sm:$0xff]  }
 0x1f1   :  { %8787 = vmatpush3.bf16.msra.mxu1 %v9570_v15  ;;  %8766 = vmatprep.subr.bf16.mxu0 %v9571_v16  ;;  %v9609_v15 = vld [vmem:[%s12235_s1 + $0x1010] sm:$0xff]  }
 0x1f2   :  { %8788 = vmatprep.subr.bf16.mxu1 %v9572_v17  ;;  %v9610_v16 = vld [vmem:[%s12235_s1 + $0x1090] sm:$0xff]   ;;  %v9611_v17 = vld [vmem:[%s12235_s1 + $0x1048] sm:$0xff]  }
 0x1f4   :  { %8767 = vmatpush3.bf16.msra.mxu0 %v9573_v18  ;;  %v9612_v18 = vld [vmem:[%s12235_s1 + $0x10c8] sm:$0xff]  }
 0x1f5   :  { %8789 = vmatpush3.bf16.msra.mxu1 %v9574_v19  ;;  %8768 = vmatprep.subr.bf16.mxu0 %v9575_v20  ;;  %v9613_v19 = vld [vmem:[%s12235_s1 + $0x1008] sm:$0xff]  }
 0x1f6   :  { %8790 = vmatprep.subr.bf16.mxu1 %v9576_v21  ;;  %v9614_v20 = vld [vmem:[%s12235_s1 + $0x1088] sm:$0xff]   ;;  %v9716_v21 = vmov 79  }
 0x1f7   :  { %9063 = vset.pattern.permute.xlu1 %v9716_v21  ;;  %v104_v21 = vld [vmem:[%s12236_s0 + $0x228] sm:$0xff] }
 0x1f8   :  { %8769 = vmatpush3.bf16.msra.mxu0 %v9577_v22  ;;  %v9615_v22 = vld [vmem:[%s12235_s1 + $0x1040] sm:$0xff]  }
 0x1f9   :  { %8791 = vmatpush3.bf16.msra.mxu1 %v9578_v23  ;;  %8770 = vmatprep.subr.bf16.mxu0 %v9579_v24  ;;  %v9616_v23 = vld [vmem:[%s12235_s1 + $0x10c0] sm:$0xff]  }
 0x1fa   :  { %8792 = vmatprep.subr.bf16.mxu1 %v9580_v25 }
 0x1fc   :  { %8771 = vmatpush3.bf16.msra.mxu0 %v9581_v26  ;;  %v9617_v26 = vld [vmem:[%s12235_s1 + $0x1000] sm:$0xff]  }
 0x1fd   :  { %8793 = vmatpush3.bf16.msra.mxu1 %v9582_v27  ;;  %8772 = vmatprep.subr.bf16.mxu0 %v9583_v28  ;;  %v9618_v27 = vld [vmem:[%s12235_s1 + $0x1080] sm:$0xff]   ;;  %v100_v28 = vld [vmem:[%s12236_s0 + $0x208] sm:$0xff] }
 0x1fe   :  { %8794 = vmatprep.subr.bf16.mxu1 %v9584_v29  ;;  %v102_v29 = vld [vmem:[%s12236_s0 + $0x218] sm:$0xff] }
 0x200   :  { %8773 = vmatpush3.bf16.msra.mxu0 %v9585_v30 }
 0x201   :  { %8795 = vmatpush3.bf16.msra.mxu1 %v9586_v33  ;;  %8802 = vmatprep.subr.bf16.mxu0 %v9587_v45  ;;  %v182_v33 = vcvt.s32.f32 %v102_v29  ;;  %v9620_v45 = vld [vmem:[%s12235_s1 + $0x11f8] sm:$0xff]  }
 0x202   :  { %8824 = vmatprep.subr.bf16.mxu1 %v9588_v52  ;;  %v9622_v52 = vld [vmem:[%s12235_s1 + $0x11b8] sm:$0xff]  }
 0x203   :  { %v8510_v31 = vpop.f32.mrf.mxu0  ;;  %6616 = vmatmul.mubr.bf16.vlgmr.msra.gmra.mxu0 %v255_v51  ;;  %v262_v44 = vpack.c.bf16 %v182_v33, %v182_v33 }
 0x204   :  { %v8532_v32 = vpop.f32.mrf.mxu1  ;;  %6656 = vmatmul.mubr.bf16.vlgmr.msra.gmra.mxu1 %v257_v54  ;;  %8803 = vmatpush3.bf16.msra.mxu0 %v9589_v55  ;;  %v9623_v54 = vld [vmem:[%s12235_s1 + $0x1170] sm:$0xff]  }
 0x205   :  { %v8511_v37 = vpop.f32.mrf.mxu0  ;;  %8825 = vmatpush3.bf16.msra.mxu1 %v9590_v58  ;;  %8804 = vmatprep.subr.bf16.mxu0 %v9591_v60  ;;  %v9624_v55 = vld [vmem:[%s12235_s1 + $0x11f0] sm:$0xff]   ;;  %v9627_v58 = vld [vmem:[%s12235_s1 + $0x1168] sm:$0xff]  }
 0x206   :  { %v8533_v38 = vpop.f32.mrf.mxu1  ;;  %v8512_v43 = vadd.f32 %v8511_v37, %v8510_v31  ;;  %8826 = vmatprep.subr.bf16.mxu1 %v9592_v61  ;;  %6735 = vmatprep.mubr.bf16.mxu1 %v262_v44  ;;  %v9629_v60 = vld [vmem:[%s12235_s1 + $0x1128] sm:$0xff]   ;;  %v9654_v44 = vld [vmem:[%s12235_s1 + $0x12b8] sm:$0xff]  }
 0x207   :  { %v8534_v46 = vadd.f32 %v8533_v38, %v8532_v32  ;;  %v8513_v48 = vpop.f32.mrf.mxu0  ;;  %v180_v32 = vcvt.s32.f32 %v100_v28  ;;  %v179_v38 = vcvt.s32.f32 %v99_v34  ;;  %v9630_v61 = vld [vmem:[%s12235_s1 + $0x11a8] sm:$0xff]  }
 0x208   :  { %v8535_v47 = vpop.f32.mrf.mxu1  ;;  %v6138_v53 = vadd.f32 %v8512_v43, %v11435_v1  ;;  %8805 = vmatpush3.bf16.msra.mxu0 %v9593_v62  ;;  %v9596_v1 = vld [vmem:[%s12235_s1 + $0x10e8] sm:$0xff]   ;;  %v261_v48 = vpack.c.bf16 %v181_v39, %v181_v39  ;;  %v9631_v62 = vld [vmem:[%s12235_s1 + $0x1160] sm:$0xff]  }
 0x209   :  { %v8514_v57 = vpop.f32.mrf.mxu0  ;;  %8827 = vmatpush3.bf16.msra.mxu1 %v9594_v63  ;;  %8806 = vmatprep.subr.bf16.mxu0 %v9595_v0  ;;  %v260_v43 = vpack.c.bf16 %v180_v32, %v180_v32  ;;  %v259_v47 = vpack.c.bf16 %v179_v38, %v179_v38  ;;  %v9632_v63 = vld [vmem:[%s12235_s1 + $0x11e0] sm:$0xff]   ;;  %v9651_v32 = vld [vmem:[%s12235_s1 + $0x1278] sm:$0xff]  }
 0x20a   :  { %v8536_v56 = vpop.f32.mrf.mxu1  ;;  %v11547_v59 = vadd.f32 %v8534_v46, %v6138_v53  ;;  %8828 = vmatprep.subr.bf16.mxu1 %v9596_v1  ;;  %v9626_v57 = vld [vmem:[%s12235_s1 + $0x11b0] sm:$0xff]   ;;  %v9633_v0 = vld [vmem:[%s12235_s1 + $0x1120] sm:$0xff]  }
 0x20b   :  { %6695 = vmatprep.mubr.bf16.mxu0 %v260_v43  ;;  %v9625_v56 = vld [vmem:[%s12235_s1 + $0x1130] sm:$0xff]   ;;  %v9634_v1 = vld [vmem:[%s12235_s1 + $0x11a0] sm:$0xff]  }
 0x20c   :  { %8807 = vmatpush3.bf16.msra.mxu0 %v9597_v2  ;;  %v9635_v2 = vld [vmem:[%s12235_s1 + $0x1158] sm:$0xff]  }
 0x20d   :  { %8829 = vmatpush3.bf16.msra.mxu1 %v9598_v3  ;;  %8808 = vmatprep.subr.bf16.mxu0 %v9599_v4  ;;  %v9636_v3 = vld [vmem:[%s12235_s1 + $0x11d8] sm:$0xff]  }
 0x20e   :  { %8830 = vmatprep.subr.bf16.mxu1 %v9600_v5  ;;  %v9637_v4 = vld [vmem:[%s12235_s1 + $0x1118] sm:$0xff]  }
 0x20f   :  { %v9638_v5 = vld [vmem:[%s12235_s1 + $0x1198] sm:$0xff]  }
 0x210   :  { %8809 = vmatpush3.bf16.msra.mxu0 %v9601_v6  ;;  %v9639_v6 = vld [vmem:[%s12235_s1 + $0x1150] sm:$0xff]  }
 0x211   :  { %8831 = vmatpush3.bf16.msra.mxu1 %v9602_v7  ;;  %8810 = vmatprep.subr.bf16.mxu0 %v9603_v8  ;;  %v9640_v7 = vld [vmem:[%s12235_s1 + $0x11d0] sm:$0xff]  }
 0x212   :  { %8832 = vmatprep.subr.bf16.mxu1 %v9604_v9  ;;  %v9641_v8 = vld [vmem:[%s12235_s1 + $0x1110] sm:$0xff]  }
 0x213   :  { %v9642_v9 = vld [vmem:[%s12235_s1 + $0x1190] sm:$0xff]  }
 0x214   :  { %8811 = vmatpush3.bf16.msra.mxu0 %v9605_v10  ;;  %v9643_v10 = vld [vmem:[%s12235_s1 + $0x1148] sm:$0xff]  }
 0x215   :  { %8833 = vmatpush3.bf16.msra.mxu1 %v9606_v12  ;;  %8812 = vmatprep.subr.bf16.mxu0 %v9607_v13  ;;  %v9644_v12 = vld [vmem:[%s12235_s1 + $0x11c8] sm:$0xff]  }
 0x216   :  { %8834 = vmatprep.subr.bf16.mxu1 %v9608_v14  ;;  %v9645_v13 = vld [vmem:[%s12235_s1 + $0x1108] sm:$0xff]  }
 0x217   :  { %v9646_v14 = vld [vmem:[%s12235_s1 + $0x1188] sm:$0xff]  }
 0x218   :  { %8813 = vmatpush3.bf16.msra.mxu0 %v9609_v15  ;;  %v9647_v15 = vld [vmem:[%s12235_s1 + $0x1140] sm:$0xff]  }
 0x219   :  { %8835 = vmatpush3.bf16.msra.mxu1 %v9610_v16  ;;  %8814 = vmatprep.subr.bf16.mxu0 %v9611_v17  ;;  %v9648_v16 = vld [vmem:[%s12235_s1 + $0x11c0] sm:$0xff]  }
 0x21a   :  { %8836 = vmatprep.subr.bf16.mxu1 %v9612_v18  ;;  %v9649_v18 = vld [vmem:[%s12235_s1 + $0x1100] sm:$0xff]  }
 0x21c   :  { %8815 = vmatpush3.bf16.msra.mxu0 %v9613_v19 }
 0x21d   :  { %8837 = vmatpush3.bf16.msra.mxu1 %v9614_v20  ;;  %8816 = vmatprep.subr.bf16.mxu0 %v9615_v22  ;;  %v9650_v20 = vld [vmem:[%s12235_s1 + $0x1180] sm:$0xff]  }
 0x21e   :  { %8838 = vmatprep.subr.bf16.mxu1 %v9616_v23  ;;  %v184_v23 = vcvt.s32.f32 %v104_v21 }
 0x220   :  { %8817 = vmatpush3.bf16.msra.mxu0 %v9617_v26  ;;  %v105_v26 = vld [vmem:[%s12236_s0 + $0x230] sm:$0xff]  ;;  %v264_v35 = vpack.c.bf16 %v184_v23, %v184_v23 }
 0x221   :  { %8839 = vmatpush3.bf16.msra.mxu1 %v9618_v27  ;;  %8846 = vmatprep.subr.bf16.mxu0 %v9619_v40 }
 0x222   :  { %8868 = vmatprep.subr.bf16.mxu1 %v9620_v45 }
 0x223   :  { %v8554_v24 = vpop.f32.mrf.mxu0  ;;  %6696 = vmatmul.mubr.bf16.vlgmr.msra.gmra.mxu0 %v259_v47  ;;  %v9655_v47 = vld [vmem:[%s12235_s1 + $0x1270] sm:$0xff]  }
 0x224   :  { %v8576_v25 = vpop.f32.mrf.mxu1  ;;  %6736 = vmatmul.mubr.bf16.vlgmr.msra.gmra.mxu1 %v261_v48  ;;  %8847 = vmatpush3.bf16.msra.mxu0 %v9621_v49  ;;  %v9656_v48 = vld [vmem:[%s12235_s1 + $0x12f0] sm:$0xff]  }
 0x225   :  { %v8555_v30 = vpop.f32.mrf.mxu0  ;;  %8869 = vmatpush3.bf16.msra.mxu1 %v9622_v52  ;;  %8848 = vmatprep.subr.bf16.mxu0 %v9623_v54  ;;  %v9657_v49 = vld [vmem:[%s12235_s1 + $0x1230] sm:$0xff]   ;;  %v9660_v52 = vld [vmem:[%s12235_s1 + $0x12e8] sm:$0xff]  }
 0x226   :  { %v8577_v31 = vpop.f32.mrf.mxu1  ;;  %v8556_v36 = vadd.f32 %v8555_v30, %v8554_v24  ;;  %8870 = vmatprep.subr.bf16.mxu1 %v9624_v55  ;;  %v106_v24 = vld [vmem:[%s12236_s0 + $0x238] sm:$0xff]  ;;  %6775 = vmatprep.mubr.bf16.mxu0 %v264_v35  ;;  %v9662_v54 = vld [vmem:[%s12235_s1 + $0x12a8] sm:$0xff]   ;;  %v9663_v55 = vld [vmem:[%s12235_s1 + $0x1260] sm:$0xff]  }
 0x227   :  { %v8578_v37 = vadd.f32 %v8577_v31, %v8576_v25  ;;  %v8557_v42 = vpop.f32.mrf.mxu0  ;;  %v103_v25 = vld [vmem:[%s12236_s0 + $0x220] sm:$0xff]  ;;  %v186_v29 = vcvt.s32.f32 %v106_v24  ;;  %v185_v31 = vcvt.s32.f32 %v105_v26  ;;  %v9685_v35 = vld [vmem:[%s12235_s1 + $0x13b8] sm:$0xff]  }
 0x228   :  { %v8579_v41 = vpop.f32.mrf.mxu1  ;;  %v6218_v46 = vadd.f32 %v8556_v36, %v11547_v59  ;;  %8849 = vmatpush3.bf16.msra.mxu0 %v9625_v56  ;;  %v9628_v59 = vld [vmem:[%s12235_s1 + $0x11e8] sm:$0xff]   ;;  %v183_v30 = vcvt.s32.f32 %v103_v25  ;;  %v9652_v36 = vld [vmem:[%s12235_s1 + $0x12f8] sm:$0xff]   ;;  %v9664_v56 = vld [vmem:[%s12235_s1 + $0x12e0] sm:$0xff]  }
 0x229   :  { %v8558_v51 = vpop.f32.mrf.mxu0  ;;  %8871 = vmatpush3.bf16.msra.mxu1 %v9626_v57  ;;  %8850 = vmatprep.subr.bf16.mxu0 %v9627_v58  ;;  %v266_v39 = vpack.c.bf16 %v186_v29, %v186_v29  ;;  %v265_v41 = vpack.c.bf16 %v185_v31, %v185_v31  ;;  %v9653_v42 = vld [vmem:[%s12235_s1 + $0x1238] sm:$0xff]   ;;  %v9665_v57 = vld [vmem:[%s12235_s1 + $0x1220] sm:$0xff]  }
 0x22a   :  { %v8580_v50 = vpop.f32.mrf.mxu1  ;;  %v11658_v53 = vadd.f32 %v8578_v37, %v6218_v46  ;;  %8872 = vmatprep.subr.bf16.mxu1 %v9628_v59  ;;  %v263_v40 = vpack.c.bf16 %v183_v30, %v183_v30  ;;  %v9659_v51 = vld [vmem:[%s12235_s1 + $0x1268] sm:$0xff]   ;;  %v9666_v58 = vld [vmem:[%s12235_s1 + $0x12a0] sm:$0xff]   ;;  %v9667_v59 = vld [vmem:[%s12235_s1 + $0x1258] sm:$0xff]  }
 0x22b   :  { %6815 = vmatprep.mubr.bf16.mxu1 %v266_v39  ;;  %v9658_v50 = vld [vmem:[%s12235_s1 + $0x12b0] sm:$0xff]   ;;  %v9683_v25 = vld [vmem:[%s12235_s1 + $0x1378] sm:$0xff]  }
 0x22c   :  { %8851 = vmatpush3.bf16.msra.mxu0 %v9629_v60  ;;  %v9668_v60 = vld [vmem:[%s12235_s1 + $0x12d8] sm:$0xff]   ;;  %v9686_v39 = vld [vmem:[%s12235_s1 + $0x1370] sm:$0xff]  }
 0x22d   :  { %8873 = vmatpush3.bf16.msra.mxu1 %v9630_v61  ;;  %8852 = vmatprep.subr.bf16.mxu0 %v9631_v62  ;;  %v9669_v61 = vld [vmem:[%s12235_s1 + $0x1218] sm:$0xff]  }
 0x22e   :  { %8874 = vmatprep.subr.bf16.mxu1 %v9632_v63  ;;  %v9670_v62 = vld [vmem:[%s12235_s1 + $0x1298] sm:$0xff]   ;;  %v9671_v63 = vld [vmem:[%s12235_s1 + $0x1250] sm:$0xff]  }
 0x230   :  { %8853 = vmatpush3.bf16.msra.mxu0 %v9633_v0  ;;  %v9672_v0 = vld [vmem:[%s12235_s1 + $0x12d0] sm:$0xff]  }
 0x231   :  { %8875 = vmatpush3.bf16.msra.mxu1 %v9634_v1  ;;  %8854 = vmatprep.subr.bf16.mxu0 %v9635_v2  ;;  %v9673_v1 = vld [vmem:[%s12235_s1 + $0x1210] sm:$0xff]  }
 0x232   :  { %8876 = vmatprep.subr.bf16.mxu1 %v9636_v3  ;;  %v9674_v2 = vld [vmem:[%s12235_s1 + $0x1290] sm:$0xff]   ;;  %v9675_v3 = vld [vmem:[%s12235_s1 + $0x1248] sm:$0xff]  }
 0x234   :  { %8855 = vmatpush3.bf16.msra.mxu0 %v9637_v4  ;;  %v9676_v4 = vld [vmem:[%s12235_s1 + $0x12c8] sm:$0xff]  }
 0x235   :  { %8877 = vmatpush3.bf16.msra.mxu1 %v9638_v5  ;;  %8856 = vmatprep.subr.bf16.mxu0 %v9639_v6  ;;  %v9677_v5 = vld [vmem:[%s12235_s1 + $0x1208] sm:$0xff]  }
 0x236   :  { %8878 = vmatprep.subr.bf16.mxu1 %v9640_v7  ;;  %v9678_v6 = vld [vmem:[%s12235_s1 + $0x1288] sm:$0xff]   ;;  %v9679_v7 = vld [vmem:[%s12235_s1 + $0x1240] sm:$0xff]  }
 0x238   :  { %8857 = vmatpush3.bf16.msra.mxu0 %v9641_v8  ;;  %v9680_v8 = vld [vmem:[%s12235_s1 + $0x12c0] sm:$0xff]  }
 0x239   :  { %8879 = vmatpush3.bf16.msra.mxu1 %v9642_v9  ;;  %8858 = vmatprep.subr.bf16.mxu0 %v9643_v10  ;;  %v9681_v9 = vld [vmem:[%s12235_s1 + $0x1200] sm:$0xff]  }
 0x23a   :  { %8880 = vmatprep.subr.bf16.mxu1 %v9644_v12 }
 0x23c   :  { %8859 = vmatpush3.bf16.msra.mxu0 %v9645_v13  ;;  %v9682_v13 = vld [vmem:[%s12235_s1 + $0x1280] sm:$0xff]  }
 0x23d   :  { %8881 = vmatpush3.bf16.msra.mxu1 %v9646_v14  ;;  %8860 = vmatprep.subr.bf16.mxu0 %v9647_v15  ;;  %v108_v14 = vld [vmem:[%s12236_s0 + $0x248] sm:$0xff]  ;;  %v110_v15 = vld [vmem:[%s12236_s0 + $0x258] sm:$0xff] }
 0x23e   :  { %8882 = vmatprep.subr.bf16.mxu1 %v9648_v16  ;;  %v107_v16 = vld [vmem:[%s12236_s0 + $0x240] sm:$0xff] }
 0x23f   :  { %v187_v21 = vcvt.s32.f32 %v107_v16 }
 0x240   :  { %8861 = vmatpush3.bf16.msra.mxu0 %v9649_v18 }
 0x241   :  { %8883 = vmatpush3.bf16.msra.mxu1 %v9650_v20  ;;  %8890 = vmatprep.subr.bf16.mxu0 %v9651_v32  ;;  %v190_v20 = vcvt.s32.f32 %v110_v15  ;;  %v267_v31 = vpack.c.bf16 %v187_v21, %v187_v21  ;;  %v9684_v32 = vld [vmem:[%s12235_s1 + $0x1338] sm:$0xff]  }
 0x242   :  { %8912 = vmatprep.subr.bf16.mxu1 %v9652_v36 }
 0x243   :  { %v8598_v17 = vpop.f32.mrf.mxu0  ;;  %6776 = vmatmul.mubr.bf16.vlgmr.msra.gmra.mxu0 %v263_v40  ;;  %v270_v30 = vpack.c.bf16 %v190_v20, %v190_v20  ;;  %v9687_v40 = vld [vmem:[%s12235_s1 + $0x1330] sm:$0xff]  }
 0x244   :  { %v8620_v19 = vpop.f32.mrf.mxu1  ;;  %6816 = vmatmul.mubr.bf16.vlgmr.msra.gmra.mxu1 %v265_v41  ;;  %8891 = vmatpush3.bf16.msra.mxu0 %v9653_v42  ;;  %v9688_v41 = vld [vmem:[%s12235_s1 + $0x13b0] sm:$0xff]   ;;  %v9689_v42 = vld [vmem:[%s12235_s1 + $0x1368] sm:$0xff]  }
 0x245   :  { %v8599_v22 = vpop.f32.mrf.mxu0  ;;  %8913 = vmatpush3.bf16.msra.mxu1 %v9654_v44  ;;  %8892 = vmatprep.subr.bf16.mxu0 %v9655_v47  ;;  %v9691_v44 = vld [vmem:[%s12235_s1 + $0x13a8] sm:$0xff]   ;;  %v9694_v47 = vld [vmem:[%s12235_s1 + $0x13a0] sm:$0xff]  }
 0x246   :  { %v8600_v27 = vadd.f32 %v8599_v22, %v8598_v17  ;;  %v8621_v28 = vpop.f32.mrf.mxu1  ;;  %8914 = vmatprep.subr.bf16.mxu1 %v9656_v48  ;;  %v109_v22 = vld [vmem:[%s12236_s0 + $0x250] sm:$0xff]  ;;  %6895 = vmatprep.mubr.bf16.mxu1 %v270_v30  ;;  %v9695_v48 = vld [vmem:[%s12235_s1 + $0x1358] sm:$0xff]   ;;  %v7049_v30 = vld [vmem:[%s12237_s2 + $0x88] sm:$0xf] }
 0x247   :  { %v8622_v33 = vadd.f32 %v8621_v28, %v8620_v19  ;;  %v8601_v34 = vpop.f32.mrf.mxu0  ;;  %v188_v19 = vcvt.s32.f32 %v108_v14  ;;  %v189_v24 = vcvt.s32.f32 %v109_v22 }
 0x248   :  { %v6298_v37 = vadd.f32 %v8600_v27, %v11658_v53  ;;  %v8623_v38 = vpop.f32.mrf.mxu1  ;;  %8893 = vmatpush3.bf16.msra.mxu0 %v9657_v49  ;;  %v9661_v53 = vld [vmem:[%s12235_s1 + $0x1228] sm:$0xff]   ;;  %v9696_v49 = vld [vmem:[%s12235_s1 + $0x1318] sm:$0xff]  }
 0x249   :  { %v8602_v43 = vpop.f32.mrf.mxu0  ;;  %8915 = vmatpush3.bf16.msra.mxu1 %v9658_v50  ;;  %8894 = vmatprep.subr.bf16.mxu0 %v9659_v51  ;;  %v268_v29 = vpack.c.bf16 %v188_v19, %v188_v19  ;;  %v269_v34 = vpack.c.bf16 %v189_v24, %v189_v24  ;;  %v9697_v50 = vld [vmem:[%s12235_s1 + $0x1398] sm:$0xff]   ;;  %v9698_v51 = vld [vmem:[%s12235_s1 + $0x1350] sm:$0xff]   ;;  %v9718_v24 = vmov 78  }
 0x24a   :  { %v11769_v45 = vadd.f32 %v8622_v33, %v6298_v37  ;;  %v8624_v46 = vpop.f32.mrf.mxu1  ;;  %8916 = vmatprep.subr.bf16.mxu1 %v9660_v52  ;;  %v9690_v43 = vld [vmem:[%s12235_s1 + $0x1328] sm:$0xff]   ;;  %v9699_v52 = vld [vmem:[%s12235_s1 + $0x1310] sm:$0xff]  }
 0x24b   :  { %6855 = vmatprep.mubr.bf16.mxu0 %v268_v29  ;;  %v9693_v46 = vld [vmem:[%s12235_s1 + $0x1320] sm:$0xff]   ;;  %v9709_v29 = vld [vmem:[%s12235_s1 + $0x13d8] sm:$0xff]  }
 0x24c   :  { %8895 = vmatpush3.bf16.msra.mxu0 %v9661_v53  ;;  %v9700_v53 = vld [vmem:[%s12235_s1 + $0x1390] sm:$0xff]  }
 0x24d   :  { %8917 = vmatpush3.bf16.msra.mxu1 %v9662_v54  ;;  %8896 = vmatprep.subr.bf16.mxu0 %v9663_v55  ;;  %v9701_v54 = vld [vmem:[%s12235_s1 + $0x1348] sm:$0xff]  }
 0x24e   :  { %8918 = vmatprep.subr.bf16.mxu1 %v9664_v56  ;;  %v9702_v55 = vld [vmem:[%s12235_s1 + $0x1308] sm:$0xff]  }
 0x24f   :  { %v112_v56 = vld [vmem:[%s12236_s0 + $0x268] sm:$0xff] }
 0x250   :  { %8897 = vmatpush3.bf16.msra.mxu0 %v9665_v57  ;;  %v9703_v57 = vld [vmem:[%s12235_s1 + $0x1388] sm:$0xff]  }
 0x251   :  { %8919 = vmatpush3.bf16.msra.mxu1 %v9666_v58  ;;  %8898 = vmatprep.subr.bf16.mxu0 %v9667_v59  ;;  %v192_v58 = vcvt.s32.f32 %v112_v56  ;;  %v111_v59 = vld [vmem:[%s12236_s0 + $0x260] sm:$0xff] }
 0x252   :  { %8920 = vmatprep.subr.bf16.mxu1 %v9668_v60  ;;  %v9704_v60 = vld [vmem:[%s12235_s1 + $0x1340] sm:$0xff]  }
 0x254   :  { %8899 = vmatpush3.bf16.msra.mxu0 %v9669_v61  ;;  %v272_v61 = vpack.c.bf16 %v192_v58, %v192_v58 }
 0x255   :  { %8921 = vmatpush3.bf16.msra.mxu1 %v9670_v62  ;;  %8900 = vmatprep.subr.bf16.mxu0 %v9671_v63  ;;  %v9705_v62 = vld [vmem:[%s12235_s1 + $0x1300] sm:$0xff]  }
 0x256   :  { %8922 = vmatprep.subr.bf16.mxu1 %v9672_v0  ;;  %v9706_v63 = vld [vmem:[%s12235_s1 + $0x1380] sm:$0xff]   ;;  %v191_v0 = vcvt.s32.f32 %v111_v59 }
 0x258   :  { %8901 = vmatpush3.bf16.msra.mxu0 %v9673_v1  ;;  %v114_v1 = vld [vmem:[%s12236_s0 + $0x278] sm:$0xff] }
 0x259   :  { %8923 = vmatpush3.bf16.msra.mxu1 %v9674_v2  ;;  %8902 = vmatprep.subr.bf16.mxu0 %v9675_v3  ;;  %v7019_v15 = vadd.s32 15, %v114_v1 }
 0x25a   :  { %8924 = vmatprep.subr.bf16.mxu1 %v9676_v4  ;;  %v7013_v4 = vadd.s32 8, %v114_v1 }
 0x25c   :  { %8903 = vmatpush3.bf16.msra.mxu0 %v9677_v5  ;;  %v7000_v5 = vld [vmem:[%s12236_s0] sm:$0xff]  ;;  %7015 = vperm.xlu1 %9063, %v7013_v4  }
 0x25d   :  { %8925 = vmatpush3.bf16.msra.mxu1 %v9678_v6  ;;  %8904 = vmatprep.subr.bf16.mxu0 %v9679_v7  ;;  %v194_v6 = vcvt.s32.f32 %v114_v1  ;;  %v9707_v7 = vld [vmem:[%s12235_s1 + $0x13e8] ss:$0 sps:$4 sm:$0x11]  }
 0x25e   :  { %8926 = vmatprep.subr.bf16.mxu1 %v9680_v8  ;;  %7004 = vperm.xlu0 %9061, %v7000_v5   ;;  %v5381_v19 = vsel %vm5379_vm0, %v9707_v7, 0  ;;  %vm9728_vm0 = vmmov 0  }
 0x260   :  { %8905 = vmatpush3.bf16.msra.mxu0 %v9681_v9 }
 0x261   :  { %8927 = vmatpush3.bf16.msra.mxu1 %v9682_v13  ;;  %8934 = vmatprep.subr.bf16.mxu0 %v9683_v25 }
 0x262   :  { %6943 = vmatprep.subr.bf16.mxu1 %v9715_v11  ;;  %9062 = vset.pattern.permute.xlu0 %v9718_v24 }
 0x263   :  { %v8642_v10 = vpop.f32.mrf.mxu0  ;;  %6856 = vmatmul.mubr.bf16.vlgmr.msra.gmra.mxu0 %v267_v31  ;;  %v7048_v31 = vld [vmem:[%s12237_s2 + $0x80] sm:$0xf] }
 0x264   :  { %v8664_v12 = vpop.f32.mrf.mxu1  ;;  %6896 = vmatmul.mubr.bf16.vlgmr.msra.gmra.mxu1 %v269_v34  ;;  %8935 = vmatpush3.bf16.msra.mxu0 %v9684_v32  ;;  %v7047_v32 = vld [vmem:[%s12237_s2 + $0x78] sm:$0xff]  ;;  %v7046_v34 = vld [vmem:[%s12237_s2 + $0x70] sm:$0xff] }
 0x265   :  { %v8643_v17 = vpop.f32.mrf.mxu0  ;;  %6944 = vmatpush1.bf16.msra.mxu1 %v9685_v35  ;;  %8936 = vmatprep.subr.bf16.mxu0 %v9686_v39  ;;  %v7045_v35 = vld [vmem:[%s12237_s2 + $0x68] sm:$0xff]  ;;  %v7042_v39 = vld [vmem:[%s12237_s2 + $0x50] sm:$0xff] }
 0x266   :  { %v8665_v18 = vpop.f32.mrf.mxu1  ;;  %v8644_v23 = vadd.f32 %v8643_v17, %v8642_v10  ;;  %6945 = vmatprep.subr.bf16.mxu1 %v9715_v11  ;;  %6935 = vmatprep.mubr.bf16.mxu0 %v272_v61  ;;  %v274_v10 = vpack.c.bf16 %v194_v6, %v194_v6 }
 0x267   :  { %v8666_v26 = vadd.f32 %v8665_v18, %v8664_v12  ;;  %v8645_v28 = vpop.f32.mrf.mxu0  ;;  %v271_v12 = vpack.c.bf16 %v191_v0, %v191_v0  ;;  %v7007_v18 = vadd.s32 6, %v114_v1 }
 0x268   :  { %v8667_v27 = vpop.f32.mrf.mxu1  ;;  %v6378_v33 = vadd.f32 %v8644_v23, %v11769_v45  ;;  %8937 = vmatpush3.bf16.msra.mxu0 %v9687_v40  ;;  %v9692_v45 = vld [vmem:[%s12235_s1 + $0x1360] sm:$0xff]   ;;  %8089 = vmatprep.mubr.msk.bf16.mxu1 %vm5375_vm1, %v274_v10  ;;  %v9717_v23 = vmov 80   ;;  %v9719_v28 = vmov 81   ;;  %v7041_v40 = vld [vmem:[%s12237_s2 + $0x48] sm:$0xff]  ;;  %vm7445_vm1 = vcmask 7168  }
 0x269   :  { %v8646_v37 = vpop.f32.mrf.mxu0  ;;  %6946 = vmatpush1.bf16.msra.mxu1 %v9688_v41  ;;  %8938 = vmatprep.subr.bf16.mxu0 %v9689_v42  ;;  %v7025_v27 = vadd.s32 36, %v114_v1  ;;  %v9711_v41 = vld [vmem:[%s12235_s1 + $0x13c8] sm:$0xff]   ;;  %v113_v42 = vld [vmem:[%s12236_s0 + $0x270] sm:$0xff] }
 0x26a   :  { %v8668_v36 = vpop.f32.mrf.mxu1  ;;  %v11878_v38 = vadd.f32 %v8666_v26, %v6378_v33  ;;  %6947 = vmatprep.subr.bf16.mxu1 %v9715_v11  ;;  %9064 = vset.pattern.permute.xlu1 %v9717_v23  ;;  %v9708_v26 = vld [vmem:[%s12235_s1 + $0x13e0] sm:$0xff]   ;;  %v9720_v33 = vmov 0.0  }
 0x26b   :  { %7021 = vperm.xlu1 %9064, %v7019_v15   ;;  %7009 = vperm.xlu0 %9062, %v7007_v18   ;;  %v9710_v36 = vld [vmem:[%s12235_s1 + $0x13d0] sm:$0xff]   ;;  %v7044_v37 = vld [vmem:[%s12237_s2 + $0x60] sm:$0xff] }
 0x26c   :  { %8939 = vmatpush3.bf16.msra.mxu0 %v9690_v43  ;;  %v7040_v43 = vld [vmem:[%s12237_s2 + $0x40] sm:$0xff] }
 0x26d   :  { %6948 = vmatpush1.bf16.msra.mxu1 %v9691_v44  ;;  %8940 = vmatprep.subr.bf16.mxu0 %v9692_v45  ;;  %v7039_v44 = vld [vmem:[%s12237_s2 + $0x38] sm:$0xff]  ;;  %v7038_v45 = vld [vmem:[%s12237_s2 + $0x30] sm:$0xff] }
 0x26e   :  { %6949 = vmatprep.subr.bf16.mxu1 %v9715_v11 }
 0x26f   :  { %9065 = vset.pattern.permute.xlu1 %v9719_v28 }
 0x270   :  { %8941 = vmatpush3.bf16.msra.mxu0 %v9693_v46  ;;  %7027 = vperm.xlu1 %9065, %v7025_v27   ;;  %v193_v46 = vcvt.s32.f32 %v113_v42 }
 0x271   :  { %6950 = vmatpush1.bf16.msra.mxu1 %v9694_v47  ;;  %8942 = vmatprep.subr.bf16.mxu0 %v9695_v48  ;;  %v7037_v47 = vld [vmem:[%s12237_s2 + $0x28] sm:$0xff]  ;;  %v9712_v48 = vld [vmem:[%s12235_s1 + $0x13c0] sm:$0xff]  }
 0x272   :  { %6951 = vmatprep.subr.bf16.mxu1 %v9715_v11 }
 0x274   :  { %8943 = vmatpush3.bf16.msra.mxu0 %v9696_v49  ;;  %v7036_v49 = vld [vmem:[%s12237_s2 + $0x20] sm:$0xff] }
 0x275   :  { %6952 = vmatpush1.bf16.msra.mxu1 %v9697_v50  ;;  %8944 = vmatprep.subr.bf16.mxu0 %v9698_v51  ;;  %v7035_v50 = vld [vmem:[%s12237_s2 + $0x18] sm:$0xff]  ;;  %v7034_v51 = vld [vmem:[%s12237_s2 + $0x10] sm:$0xff] }
 0x276   :  { %6953 = vmatprep.subr.bf16.mxu1 %v9715_v11 }
 0x278   :  { %8945 = vmatpush3.bf16.msra.mxu0 %v9699_v52  ;;  %v273_v52 = vpack.c.bf16 %v193_v46, %v193_v46 }
 0x279   :  { %6954 = vmatpush1.bf16.msra.mxu1 %v9700_v53  ;;  %8946 = vmatprep.subr.bf16.mxu0 %v9701_v54  ;;  %v7033_v53 = vld [vmem:[%s12237_s2 + $0x8] sm:$0xff] }
 0x27a   :  { %6955 = vmatprep.subr.bf16.mxu1 %v9715_v11 }
 0x27c   :  { %8947 = vmatpush3.bf16.msra.mxu0 %v9702_v55 }
 0x27d   :  { %6956 = vmatpush1.bf16.msra.mxu1 %v9703_v57  ;;  %8948 = vmatprep.subr.bf16.mxu0 %v9704_v60 }
 0x27e   :  { %6957 = vmatprep.subr.bf16.mxu1 %v9715_v11 }
 0x280   :  { %8949 = vmatpush3.bf16.msra.mxu0 %v9705_v62 }
 0x281   :  { %6958 = vmatpush1.bf16.msra.mxu1 %v9706_v63  ;;  %8090 = vmatprep.subr.msk.mxu0 %vm7054_vm2, %v7049_v30  ;;  %v7001_v30 = vlaneseq }
 0x282   :  { %6963 = vmatprep.subr.bf16.mxu1 %v9715_v11 }
 0x283   :  { %v8686_v2 = vpop.f32.mrf.mxu0  ;;  %6936 = vmatmul.mubr.bf16.vlgmr.msra.gmra.mxu0 %v271_v12 }
 0x284   :  { %v8708_v3 = vpop.f32.mrf.mxu1  ;;  %7125 = vmatprep.mubr.f32.mxu0 %v9720_v33  ;;  %8091 = vmatpush1.msk.msra.mxu0 %vm7054_vm2, %v7048_v31 }
 0x285   :  { %v8687_v8 = vpop.f32.mrf.mxu0  ;;  %6964 = vmatpush2.bf16.msra.mxu1 %v5381_v19  ;;  %7077 = vmatprep.subr.mxu0 %v7047_v32  ;;  %v9721_v19 = vmov 65  }
 0x286   :  { %v8709_v9 = vpop.f32.mrf.mxu1  ;;  %v8688_v13 = vadd.f32 %v8687_v8, %v8686_v2  ;;  %6965 = vmatprep.subr.bf16.mxu1 %v9715_v11  ;;  %7078 = vmatpush1.msra.mxu0 %v7046_v34  ;;  %v7002_v34 = vand.u32 127, %v7001_v30  ;;  %v7180_v30 = vld [vmem:[%s12238_s3 + $0xb0] sm:$0xff] }
 0x287   :  { %v8710_v14 = vadd.f32 %v8709_v9, %v8708_v3  ;;  %v8689_v17 = vpop.f32.mrf.mxu0  ;;  %7079 = vmatprep.subr.mxu0 %v7045_v35  ;;  %9067 = vset.pattern.permute.xlu1 %v9721_v19  ;;  %v7185_v19 = vld [vmem:[%s12238_s3 + $0xd8] sm:$0xff] }
 0x288   :  { %v8711_v16 = vpop.f32.mrf.mxu1  ;;  %v6458_v20 = vadd.f32 %v8688_v13, %v11878_v38  ;;  %v7043_v38 = vld [vmem:[%s12237_s2 + $0x58] sm:$0xff]  ;;  %7080 = vmatpush1.msra.mxu0 %v7044_v37 }
 0x289   :  { %v8690_v22 = vpop.f32.mrf.mxu0  ;;  %6966 = vmatpush2.bf16.msra.mxu1 %v9708_v26  ;;  %7081 = vmatprep.subr.mxu0 %v7043_v38 }
 0x28a   :  { %v8712_v21 = vpop.f32.mrf.mxu1  ;;  %v11968_v25 = vadd.f32 %v8710_v14, %v6458_v20  ;;  %6967 = vmatprep.subr.bf16.mxu1 %v9715_v11  ;;  %7082 = vmatpush1.msra.mxu0 %v7042_v39  ;;  %v9722_v20 = vmov 32  }
 0x28b   :  { %7083 = vmatprep.subr.mxu0 %v7041_v40  ;;  %9066 = vset.pattern.permute.xlu0 %v9722_v20  ;;  %v7169_v20 = vld [vmem:[%s12238_s3 + $0x58] sm:$0xff] }
 0x28c   :  { %7084 = vmatpush1.msra.mxu0 %v7040_v43 }
 0x28d   :  { %6968 = vmatpush2.bf16.msra.mxu1 %v9709_v29  ;;  %7085 = vmatprep.subr.mxu0 %v7039_v44 }
 0x28e   :  { %6969 = vmatprep.subr.bf16.mxu1 %v9715_v11  ;;  %7086 = vmatpush1.msra.mxu0 %v7038_v45 }
 0x28f   :  { %7087 = vmatprep.subr.mxu0 %v7037_v47 }
 0x290   :  { %7088 = vmatpush1.msra.mxu0 %v7036_v49 }
 0x291   :  { %6970 = vmatpush2.bf16.msra.mxu1 %v9710_v36  ;;  %7089 = vmatprep.subr.mxu0 %v7035_v50 }
 0x292   :  { %6971 = vmatprep.subr.bf16.mxu1 %v9715_v11  ;;  %7090 = vmatpush1.msra.mxu0 %v7034_v51 }
 0x293   :  { %7091 = vmatprep.subr.mxu0 %v7033_v53 }
 0x295   :  { %6972 = vmatpush2.bf16.msra.mxu1 %v9711_v41 }
 0x296   :  { %6973 = vmatprep.subr.bf16.mxu1 %v9715_v11  ;;  %v7032_v11 = vld [vmem:[%s12237_s2] sm:$0xff]  ;;  %s9727_s2 = smov 30  }
 0x297   :  { %7092 = vmatpush1.msra.mxu0 %v7032_v11 }
 0x299   :  { %6974 = vmatpush2.bf16.msra.mxu1 %v9712_v48 }
 0x29a   :  { %9009 = vmatprep.subr.mxu1 %v9720_v33 }
 0x29c   :  { %6976 = vmatmul.mubr.bf16.vlgmr.msra.gmra.mxu1 %v273_v52 }
 0x29d   :  { %9025 = vmatprep.mubr.msk.f32.mxu1 %vm9728_vm0, %v9720_v33 }
 0x2a3   :  { %v8730_v54 = vpop.f32.mrf.mxu0 }
 0x2a4   :  { %v8752_v55 = vpop.f32.mrf.mxu1 }
 0x2a5   :  { %v8731_v56 = vpop.f32.mrf.mxu0 }
 0x2a6   :  { %v8732_v57 = vadd.f32 %v8731_v56, %v8730_v54  ;;  %v8753_v58 = vpop.f32.mrf.mxu1 }
 0x2a7   :  { %v8754_v59 = vadd.f32 %v8753_v58, %v8752_v55  ;;  %v8733_v60 = vpop.f32.mrf.mxu0 }
 0x2a8   :  { %v6538_v61 = vadd.f32 %v8732_v57, %v11968_v25  ;;  %v8755_v62 = vpop.f32.mrf.mxu1 }
 0x2a9   :  { %v8734_v63 = vpop.f32.mrf.mxu0 }
 0x2aa   :  { %v6578_v0 = vadd.f32 %v8754_v59, %v6538_v61  ;;  %v8756_v1 = vpop.f32.mrf.mxu1 }
 0x2c3   :  { %v8774_v2 = vpop.f32.mrf.mxu0 }
 0x2c4   :  { %v8796_v3 = vpop.f32.mrf.mxu1 }
 0x2c5   :  { %v8775_v4 = vpop.f32.mrf.mxu0 }
 0x2c6   :  { %v8797_v5 = vpop.f32.mrf.mxu1  ;;  %v8776_v6 = vadd.f32 %v8775_v4, %v8774_v2 }
 0x2c7   :  { %v8798_v7 = vadd.f32 %v8797_v5, %v8796_v3  ;;  %v8777_v9 = vpop.f32.mrf.mxu0 }
 0x2c8   :  { %v8799_v8 = vpop.f32.mrf.mxu1  ;;  %v6618_v10 = vadd.f32 %v8776_v6, %v6578_v0 }
 0x2c9   :  { %v8778_v13 = vpop.f32.mrf.mxu0 }
 0x2ca   :  { %v8800_v12 = vpop.f32.mrf.mxu1  ;;  %v6658_v14 = vadd.f32 %v8798_v7, %v6618_v10  ;;  %v9723_v10 = vmov 98   ;;  %v7173_v13 = vld [vmem:[%s12238_s3 + $0x78] sm:$0xff] }
 0x2cb   :  { %v7189_v12 = vld [vmem:[%s12238_s3 + $0xf8] sm:$0xff] }
 0x2cc   :  { %8956 = vmatprep.subr.mxu0 %v7189_v12 }
 0x2d7   :  { %v7016_v31 = vpop.permute.xlu1 %7015 }
 0x2d8   :  { %vm7017_vm4 = vcmp.eq.s32.totalorder %v7002_v34, %v7016_v31  ;;  %v7164_v31 = vld [vmem:[%s12238_s3 + $0x30] sm:$0xff] }
 0x2d9   :  { %v7005_v32 = vpop.permute.xlu0 %7004 }
 0x2da   :  { %vm7006_vm3 = vcmp.eq.s32.totalorder %v7002_v34, %v7005_v32  ;;  %v7179_v32 = vld [vmem:[%s12238_s3 + $0xa8] sm:$0xff] }
 0x2e3   :  { %v8818_v15 = vpop.f32.mrf.mxu0 }
 0x2e4   :  { %v8840_v16 = vpop.f32.mrf.mxu1 }
 0x2e5   :  { %v8819_v17 = vpop.f32.mrf.mxu0 }
 0x2e6   :  { %v8841_v18 = vpop.f32.mrf.mxu1  ;;  %v8820_v21 = vadd.f32 %v8819_v17, %v8818_v15  ;;  %v7022_v35 = vpop.permute.xlu1 %7021  ;;  %v7172_v15 = vld [vmem:[%s12238_s3 + $0x70] sm:$0xff]  ;;  %v7171_v17 = vld [vmem:[%s12238_s3 + $0x68] sm:$0xff] }
 0x2e7   :  { %v8842_v22 = vadd.f32 %v8841_v18, %v8840_v16  ;;  %v8821_v24 = vpop.f32.mrf.mxu0  ;;  %v7010_v36 = vpop.permute.xlu0 %7009  ;;  %vm7023_vm5 = vcmp.eq.s32.totalorder %v7002_v34, %v7022_v35  ;;  %v7187_v16 = vld [vmem:[%s12238_s3 + $0xe8] sm:$0xff]  ;;  %v7170_v18 = vld [vmem:[%s12238_s3 + $0x60] sm:$0xff] }
 0x2e8   :  { %v8843_v23 = vpop.f32.mrf.mxu1  ;;  %v6698_v25 = vadd.f32 %v8820_v21, %v6658_v14  ;;  %vm7011_vm6 = vcmp.eq.s32.totalorder %v7002_v34, %v7010_v36  ;;  %v7188_v14 = vld [vmem:[%s12238_s3 + $0xf0] sm:$0xff]  ;;  %v7167_v24 = vld [vmem:[%s12238_s3 + $0x48] sm:$0xff]  ;;  %v7178_v35 = vld [vmem:[%s12238_s3 + $0xa0] sm:$0xff] }
 0x2e9   :  { %v8822_v27 = vpop.f32.mrf.mxu0  ;;  %vm7012_vm7 = vmor %vm7006_vm3, %vm7011_vm6  ;;  %v7184_v21 = vld [vmem:[%s12238_s3 + $0xd0] sm:$0xff]  ;;  %v7183_v23 = vld [vmem:[%s12238_s3 + $0xc8] sm:$0xff] }
 0x2ea   :  { %v8844_v26 = vpop.f32.mrf.mxu1  ;;  %v6738_v29 = vadd.f32 %v8842_v22, %v6698_v25  ;;  %vm7018_vm8 = vmor %vm7012_vm7, %vm7017_vm4  ;;  %v7168_v22 = vld [vmem:[%s12238_s3 + $0x50] sm:$0xff]  ;;  %v7182_v25 = vld [vmem:[%s12238_s3 + $0xc0] sm:$0xff] }
 0x2eb   :  { %v7028_v40 = vpop.permute.xlu1 %7027  ;;  %vm7024_vm9 = vmor %vm7018_vm8, %vm7023_vm5  ;;  %v7166_v26 = vld [vmem:[%s12238_s3 + $0x40] sm:$0xff]  ;;  %v7181_v27 = vld [vmem:[%s12238_s3 + $0xb8] sm:$0xff] }
 0x2ec   :  { %vm7029_vm10 = vcmp.eq.s32.totalorder %v7002_v34, %v7028_v40  ;;  %v7163_v34 = vld [vmem:[%s12238_s3 + $0x28] sm:$0xff]  ;;  %v7162_v36 = vld [vmem:[%s12238_s3 + $0x20] sm:$0xff]  ;;  %v7160_v40 = vld [vmem:[%s12238_s3 + $0x10] sm:$0xff] }
 0x2ed   :  { %vm7030_vm12 = vmor %vm7024_vm9, %vm7029_vm10 }
 0x2ee   :  { %v7031_v47 = vsel %vm7030_vm12, 1.0, %v9720_v33 }
 0x2ef   :  { %8092 = vmatmul.mubr.msk.f32.vlgmr.msra.gmra.mxu0 %vm7050_vm11, %v7031_v47  ;;  %v7274_v47 = vld [vmem:[%s12239_s5 + $0x30] sm:$0xff] }
 0x2f0   :  { %8957 = vmatpush3.msra.mxu0 %v7173_v13 }
 0x2f1   :  { %8958 = vmatprep.subr.mxu0 %v7188_v14  ;;  %v7364_v14 = vld [vmem:[%s12241_s7 + $0x38] sm:$0xff] }
 0x2f2   :  { %8959 = vmatpush3.msra.mxu0 %v7172_v15  ;;  %v7363_v15 = vld [vmem:[%s12241_s7 + $0x30] sm:$0xff] }
 0x2f3   :  { %8960 = vmatprep.subr.mxu0 %v7187_v16  ;;  %v7362_v16 = vld [vmem:[%s12241_s7 + $0x28] sm:$0xff] }
 0x2f4   :  { %8961 = vmatpush3.msra.mxu0 %v7171_v17  ;;  %v7361_v17 = vld [vmem:[%s12241_s7 + $0x20] sm:$0xff] }
 0x303   :  { %v8862_v37 = vpop.f32.mrf.mxu0 }
 0x304   :  { %v8884_v38 = vpop.f32.mrf.mxu1 }
 0x305   :  { %v8863_v39 = vpop.f32.mrf.mxu0 }
 0x306   :  { %v8864_v41 = vadd.f32 %v8863_v39, %v8862_v37  ;;  %v8885_v42 = vpop.f32.mrf.mxu1  ;;  %v7177_v37 = vld [vmem:[%s12238_s3 + $0x98] sm:$0xff]  ;;  %v7176_v39 = vld [vmem:[%s12238_s3 + $0x90] sm:$0xff] }
 0x307   :  { %v8886_v43 = vadd.f32 %v8885_v42, %v8884_v38  ;;  %v8865_v44 = vpop.f32.mrf.mxu0  ;;  %v7161_v38 = vld [vmem:[%s12238_s3 + $0x18] sm:$0xff]  ;;  %v7159_v42 = vld [vmem:[%s12238_s3 + $0x8] sm:$0xff] }
 0x308   :  { %v6778_v45 = vadd.f32 %v8864_v41, %v6738_v29  ;;  %v8887_v46 = vpop.f32.mrf.mxu1  ;;  %v7165_v29 = vld [vmem:[%s12238_s3 + $0x38] sm:$0xff]  ;;  %v7175_v41 = vld [vmem:[%s12238_s3 + $0x88] sm:$0xff]  ;;  %v7158_v44 = vld [vmem:[%s12238_s3] sm:$0xff] }
 0x309   :  { %v8866_v48 = vpop.f32.mrf.mxu0  ;;  %v7275_v46 = vld [vmem:[%s12239_s5 + $0x38] sm:$0xff] }
 0x30a   :  { %v6818_v49 = vadd.f32 %v8886_v43, %v6778_v45  ;;  %v8888_v50 = vpop.f32.mrf.mxu1  ;;  %v7174_v43 = vld [vmem:[%s12238_s3 + $0x80] sm:$0xff]  ;;  %9010 = vmatpush3.msra.mxu1 %v7275_v46 }
 0x30b   :  { %9011 = vmatprep.subr.mxu1 %v9720_v33 }
 0x30c   :  { %9012 = vmatpush3.msra.mxu1 %v7274_v47 }
 0x30d   :  { %9013 = vmatprep.subr.mxu1 %v9720_v33 }
 0x323   :  { %v8906_v51 = vpop.f32.mrf.mxu0 }
 0x324   :  { %v8928_v52 = vpop.f32.mrf.mxu1 }
 0x325   :  { %v8907_v53 = vpop.f32.mrf.mxu0 }
 0x326   :  { %v8929_v11 = vpop.f32.mrf.mxu1  ;;  %v8908_v62 = vadd.f32 %v8907_v53, %v8906_v51  ;;  %v7273_v53 = vld [vmem:[%s12239_s5 + $0x28] sm:$0xff] }
 0x327   :  { %v8909_v55 = vpop.f32.mrf.mxu0  ;;  %v8930_v0 = vadd.f32 %v8929_v11, %v8928_v52  ;;  %9014 = vmatpush3.msra.mxu1 %v7273_v53 }
 0x328   :  { %v8931_v54 = vpop.f32.mrf.mxu1  ;;  %v6858_v63 = vadd.f32 %v8908_v62, %v6818_v49  ;;  %9015 = vmatprep.subr.mxu1 %v9720_v33 }
 0x329   :  { %v8910_v57 = vpop.f32.mrf.mxu0 }
 0x32a   :  { %v8932_v56 = vpop.f32.mrf.mxu1  ;;  %v6898_v2 = vadd.f32 %v8930_v0, %v6858_v63 }
 0x343   :  { %v8950_v58 = vpop.f32.mrf.mxu0 }
 0x345   :  { %v8951_v59 = vpop.f32.mrf.mxu0 }
 0x346   :  { %v8952_v1 = vadd.f32 %v8951_v59, %v8950_v58 }
 0x347   :  { %v8953_v60 = vpop.f32.mrf.mxu0 }
 0x348   :  { %v6938_v3 = vadd.f32 %v8952_v1, %v6898_v2  ;;  %v7272_v2 = vld [vmem:[%s12239_s5 + $0x20] sm:$0xff] }
 0x349   :  { %v8954_v61 = vpop.f32.mrf.mxu0  ;;  %9016 = vmatpush3.msra.mxu1 %v7272_v2 }
 0x34a   :  { %9017 = vmatprep.subr.mxu1 %v9720_v33 }
 0x35c   :  { %v6977_v4 = vpop.f32.mrf.mxu1 }
 0x35d   :  { %v12052_v5 = vadd.f32 %v6977_v4, %v6938_v3  ;;  %v7271_v3 = vld [vmem:[%s12239_s5 + $0x18] sm:$0xff]  ;;  %v7270_v4 = vld [vmem:[%s12239_s5 + $0x10] sm:$0xff] }
 0x35e   :  { %v6979_v6 = vpop.f32.mrf.mxu1  ;;  %9018 = vmatpush3.msra.mxu1 %v7271_v3 }
 0x35f   :  { %9713 = vrcp.f32 %v12052_v5  ;;  %9019 = vmatprep.subr.mxu1 %v9720_v33  ;;  %v7268_v6 = vld [vmem:[%s12239_s5] sm:$0xff] }
 0x360   :  { %v6980_v7 = vpop.f32.mrf.mxu1  ;;  %9020 = vmatpush3.msra.mxu1 %v7270_v4 }
 0x361   :  { %9021 = vmatprep.subr.mxu1 %v9720_v33 }
 0x362   :  { %v6981_v8 = vpop.f32.mrf.mxu1 }
 0x363   :  { %v8093_v8 = vld [vmem:[%s12240_s4] ss:$0 sm:$0xff] }
 0x36c   :  { %v9714_v9 = vpop.eup %9713 }
 0x36d   :  { %6991 = vperm.xlu1 %9067, %v9714_v9   ;;  %6986 = vperm.xlu0 %9066, %v9714_v9  }
 0x371   :  { %9068 = vset.pattern.permute.xlu1 %v9723_v10  ;;  %9074 = vset.pattern.permute.xlu0 %v9719_v28  ;;  %v7186_v28 = vld [vmem:[%s12238_s3 + $0xe0] sm:$0xff] }
 0x372   :  { %6996 = vperm.xlu1 %9068, %v9714_v9   ;;  %8962 = vmatprep.subr.mxu0 %v7186_v28  ;;  %v7360_v28 = vld [vmem:[%s12241_s7 + $0x18] sm:$0xff] }
 0x373   :  { %8963 = vmatpush3.msra.mxu0 %v7170_v18  ;;  %v7359_v18 = vld [vmem:[%s12241_s7 + $0x10] sm:$0xff] }
 0x374   :  { %8964 = vmatprep.subr.mxu0 %v7185_v19  ;;  %v7358_v19 = vld [vmem:[%s12241_s7 + $0x8] sm:$0xff] }
 0x375   :  { %8965 = vmatpush3.msra.mxu0 %v7169_v20  ;;  %v7357_v20 = vld [vmem:[%s12241_s7] sm:$0xff] }
 0x376   :  { %8966 = vmatprep.subr.mxu0 %v7184_v21  ;;  %v14_v21 = vstv %s12242_s8 }
 0x377   :  { %8967 = vmatpush3.msra.mxu0 %v7168_v22  ;;  %15 = vst [vmem:[#allocation2] sm:$0x1] %v14_v21  ;;  %v8094_v22 = vld [vmem:[%s12243_s6] ss:$0 sm:$0xff] }
 0x378   :  { %8968 = vmatprep.subr.mxu0 %v7183_v23 }
 0x379   :  { %8969 = vmatpush3.msra.mxu0 %v7167_v24 }
 0x37a   :  { %8970 = vmatprep.subr.mxu0 %v7182_v25 }
 0x37b   :  { %8971 = vmatpush3.msra.mxu0 %v7166_v26 }
 0x37c   :  { %8972 = vmatprep.subr.mxu0 %v7181_v27 }
 0x37d   :  { %8973 = vmatpush3.msra.mxu0 %v7165_v29 }
 0x37e   :  { %8974 = vmatprep.subr.mxu0 %v7180_v30 }
 0x37f   :  { %8975 = vmatpush3.msra.mxu0 %v7164_v31 }
 0x380   :  { %8976 = vmatprep.subr.mxu0 %v7179_v32 }
 0x381   :  { %8977 = vmatpush3.msra.mxu0 %v7163_v34 }
 0x382   :  { %8978 = vmatprep.subr.mxu0 %v7178_v35 }
 0x383   :  { %8979 = vmatpush3.msra.mxu0 %v7162_v36 }
 0x384   :  { %8980 = vmatprep.subr.mxu0 %v7177_v37 }
 0x385   :  { %8981 = vmatpush3.msra.mxu0 %v7161_v38 }
 0x386   :  { %8982 = vmatprep.subr.mxu0 %v7176_v39 }
 0x387   :  { %8983 = vmatpush3.msra.mxu0 %v7160_v40 }
 0x388   :  { %8984 = vmatprep.subr.mxu0 %v7175_v41 }
 0x389   :  { %8985 = vmatpush3.msra.mxu0 %v7159_v42 }
 0x38a   :  { %8986 = vmatprep.subr.mxu0 %v7174_v43 }
 0x38b   :  { %8987 = vmatpush3.msra.mxu0 %v7158_v44 }
 0x3af   :  { %v7127_v45 = vpop.f32.mrf.mxu0 }
 0x3b1   :  { %v7129_v52 = vpop.f32.mrf.mxu0 }
 0x3b2   :  { %v9069_v11 = vpack.i.bf16 %v7129_v52, %v7127_v45 }
 0x3e8   :  { %v6992_v48 = vpop.permute.xlu1 %6991  ;;  %v6987_v49 = vpop.permute.xlu0 %6986 }
 0x3e9   :  { %v6994_v50 = vmul.f32 %v6992_v48, %v12052_v5  ;;  %v6989_v51 = vmul.f32 %v6987_v49, %v12052_v5 }
 0x3eb   :  { %7137 = vrot.lane.b32.xlu1 %v6994_v50, %s9724_s29  ;;  %7133 = vrot.lane.b32.xlu0 %v6989_v51, %s9725_s30 }
 0x3ed   :  { %v6997_v54 = vpop.permute.xlu1 %6996 }
 0x3ee   :  { %v6999_v55 = vmul.f32 %v6997_v54, %v12052_v5  ;;  %v7269_v5 = vld [vmem:[%s12239_s5 + $0x8] sm:$0xff] }
 0x3ef   :  { %9070 = vrot.lane.b32.xlu0 %v9069_v11, %s9726_s10  ;;  %9022 = vmatpush3.msra.mxu1 %v7269_v5 }
 0x3f0   :  { %7141 = vrot.lane.b32.xlu1 %v6999_v55, %s9727_s2  ;;  %9023 = vmatprep.subr.mxu1 %v9720_v33 }
 0x3f1   :  { %9024 = vmatpush3.msra.mxu1 %v7268_v6 }
 0x3f2   :  { %9028 = vmatprep.subr.mxu1 %v9720_v33 }
 0x45d   :  { %v7138_v56 = vpop.permute.xlu1 %7137  ;;  %v7134_v57 = vpop.permute.xlu0 %7133 }
 0x45e   :  { %v7154_v58 = vsel %vm7153_vm13, %v7127_v45, %v7134_v57 }
 0x45f   :  { %v7156_v63 = vsel %vm7155_vm15, %v7154_v58, %v7138_v56 }
 0x461   :  { %v9071_v59 = vpop.permute.xlu0 %9070 }
 0x462   :  { %v9073_v60 = vunpack.i.h.bf16 %v9071_v59  ;;  %v9072_v61 = vunpack.i.l.bf16 %v9071_v59  ;;  %v7142_v62 = vpop.permute.xlu1 %7141 }
 0x463   :  { %v7157_v1 = vsel %vm7150_vm14, %v7156_v63, %v7142_v62 }
 0x464   :  { %v7151_v0 = vsel %vm7150_vm14, %v9072_v61, %v9073_v60 }
 0x465   :  { %7261 = vmatprep.mubr.f32.mxu0 %v7151_v0 }
 0x466   :  { %7262 = vmatmul.mubr.f32.vlgmr.msra.gmra.mxu0 %v7157_v1 }
 0x526   :  { %v8988_v7 = vpop.f32.mrf.mxu0 }
 0x528   :  { %v8989_v9 = vpop.f32.mrf.mxu0 }
 0x529   :  { %v8990_v10 = vadd.f32 %v8989_v9, %v8988_v7 }
 0x52b   :  { %v7264_v12 = vadd.f32 %v8990_v10, %v8093_v8 }
 0x52d   :  { %v7267_v13 = vmax.f32 %v7264_v12, 0.0 }
 0x52f   :  { %9026 = vmatmul.mubr.msk.f32.vlgmr.msra.gmra.mxu1 %vm7155_vm15, %v7267_v13 }
 0x530   :  { %9029 = vmatpush3.msra.mxu1 %v7364_v14  ;;  %9044 = vmatprep.mubr.msk.f32.mxu1 %vm9728_vm0, %v9720_v33 }
 0x531   :  { %9030 = vmatprep.subr.mxu1 %v9720_v33 }
 0x532   :  { %9031 = vmatpush3.msra.mxu1 %v7363_v15 }
 0x533   :  { %9032 = vmatprep.subr.mxu1 %v9720_v33 }
 0x534   :  { %9033 = vmatpush3.msra.mxu1 %v7362_v16 }
 0x535   :  { %9034 = vmatprep.subr.mxu1 %v9720_v33 }
 0x536   :  { %9035 = vmatpush3.msra.mxu1 %v7361_v17 }
 0x537   :  { %9036 = vmatprep.subr.mxu1 %v9720_v33 }
 0x538   :  { %9037 = vmatpush3.msra.mxu1 %v7360_v28 }
 0x539   :  { %9038 = vmatprep.subr.mxu1 %v9720_v33 }
 0x53a   :  { %9039 = vmatpush3.msra.mxu1 %v7359_v18 }
 0x53b   :  { %9040 = vmatprep.subr.mxu1 %v9720_v33 }
 0x53c   :  { %9041 = vmatpush3.msra.mxu1 %v7358_v19 }
 0x53d   :  { %9042 = vmatprep.subr.mxu1 %v9720_v33  ;;  %v8096_v33 = vld [vmem:[#allocation2] ss:$0 sm:$0xff] }
 0x53e   :  { %9043 = vmatpush3.msra.mxu1 %v7357_v20 }
 0x5ef   :  { %v7352_v23 = vpop.f32.mrf.mxu1 }
 0x5f0   :  { %v7353_v24 = vadd.f32 %v8094_v22, %v7352_v23 }
 0x5f1   :  { %v9027_v25 = vpop.f32.mrf.mxu1 }
 0x5f2   :  { %v7356_v26 = vmax.f32 %v7353_v24, 0.0 }
 0x5f4   :  { %9045 = vmatmul.mubr.msk.f32.vlgmr.msra.gmra.mxu1 %vm7155_vm15, %v7356_v26 }
 0x6b4   :  { %v7441_v27 = vpop.f32.mrf.mxu1 }
 0x6b5   :  { %v7442_v29 = vadd.f32 %v8096_v33, %v7441_v27 }
 0x6b6   :  { %v9046_v30 = vpop.f32.mrf.mxu1 }
 0x6b7   :  { %7446 = vst.msk [vmem:[%s12244_s9] sm:$0xff] %vm7445_vm1, %v7442_v29 }

</bundles_post_ra>
